<compile_context>
chip_gen: v7x
topology: tpu7x:2x2x1
jax: 0.10.0
libtpu: 0.0.40
codegen_flags: <defaults>
</compile_context>

<pallas_src>
import functools
import math

import jax
import jax.numpy as jnp
from jax import lax
from jax.experimental import pallas as pl
from jax.experimental.pallas import tpu as pltpu


# ----------------------------------------------------------------------------
# In-kernel helpers
# ----------------------------------------------------------------------------
def _layernorm(x, w, b, eps=1e-5):
    mu = jnp.mean(x, axis=-1, keepdims=True)
    var = jnp.mean((x - mu) ** 2, axis=-1, keepdims=True)
    return (x - mu) * lax.rsqrt(var + eps) * w + b


def _mm(x, w_bf16, b_f32):
    # bf16 MXU operands, f32 accumulation, f32 bias add.
    y = jnp.dot(x.astype(jnp.bfloat16), w_bf16, preferred_element_type=jnp.float32)
    return y + b_f32


# ----------------------------------------------------------------------------
# Single fused kernel: embed (l==0) -> L transformer blocks -> LN_f + head
# (l==L-1).  Activation lives in VMEM scratch `acc_ref` across the layer axis.
# Token rows are stored in block order: row e*t + tau  <->  original 3*tau + e.
# ----------------------------------------------------------------------------
def _gpt_kernel(tok_ref, pos_ref, mask_ref, wemb_ref, bemb_ref,
                lnfw_ref, lnfb_ref, headw_ref,
                ln1w_ref, ln1b_ref, wqkv_ref, bqkv_ref, wp_ref, bp_ref,
                ln2w_ref, ln2b_ref, w1_ref, b1_ref, w2_ref, b2_ref,
                o_ref, acc_ref, *, n_head, bb, t):
    l = pl.program_id(1)
    C = acc_ref.shape[-1]
    T = 3 * t
    M = bb * T
    D = C // n_head

    # ---- fused embeddings: first layer step of this batch tile -------------
    @pl.when(l == 0)
    def _embed():
        x_in = tok_ref[...].reshape(bb * t, -1)              # [bb*t, obs+act+1]
        emb = _mm(x_in, wemb_ref[...], bemb_ref[...])        # [bb*t, 3C] block-diag W
        for e in range(3):                                   # per-slot block rows
            acc_ref[:, e * t:(e + 1) * t, :] = (
                emb[:, e * C:(e + 1) * C].reshape(bb, t, C)
                + pos_ref[e * t:(e + 1) * t, :])
        # embd dropout: identity (inference)

    # ---- transformer block `l` ---------------------------------------------
    x = acc_ref[...].reshape(M, C)                           # batch folded into M
    h = _layernorm(x, ln1w_ref[0], ln1b_ref[0])
    qkv = _mm(h, wqkv_ref[0], bqkv_ref[0])                   # [M, 3C]; 1/sqrt(D) folded into Wq
    bias = mask_ref[...]                                     # [T, T] additive causal bias
    w_proj = wp_ref[0]                                       # [C, C]

    attn = jnp.zeros((M, C), jnp.float32)
    for hd in range(n_head):
        q_h = qkv[:, hd * D:(hd + 1) * D].reshape(bb, T, D).astype(jnp.bfloat16)
        k_h = qkv[:, C + hd * D:C + (hd + 1) * D].reshape(bb, T, D).astype(jnp.bfloat16)
        v_h = qkv[:, 2 * C + hd * D:2 * C + (hd + 1) * D].reshape(bb, T, D).astype(jnp.bfloat16)
        s = jnp.einsum('bqd,bkd->bqk', q_h, k_h,
                       preferred_element_type=jnp.float32)   # [bb, T, T]
        s = s + bias
        s = s - jnp.max(s, axis=-1, keepdims=True)
        p = jnp.exp(s)
        p = p * pl.reciprocal(jnp.sum(p, axis=-1, keepdims=True), approx=True)
        y_h = jnp.einsum('bqk,bkd->bqd', p.astype(jnp.bfloat16), v_h,
                         preferred_element_type=jnp.float32)  # [bb, T, D]
        # accumulate the per-head output projection (no head concat needed)
        attn = attn + jnp.dot(y_h.reshape(M, D).astype(jnp.bfloat16),
                              w_proj[hd * D:(hd + 1) * D, :],
                              preferred_element_type=jnp.float32)
    x = x + attn + bp_ref[0]                                 # attn/resid dropout: identity

    h2 = _layernorm(x, ln2w_ref[0], ln2b_ref[0])
    a = _mm(h2, w1_ref[0], b1_ref[0])
    # tanh-approximate GELU (EUP path).  PyTorch nn.GELU() is exact erf; |diff| ~1e-3.
    a = 0.5 * a * (1.0 + jnp.tanh(0.7978845608028654 * (a + 0.044715 * a * a * a)))
    a = _mm(a, w2_ref[0], b2_ref[0])
    acc_ref[...] = (x + a).reshape(bb, T, C)                 # MLP dropout: identity

    # ---- final LayerNorm + EinLinear head: last layer step ------------------
    @pl.when(l == pl.num_programs(1) - 1)
    def _head():
        outs = []
        for e in range(3):                                   # slot e rows are contiguous
            xe = acc_ref[:, e * t:(e + 1) * t, :].reshape(bb * t, C)
            he = _layernorm(xe, lnfw_ref[...], lnfb_ref[...])
            outs.append(jnp.dot(he.astype(jnp.bfloat16), headw_ref[e],
                                preferred_element_type=jnp.float32))
        o_ref[...] = jnp.concatenate(outs, axis=-1).reshape(bb, t, -1)


# ----------------------------------------------------------------------------
# Wrapper: builds the fused inputs and calls the single pallas_call.
# ----------------------------------------------------------------------------
def gpt_agent_forward(params, obs, action, reward, *, n_head):
    B, t, _ = obs.shape
    T = 3 * t
    C = params['lnf_w'].shape[-1]
    blk = params['blocks']
    L = blk['wqkv'].shape[0]
    hid = blk['w1'].shape[-1]
    V1 = params['head_w'].shape[-1]
    K = obs.shape[-1] + action.shape[-1] + reward.shape[-1]
    assert T <= params['pos_emb'].shape[1], "block size exhausted"

    # Fused embedding input: [obs | action | reward] on the feature axis.
    tok_in = jnp.concatenate([obs, action, reward], axis=-1)        # [B, t, K]

    # Block-token-order permutation: kernel row e*t+tau <-> original 3*tau+e.
    tau = jnp.arange(t)
    order = jnp.concatenate([3 * tau, 3 * tau + 1, 3 * tau + 2])    # [T]
    pos = jnp.take(params['pos_emb'][0, :T, :], order, axis=0)      # [T, C] permuted pos emb
    causal = order[None, :] <= order[:, None]
    mask = jnp.where(causal, 0.0, -1e30).astype(jnp.float32)        # precomputed additive bias

    # <=2 batch tiles: weights stream at most twice; >=2 tiles keep both v7x cores busy.
    n_bt = 2 if (B >= 2 and B % 2 == 0) else 1
    bb = B // n_bt

    def cspec(*dims):        # grid-resident (constant block index -> DMA'd once)
        return pl.BlockSpec(dims, lambda b, l: (0,) * len(dims))

    def lspec(*dims):        # per-layer streamed/double-buffered weights
        n = len(dims)
        return pl.BlockSpec((1,) + dims, lambda b, l: (l,) + (0,) * n)

    kernel = functools.partial(_gpt_kernel, n_head=n_head, bb=bb, t=t)
    out = pl.pallas_call(
        kernel,
        grid=(n_bt, L),
        in_specs=[
            pl.BlockSpec((bb, t, K), lambda b, l: (b, 0, 0)),        # [obs|act|rew]
            cspec(T, C),                                             # permuted pos_emb
            cspec(T, T),                                             # permuted causal bias
            cspec(K, 3 * C), cspec(1, 3 * C),                        # fused embed W / b
            cspec(1, C), cspec(1, C),                                # ln_f w / b
            cspec(3, C, V1),                                         # EinLinear head
            lspec(1, C), lspec(1, C),                                # ln1 w / b
            lspec(C, 3 * C), lspec(1, 3 * C),                        # fused Wqkv / b
            lspec(C, C), lspec(1, C),                                # attn proj w / b
            lspec(1, C), lspec(1, C),                                # ln2 w / b
            lspec(C, hid), lspec(1, hid),                            # mlp fc w / b
            lspec(hid, C), lspec(1, C),                              # mlp proj w / b
        ],
        out_specs=pl.BlockSpec((bb, t, 3 * V1), lambda b, l: (b, 0, 0)),
        out_shape=jax.ShapeDtypeStruct((B, t, 3 * V1), jnp.float32),
        scratch_shapes=[pltpu.VMEM((bb, T, C), jnp.float32)],        # layer-resident activation
        compiler_params=pltpu.CompilerParams(
            dimension_semantics=("parallel", "arbitrary")),
    )(tok_in, pos, mask,
      params['emb_w'], params['emb_b'], params['lnf_w'], params['lnf_b'],
      params['head_w'],
      blk['ln1_w'], blk['ln1_b'], blk['wqkv'], blk['bqkv'], blk['wp'], blk['bp'],
      blk['ln2_w'], blk['ln2_b'], blk['w1'], blk['b1'], blk['w2'], blk['b2'])

    # [B, t, 3*(V+1)] slab -> [B, T, V+1]: free row-major de-interleave.
    logits = out.reshape(B, T, V1)
    # TODO(synk): targets/mask cross-entropy loss branch not implemented (targets=None path).
    return logits, None


# ----------------------------------------------------------------------------
# Deterministic parameter init (shapes per GPTAgent.__init__ / _init_weights).
# Matmul weights are stored pre-transposed [in, out] in bf16; 1/sqrt(D) is
# folded into the Q columns of Wqkv; the three embedding Linears are fused
# into one block-diagonal [obs+act+1, 3C] weight.  Per-layer tensors stacked [L, ...].
# ----------------------------------------------------------------------------
def init_params(key, *, C, obs_dim, vocab, n_layer, n_head, block_size, n_hidden):
    D = C // n_head
    scale = 1.0 / math.sqrt(D)
    keys = iter(jax.random.split(key, 8 + 8 * n_layer))

    def nrm(shape):
        return 0.02 * jax.random.normal(next(keys), shape, jnp.float32)

    zeros = lambda s: jnp.zeros(s, jnp.float32)
    ones = lambda s: jnp.ones(s, jnp.float32)
    bf16 = lambda a: a.astype(jnp.bfloat16)

    # Block-diagonal fused embedding: [obs|act|rew] -> [obs_e|act_e|rew_e].
    K = obs_dim + vocab + 1
    w_emb = jnp.zeros((K, 3 * C), jnp.float32)
    w_emb = w_emb.at[:obs_dim, :C].set(nrm((obs_dim, C)))
    w_emb = w_emb.at[obs_dim:obs_dim + vocab, C:2 * C].set(nrm((vocab, C)))
    w_emb = w_emb.at[obs_dim + vocab:, 2 * C:].set(nrm((1, C)))

    params = {
        'pos_emb': zeros((1, block_size, C)),          # nn.Parameter(torch.zeros)
        'emb_w': bf16(w_emb), 'emb_b': zeros((1, 3 * C)),
        'lnf_w': ones((1, C)), 'lnf_b': zeros((1, C)),
        'head_w': bf16(nrm((3, C, vocab + 1))),        # EinLinear [e, in, out], bias=False
    }

    blk = {k: [] for k in ('ln1_w', 'ln1_b', 'wqkv', 'bqkv', 'wp', 'bp',
                           'ln2_w', 'ln2_b', 'w1', 'b1', 'w2', 'b2')}
    for _ in range(n_layer):
        wqkv = nrm((C, 3 * C))
        # Fold the attention 1/sqrt(D) scale into the Q columns (q-bias is zero at init,
        # it would also be scaled for general checkpoints).
        wqkv = wqkv.at[:, :C].multiply(scale)
        blk['ln1_w'].append(ones((1, C)));  blk['ln1_b'].append(zeros((1, C)))
        blk['wqkv'].append(bf16(wqkv));     blk['bqkv'].append(zeros((1, 3 * C)))
        blk['wp'].append(bf16(nrm((C, C)))); blk['bp'].append(zeros((1, C)))
        blk['ln2_w'].append(ones((1, C)));  blk['ln2_b'].append(zeros((1, C)))
        blk['w1'].append(bf16(nrm((C, n_hidden)))); blk['b1'].append(zeros((1, n_hidden)))
        blk['w2'].append(bf16(nrm((n_hidden, C)))); blk['b2'].append(zeros((1, C)))
    params['blocks'] = {k: jnp.stack(v, axis=0) for k, v in blk.items()}
    return params


if __name__ == "__main__":
    B, t = 2, 4                  # batch, timesteps -> sequence length T = 3*t = 12
    obs_dim = 11
    vocab = 7                    # action_emb input dim = vocab_size; head out = vocab+1
    C = 128                      # n_embd (lane-aligned)
    H = 4                        # n_head  (D = 32)
    L = 2                        # n_layer
    block_size = 16

    key = jax.random.PRNGKey(0)
    pkey, k1, k2, k3 = jax.random.split(key, 4)
    params = init_params(pkey, C=C, obs_dim=obs_dim, vocab=vocab, n_layer=L,
                         n_head=H, block_size=block_size, n_hidden=4 * C)

    obs = jax.random.normal(k1, (B, t, obs_dim), jnp.float32)
    action = jax.random.normal(k2, (B, t, vocab), jnp.float32)
    reward = jax.random.normal(k3, (B, t, 1), jnp.float32)

    fwd = jax.jit(functools.partial(gpt_agent_forward, n_head=H))
    logits, loss = fwd(params, obs, action, reward)
    logits = jax.block_until_ready(logits)

    assert logits.shape == (B, 3 * t, vocab + 1), logits.shape
    assert loss is None
    assert bool(jnp.all(jnp.isfinite(logits)))
    print("KERNEL_OK")
</pallas_src>

<mosaic_0001>
module attributes {stable_mosaic.version = 11 : i64} {
  func.func @_gpt_kernel(%arg0: i32, %arg1: i32, %arg2: memref<1x4x19xf32, #tpu.memory_space<vmem>>, %arg3: memref<12x128xf32, #tpu.memory_space<vmem>>, %arg4: memref<12x12xf32, #tpu.memory_space<vmem>>, %arg5: memref<19x384xbf16, #tpu.memory_space<vmem>>, %arg6: memref<1x384xf32, #tpu.memory_space<vmem>>, %arg7: memref<1x128xf32, #tpu.memory_space<vmem>>, %arg8: memref<1x128xf32, #tpu.memory_space<vmem>>, %arg9: memref<3x128x8xbf16, #tpu.memory_space<vmem>>, %arg10: memref<1x1x128xf32, #tpu.memory_space<vmem>>, %arg11: memref<1x1x128xf32, #tpu.memory_space<vmem>>, %arg12: memref<1x128x384xbf16, #tpu.memory_space<vmem>>, %arg13: memref<1x1x384xf32, #tpu.memory_space<vmem>>, %arg14: memref<1x128x128xbf16, #tpu.memory_space<vmem>>, %arg15: memref<1x1x128xf32, #tpu.memory_space<vmem>>, %arg16: memref<1x1x128xf32, #tpu.memory_space<vmem>>, %arg17: memref<1x1x128xf32, #tpu.memory_space<vmem>>, %arg18: memref<1x128x512xbf16, #tpu.memory_space<vmem>>, %arg19: memref<1x1x512xf32, #tpu.memory_space<vmem>>, %arg20: memref<1x512x128xbf16, #tpu.memory_space<vmem>>, %arg21: memref<1x1x128xf32, #tpu.memory_space<vmem>>, %arg22: memref<1x4x24xf32, #tpu.memory_space<vmem>>, %arg23: memref<1x12x128xf32, #tpu.memory_space<vmem>>) attributes {dimension_semantics = [#tpu.dimension_semantics<parallel>, #tpu.dimension_semantics<arbitrary>], iteration_bounds = array<i64: 2, 2>, scalar_prefetch = 0 : i64, scratch_operands = 1 : i64, tpu.core_type = #tpu.core_type<tc>, window_params = [{transform_indices = @transform_0, window_bounds = array<i64: 1, 4, 19>}, {pipeline_mode = #tpu.pipeline_mode<synchronous>, transform_indices = @transform_1, window_bounds = array<i64: 12, 128>}, {pipeline_mode = #tpu.pipeline_mode<synchronous>, transform_indices = @transform_2, window_bounds = array<i64: 12, 12>}, {pipeline_mode = #tpu.pipeline_mode<synchronous>, transform_indices = @transform_3, window_bounds = array<i64: 19, 384>}, {pipeline_mode = #tpu.pipeline_mode<synchronous>, transform_indices = @transform_4, window_bounds = array<i64: 1, 384>}, {pipeline_mode = #tpu.pipeline_mode<synchronous>, transform_indices = @transform_5, window_bounds = array<i64: 1, 128>}, {pipeline_mode = #tpu.pipeline_mode<synchronous>, transform_indices = @transform_6, window_bounds = array<i64: 1, 128>}, {pipeline_mode = #tpu.pipeline_mode<synchronous>, transform_indices = @transform_7, window_bounds = array<i64: 3, 128, 8>}, {transform_indices = @transform_8, window_bounds = array<i64: 1, 1, 128>}, {transform_indices = @transform_9, window_bounds = array<i64: 1, 1, 128>}, {transform_indices = @transform_10, window_bounds = array<i64: 1, 128, 384>}, {transform_indices = @transform_11, window_bounds = array<i64: 1, 1, 384>}, {transform_indices = @transform_12, window_bounds = array<i64: 1, 128, 128>}, {transform_indices = @transform_13, window_bounds = array<i64: 1, 1, 128>}, {transform_indices = @transform_14, window_bounds = array<i64: 1, 1, 128>}, {transform_indices = @transform_15, window_bounds = array<i64: 1, 1, 128>}, {transform_indices = @transform_16, window_bounds = array<i64: 1, 128, 512>}, {transform_indices = @transform_17, window_bounds = array<i64: 1, 1, 512>}, {transform_indices = @transform_18, window_bounds = array<i64: 1, 512, 128>}, {transform_indices = @transform_19, window_bounds = array<i64: 1, 1, 128>}, {transform_indices = @transform_20, window_bounds = array<i64: 1, 4, 24>}]} {
    %c0_i32 = arith.constant 0 : i32
    %0 = arith.cmpi eq, %arg1, %c0_i32 : i32
    %1 = arith.extui %0 : i1 to i32
    %c0_i32_0 = arith.constant 0 : i32
    %2 = arith.cmpi ne, %1, %c0_i32_0 : i32
    scf.if %2 {
      %c0_82 = arith.constant 0 : index
      %c0_83 = arith.constant 0 : index
      %c0_84 = arith.constant 0 : index
      %225 = vector.load %arg2[%c0_82, %c0_83, %c0_84] : memref<1x4x19xf32, #tpu.memory_space<vmem>>, vector<1x4x19xf32>
      %226 = vector.shape_cast %225 : vector<1x4x19xf32> to vector<4x19xf32>
      %c0_85 = arith.constant 0 : index
      %c0_86 = arith.constant 0 : index
      %227 = vector.load %arg5[%c0_85, %c0_86] : memref<19x384xbf16, #tpu.memory_space<vmem>>, vector<19x384xbf16>
      %c0_87 = arith.constant 0 : index
      %c0_88 = arith.constant 0 : index
      %228 = vector.load %arg6[%c0_87, %c0_88] : memref<1x384xf32, #tpu.memory_space<vmem>>, vector<1x384xf32>
      %229 = arith.truncf %226 : vector<4x19xf32> to vector<4x19xbf16>
      %cst_89 = arith.constant dense<0.000000e+00> : vector<4x384xf32>
      %230 = tpu.matmul %229, %227, %cst_89 {dimension_numbers = #tpu.dot_dimension_numbers<[1], [0], [0], [1], [0, 0, 1, 1], [], []>} : vector<4x19xbf16>, vector<19x384xbf16>, vector<4x384xf32> -> vector<4x384xf32>
      %231 = vector.broadcast %228 : vector<1x384xf32> to vector<4x384xf32>
      %232 = arith.addf %230, %231 : vector<4x384xf32>
      %233 = vector.extract_strided_slice %232 {offsets = [0, 0], sizes = [4, 128], strides = [1, 1]} : vector<4x384xf32> to vector<4x128xf32>
      %234 = vector.shape_cast %233 : vector<4x128xf32> to vector<1x4x128xf32>
      %c0_90 = arith.constant 0 : index
      %c0_91 = arith.constant 0 : index
      %235 = vector.load %arg3[%c0_90, %c0_91] : memref<12x128xf32, #tpu.memory_space<vmem>>, vector<4x128xf32>
      %236 = vector.shape_cast %235 : vector<4x128xf32> to vector<1x4x128xf32>
      %237 = arith.addf %234, %236 : vector<1x4x128xf32>
      %c0_92 = arith.constant 0 : index
      %c0_93 = arith.constant 0 : index
      %c0_94 = arith.constant 0 : index
      %238 = vector.load %arg23[%c0_92, %c0_93, %c0_94] : memref<1x12x128xf32, #tpu.memory_space<vmem>>, vector<1x4x128xf32>
      tpu.vector_store %arg23[%c0_92, %c0_93, %c0_94], %237 {strides = array<i32>} : memref<1x12x128xf32, #tpu.memory_space<vmem>>, vector<1x4x128xf32>,
      %239 = vector.extract_strided_slice %232 {offsets = [0, 128], sizes = [4, 128], strides = [1, 1]} : vector<4x384xf32> to vector<4x128xf32>
      %240 = vector.shape_cast %239 : vector<4x128xf32> to vector<1x4x128xf32>
      %c4 = arith.constant 4 : index
      %c0_95 = arith.constant 0 : index
      %241 = vector.load %arg3[%c4, %c0_95] : memref<12x128xf32, #tpu.memory_space<vmem>>, vector<4x128xf32>
      %242 = vector.shape_cast %241 : vector<4x128xf32> to vector<1x4x128xf32>
      %243 = arith.addf %240, %242 : vector<1x4x128xf32>
      %c0_96 = arith.constant 0 : index
      %c4_97 = arith.constant 4 : index
      %c0_98 = arith.constant 0 : index
      %244 = vector.load %arg23[%c0_96, %c4_97, %c0_98] : memref<1x12x128xf32, #tpu.memory_space<vmem>>, vector<1x4x128xf32>
      tpu.vector_store %arg23[%c0_96, %c4_97, %c0_98], %243 {strides = array<i32>} : memref<1x12x128xf32, #tpu.memory_space<vmem>>, vector<1x4x128xf32>,
      %245 = vector.extract_strided_slice %232 {offsets = [0, 256], sizes = [4, 128], strides = [1, 1]} : vector<4x384xf32> to vector<4x128xf32>
      %246 = vector.shape_cast %245 : vector<4x128xf32> to vector<1x4x128xf32>
      %c8 = arith.constant 8 : index
      %c0_99 = arith.constant 0 : index
      %247 = vector.load %arg3[%c8, %c0_99] : memref<12x128xf32, #tpu.memory_space<vmem>>, vector<4x128xf32>
      %248 = vector.shape_cast %247 : vector<4x128xf32> to vector<1x4x128xf32>
      %249 = arith.addf %246, %248 : vector<1x4x128xf32>
      %c0_100 = arith.constant 0 : index
      %c8_101 = arith.constant 8 : index
      %c0_102 = arith.constant 0 : index
      %250 = vector.load %arg23[%c0_100, %c8_101, %c0_102] : memref<1x12x128xf32, #tpu.memory_space<vmem>>, vector<1x4x128xf32>
      tpu.vector_store %arg23[%c0_100, %c8_101, %c0_102], %249 {strides = array<i32>} : memref<1x12x128xf32, #tpu.memory_space<vmem>>, vector<1x4x128xf32>,
    } else {
    }
    %c0 = arith.constant 0 : index
    %c0_1 = arith.constant 0 : index
    %c0_2 = arith.constant 0 : index
    %3 = vector.load %arg23[%c0, %c0_1, %c0_2] : memref<1x12x128xf32, #tpu.memory_space<vmem>>, vector<1x12x128xf32>
    %4 = vector.shape_cast %3 : vector<1x12x128xf32> to vector<12x128xf32>
    %c0_3 = arith.constant 0 : index
    %c0_4 = arith.constant 0 : index
    %c0_5 = arith.constant 0 : index
    %5 = vector.load %arg10[%c0_3, %c0_4, %c0_5] : memref<1x1x128xf32, #tpu.memory_space<vmem>>, vector<1x1x128xf32>
    %6 = vector.shape_cast %5 : vector<1x1x128xf32> to vector<1x128xf32>
    %c0_6 = arith.constant 0 : index
    %c0_7 = arith.constant 0 : index
    %c0_8 = arith.constant 0 : index
    %7 = vector.load %arg11[%c0_6, %c0_7, %c0_8] : memref<1x1x128xf32, #tpu.memory_space<vmem>>, vector<1x1x128xf32>
    %8 = vector.shape_cast %7 : vector<1x1x128xf32> to vector<1x128xf32>
    %cst = arith.constant dense<0.000000e+00> : vector<12xf32>
    %9 = vector.multi_reduction <add>, %4, %cst [1] : vector<12x128xf32> to vector<12xf32>
    %10 = vector.shape_cast %9 : vector<12xf32> to vector<12x1xf32>
    %cst_9 = arith.constant 1.280000e+02 : f32
    %11 = vector.broadcast %cst_9 : f32 to vector<12x1xf32>
    %12 = arith.divf %10, %11 : vector<12x1xf32>
    %13 = vector.broadcast %12 : vector<12x1xf32> to vector<12x128xf32>
    %14 = arith.subf %4, %13 : vector<12x128xf32>
    %15 = arith.mulf %14, %14 : vector<12x128xf32>
    %cst_10 = arith.constant dense<0.000000e+00> : vector<12xf32>
    %16 = vector.multi_reduction <add>, %15, %cst_10 [1] : vector<12x128xf32> to vector<12xf32>
    %17 = vector.shape_cast %16 : vector<12xf32> to vector<12x1xf32>
    %cst_11 = arith.constant 1.280000e+02 : f32
    %18 = vector.broadcast %cst_11 : f32 to vector<12x1xf32>
    %19 = arith.divf %17, %18 : vector<12x1xf32>
    %20 = vector.broadcast %12 : vector<12x1xf32> to vector<12x128xf32>
    %21 = arith.subf %4, %20 : vector<12x128xf32>
    %cst_12 = arith.constant 9.99999974E-6 : f32
    %22 = vector.broadcast %cst_12 : f32 to vector<12x1xf32>
    %23 = arith.addf %19, %22 : vector<12x1xf32>
    %24 = math.rsqrt %23 : vector<12x1xf32>
    %25 = vector.broadcast %24 : vector<12x1xf32> to vector<12x128xf32>
    %26 = arith.mulf %21, %25 : vector<12x128xf32>
    %27 = vector.broadcast %6 : vector<1x128xf32> to vector<12x128xf32>
    %28 = arith.mulf %26, %27 : vector<12x128xf32>
    %29 = vector.broadcast %8 : vector<1x128xf32> to vector<12x128xf32>
    %30 = arith.addf %28, %29 : vector<12x128xf32>
    %c0_13 = arith.constant 0 : index
    %c0_14 = arith.constant 0 : index
    %c0_15 = arith.constant 0 : index
    %31 = vector.load %arg12[%c0_13, %c0_14, %c0_15] : memref<1x128x384xbf16, #tpu.memory_space<vmem>>, vector<1x128x384xbf16>
    %32 = vector.shape_cast %31 : vector<1x128x384xbf16> to vector<128x384xbf16>
    %c0_16 = arith.constant 0 : index
    %c0_17 = arith.constant 0 : index
    %c0_18 = arith.constant 0 : index
    %33 = vector.load %arg13[%c0_16, %c0_17, %c0_18] : memref<1x1x384xf32, #tpu.memory_space<vmem>>, vector<1x1x384xf32>
    %34 = vector.shape_cast %33 : vector<1x1x384xf32> to vector<1x384xf32>
    %35 = arith.truncf %30 : vector<12x128xf32> to vector<12x128xbf16>
    %cst_19 = arith.constant dense<0.000000e+00> : vector<12x384xf32>
    %36 = tpu.matmul %35, %32, %cst_19 {dimension_numbers = #tpu.dot_dimension_numbers<[1], [0], [0], [1], [0, 0, 1, 1], [], []>} : vector<12x128xbf16>, vector<128x384xbf16>, vector<12x384xf32> -> vector<12x384xf32>
    %37 = vector.broadcast %34 : vector<1x384xf32> to vector<12x384xf32>
    %38 = arith.addf %36, %37 : vector<12x384xf32>
    %c0_20 = arith.constant 0 : index
    %c0_21 = arith.constant 0 : index
    %39 = vector.load %arg4[%c0_20, %c0_21] : memref<12x12xf32, #tpu.memory_space<vmem>>, vector<12x12xf32>
    %c0_22 = arith.constant 0 : index
    %c0_23 = arith.constant 0 : index
    %c0_24 = arith.constant 0 : index
    %40 = vector.load %arg14[%c0_22, %c0_23, %c0_24] : memref<1x128x128xbf16, #tpu.memory_space<vmem>>, vector<1x128x128xbf16>
    %41 = vector.shape_cast %40 : vector<1x128x128xbf16> to vector<128x128xbf16>
    %cst_25 = arith.constant 0.000000e+00 : f32
    %42 = vector.broadcast %cst_25 : f32 to vector<12x128xf32>
    %43 = vector.extract_strided_slice %38 {offsets = [0, 0], sizes = [12, 32], strides = [1, 1]} : vector<12x384xf32> to vector<12x32xf32>
    %44 = vector.shape_cast %43 : vector<12x32xf32> to vector<1x12x32xf32>
    %45 = arith.truncf %44 : vector<1x12x32xf32> to vector<1x12x32xbf16>
    %46 = vector.extract_strided_slice %38 {offsets = [0, 128], sizes = [12, 32], strides = [1, 1]} : vector<12x384xf32> to vector<12x32xf32>
    %47 = vector.shape_cast %46 : vector<12x32xf32> to vector<1x12x32xf32>
    %48 = arith.truncf %47 : vector<1x12x32xf32> to vector<1x12x32xbf16>
    %49 = vector.extract_strided_slice %38 {offsets = [0, 256], sizes = [12, 32], strides = [1, 1]} : vector<12x384xf32> to vector<12x32xf32>
    %50 = vector.shape_cast %49 : vector<12x32xf32> to vector<1x12x32xf32>
    %51 = arith.truncf %50 : vector<1x12x32xf32> to vector<1x12x32xbf16>
    "tpu.trace_start"() <{level = 10 : i32, message = "bqd,bkd->bqk"}> : () -> ()
    %cst_26 = arith.constant dense<0.000000e+00> : vector<1x12x12xf32>
    %52 = tpu.matmul %45, %48, %cst_26 {dimension_numbers = #tpu.dot_dimension_numbers<[2], [2], [1], [1], [0, 0, 0, 1, 1, 1], [0], [0]>} : vector<1x12x32xbf16>, vector<1x12x32xbf16>, vector<1x12x12xf32> -> vector<1x12x12xf32>
    "tpu.trace_stop"() : () -> ()
    %53 = vector.shape_cast %39 : vector<12x12xf32> to vector<1x12x12xf32>
    %54 = arith.addf %52, %53 : vector<1x12x12xf32>
    %cst_27 = arith.constant dense<0xFF800000> : vector<1x12xf32>
    %55 = vector.multi_reduction <maximumf>, %54, %cst_27 [2] : vector<1x12x12xf32> to vector<1x12xf32>
    %56 = vector.shape_cast %55 : vector<1x12xf32> to vector<1x12x1xf32>
    %57 = vector.broadcast %56 : vector<1x12x1xf32> to vector<1x12x12xf32>
    %58 = arith.subf %54, %57 : vector<1x12x12xf32>
    %59 = math.exp %58 : vector<1x12x12xf32>
    %cst_28 = arith.constant dense<0.000000e+00> : vector<1x12xf32>
    %60 = vector.multi_reduction <add>, %59, %cst_28 [2] : vector<1x12x12xf32> to vector<1x12xf32>
    %61 = vector.shape_cast %60 : vector<1x12xf32> to vector<1x12x1xf32>
    %62 = tpu.reciprocal %61 {approx = true} : vector<1x12x1xf32> -> vector<1x12x1xf32>
    %63 = vector.broadcast %62 : vector<1x12x1xf32> to vector<1x12x12xf32>
    %64 = arith.mulf %59, %63 : vector<1x12x12xf32>
    %65 = arith.truncf %64 : vector<1x12x12xf32> to vector<1x12x12xbf16>
    "tpu.trace_start"() <{level = 10 : i32, message = "bqk,bkd->bqd"}> : () -> ()
    %cst_29 = arith.constant dense<0.000000e+00> : vector<1x12x32xf32>
    %66 = tpu.matmul %65, %51, %cst_29 {dimension_numbers = #tpu.dot_dimension_numbers<[2], [1], [1], [2], [0, 0, 0, 1, 1, 2], [0], [0]>} : vector<1x12x12xbf16>, vector<1x12x32xbf16>, vector<1x12x32xf32> -> vector<1x12x32xf32>
    "tpu.trace_stop"() : () -> ()
    %67 = vector.shape_cast %66 : vector<1x12x32xf32> to vector<12x32xf32>
    %68 = arith.truncf %67 : vector<12x32xf32> to vector<12x32xbf16>
    %69 = vector.extract_strided_slice %41 {offsets = [0, 0], sizes = [32, 128], strides = [1, 1]} : vector<128x128xbf16> to vector<32x128xbf16>
    %cst_30 = arith.constant dense<0.000000e+00> : vector<12x128xf32>
    %70 = tpu.matmul %68, %69, %cst_30 {dimension_numbers = #tpu.dot_dimension_numbers<[1], [0], [0], [1], [0, 0, 1, 1], [], []>} : vector<12x32xbf16>, vector<32x128xbf16>, vector<12x128xf32> -> vector<12x128xf32>
    %71 = arith.addf %42, %70 : vector<12x128xf32>
    %72 = vector.extract_strided_slice %38 {offsets = [0, 32], sizes = [12, 32], strides = [1, 1]} : vector<12x384xf32> to vector<12x32xf32>
    %73 = vector.shape_cast %72 : vector<12x32xf32> to vector<1x12x32xf32>
    %74 = arith.truncf %73 : vector<1x12x32xf32> to vector<1x12x32xbf16>
    %75 = vector.extract_strided_slice %38 {offsets = [0, 160], sizes = [12, 32], strides = [1, 1]} : vector<12x384xf32> to vector<12x32xf32>
    %76 = vector.shape_cast %75 : vector<12x32xf32> to vector<1x12x32xf32>
    %77 = arith.truncf %76 : vector<1x12x32xf32> to vector<1x12x32xbf16>
    %78 = vector.extract_strided_slice %38 {offsets = [0, 288], sizes = [12, 32], strides = [1, 1]} : vector<12x384xf32> to vector<12x32xf32>
    %79 = vector.shape_cast %78 : vector<12x32xf32> to vector<1x12x32xf32>
    %80 = arith.truncf %79 : vector<1x12x32xf32> to vector<1x12x32xbf16>
    "tpu.trace_start"() <{level = 10 : i32, message = "bqd,bkd->bqk"}> : () -> ()
    %cst_31 = arith.constant dense<0.000000e+00> : vector<1x12x12xf32>
    %81 = tpu.matmul %74, %77, %cst_31 {dimension_numbers = #tpu.dot_dimension_numbers<[2], [2], [1], [1], [0, 0, 0, 1, 1, 1], [0], [0]>} : vector<1x12x32xbf16>, vector<1x12x32xbf16>, vector<1x12x12xf32> -> vector<1x12x12xf32>
    "tpu.trace_stop"() : () -> ()
    %82 = vector.shape_cast %39 : vector<12x12xf32> to vector<1x12x12xf32>
    %83 = arith.addf %81, %82 : vector<1x12x12xf32>
    %cst_32 = arith.constant dense<0xFF800000> : vector<1x12xf32>
    %84 = vector.multi_reduction <maximumf>, %83, %cst_32 [2] : vector<1x12x12xf32> to vector<1x12xf32>
    %85 = vector.shape_cast %84 : vector<1x12xf32> to vector<1x12x1xf32>
    %86 = vector.broadcast %85 : vector<1x12x1xf32> to vector<1x12x12xf32>
    %87 = arith.subf %83, %86 : vector<1x12x12xf32>
    %88 = math.exp %87 : vector<1x12x12xf32>
    %cst_33 = arith.constant dense<0.000000e+00> : vector<1x12xf32>
    %89 = vector.multi_reduction <add>, %88, %cst_33 [2] : vector<1x12x12xf32> to vector<1x12xf32>
    %90 = vector.shape_cast %89 : vector<1x12xf32> to vector<1x12x1xf32>
    %91 = tpu.reciprocal %90 {approx = true} : vector<1x12x1xf32> -> vector<1x12x1xf32>
    %92 = vector.broadcast %91 : vector<1x12x1xf32> to vector<1x12x12xf32>
    %93 = arith.mulf %88, %92 : vector<1x12x12xf32>
    %94 = arith.truncf %93 : vector<1x12x12xf32> to vector<1x12x12xbf16>
    "tpu.trace_start"() <{level = 10 : i32, message = "bqk,bkd->bqd"}> : () -> ()
    %cst_34 = arith.constant dense<0.000000e+00> : vector<1x12x32xf32>
    %95 = tpu.matmul %94, %80, %cst_34 {dimension_numbers = #tpu.dot_dimension_numbers<[2], [1], [1], [2], [0, 0, 0, 1, 1, 2], [0], [0]>} : vector<1x12x12xbf16>, vector<1x12x32xbf16>, vector<1x12x32xf32> -> vector<1x12x32xf32>
    "tpu.trace_stop"() : () -> ()
    %96 = vector.shape_cast %95 : vector<1x12x32xf32> to vector<12x32xf32>
    %97 = arith.truncf %96 : vector<12x32xf32> to vector<12x32xbf16>
    %98 = vector.extract_strided_slice %41 {offsets = [32, 0], sizes = [32, 128], strides = [1, 1]} : vector<128x128xbf16> to vector<32x128xbf16>
    %cst_35 = arith.constant dense<0.000000e+00> : vector<12x128xf32>
    %99 = tpu.matmul %97, %98, %cst_35 {dimension_numbers = #tpu.dot_dimension_numbers<[1], [0], [0], [1], [0, 0, 1, 1], [], []>} : vector<12x32xbf16>, vector<32x128xbf16>, vector<12x128xf32> -> vector<12x128xf32>
    %100 = arith.addf %71, %99 : vector<12x128xf32>
    %101 = vector.extract_strided_slice %38 {offsets = [0, 64], sizes = [12, 32], strides = [1, 1]} : vector<12x384xf32> to vector<12x32xf32>
    %102 = vector.shape_cast %101 : vector<12x32xf32> to vector<1x12x32xf32>
    %103 = arith.truncf %102 : vector<1x12x32xf32> to vector<1x12x32xbf16>
    %104 = vector.extract_strided_slice %38 {offsets = [0, 192], sizes = [12, 32], strides = [1, 1]} : vector<12x384xf32> to vector<12x32xf32>
    %105 = vector.shape_cast %104 : vector<12x32xf32> to vector<1x12x32xf32>
    %106 = arith.truncf %105 : vector<1x12x32xf32> to vector<1x12x32xbf16>
    %107 = vector.extract_strided_slice %38 {offsets = [0, 320], sizes = [12, 32], strides = [1, 1]} : vector<12x384xf32> to vector<12x32xf32>
    %108 = vector.shape_cast %107 : vector<12x32xf32> to vector<1x12x32xf32>
    %109 = arith.truncf %108 : vector<1x12x32xf32> to vector<1x12x32xbf16>
    "tpu.trace_start"() <{level = 10 : i32, message = "bqd,bkd->bqk"}> : () -> ()
    %cst_36 = arith.constant dense<0.000000e+00> : vector<1x12x12xf32>
    %110 = tpu.matmul %103, %106, %cst_36 {dimension_numbers = #tpu.dot_dimension_numbers<[2], [2], [1], [1], [0, 0, 0, 1, 1, 1], [0], [0]>} : vector<1x12x32xbf16>, vector<1x12x32xbf16>, vector<1x12x12xf32> -> vector<1x12x12xf32>
    "tpu.trace_stop"() : () -> ()
    %111 = vector.shape_cast %39 : vector<12x12xf32> to vector<1x12x12xf32>
    %112 = arith.addf %110, %111 : vector<1x12x12xf32>
    %cst_37 = arith.constant dense<0xFF800000> : vector<1x12xf32>
    %113 = vector.multi_reduction <maximumf>, %112, %cst_37 [2] : vector<1x12x12xf32> to vector<1x12xf32>
    %114 = vector.shape_cast %113 : vector<1x12xf32> to vector<1x12x1xf32>
    %115 = vector.broadcast %114 : vector<1x12x1xf32> to vector<1x12x12xf32>
    %116 = arith.subf %112, %115 : vector<1x12x12xf32>
    %117 = math.exp %116 : vector<1x12x12xf32>
    %cst_38 = arith.constant dense<0.000000e+00> : vector<1x12xf32>
    %118 = vector.multi_reduction <add>, %117, %cst_38 [2] : vector<1x12x12xf32> to vector<1x12xf32>
    %119 = vector.shape_cast %118 : vector<1x12xf32> to vector<1x12x1xf32>
    %120 = tpu.reciprocal %119 {approx = true} : vector<1x12x1xf32> -> vector<1x12x1xf32>
    %121 = vector.broadcast %120 : vector<1x12x1xf32> to vector<1x12x12xf32>
    %122 = arith.mulf %117, %121 : vector<1x12x12xf32>
    %123 = arith.truncf %122 : vector<1x12x12xf32> to vector<1x12x12xbf16>
    "tpu.trace_start"() <{level = 10 : i32, message = "bqk,bkd->bqd"}> : () -> ()
    %cst_39 = arith.constant dense<0.000000e+00> : vector<1x12x32xf32>
    %124 = tpu.matmul %123, %109, %cst_39 {dimension_numbers = #tpu.dot_dimension_numbers<[2], [1], [1], [2], [0, 0, 0, 1, 1, 2], [0], [0]>} : vector<1x12x12xbf16>, vector<1x12x32xbf16>, vector<1x12x32xf32> -> vector<1x12x32xf32>
    "tpu.trace_stop"() : () -> ()
    %125 = vector.shape_cast %124 : vector<1x12x32xf32> to vector<12x32xf32>
    %126 = arith.truncf %125 : vector<12x32xf32> to vector<12x32xbf16>
    %127 = vector.extract_strided_slice %41 {offsets = [64, 0], sizes = [32, 128], strides = [1, 1]} : vector<128x128xbf16> to vector<32x128xbf16>
    %cst_40 = arith.constant dense<0.000000e+00> : vector<12x128xf32>
    %128 = tpu.matmul %126, %127, %cst_40 {dimension_numbers = #tpu.dot_dimension_numbers<[1], [0], [0], [1], [0, 0, 1, 1], [], []>} : vector<12x32xbf16>, vector<32x128xbf16>, vector<12x128xf32> -> vector<12x128xf32>
    %129 = arith.addf %100, %128 : vector<12x128xf32>
    %130 = vector.extract_strided_slice %38 {offsets = [0, 96], sizes = [12, 32], strides = [1, 1]} : vector<12x384xf32> to vector<12x32xf32>
    %131 = vector.shape_cast %130 : vector<12x32xf32> to vector<1x12x32xf32>
    %132 = arith.truncf %131 : vector<1x12x32xf32> to vector<1x12x32xbf16>
    %133 = vector.extract_strided_slice %38 {offsets = [0, 224], sizes = [12, 32], strides = [1, 1]} : vector<12x384xf32> to vector<12x32xf32>
    %134 = vector.shape_cast %133 : vector<12x32xf32> to vector<1x12x32xf32>
    %135 = arith.truncf %134 : vector<1x12x32xf32> to vector<1x12x32xbf16>
    %136 = vector.extract_strided_slice %38 {offsets = [0, 352], sizes = [12, 32], strides = [1, 1]} : vector<12x384xf32> to vector<12x32xf32>
    %137 = vector.shape_cast %136 : vector<12x32xf32> to vector<1x12x32xf32>
    %138 = arith.truncf %137 : vector<1x12x32xf32> to vector<1x12x32xbf16>
    "tpu.trace_start"() <{level = 10 : i32, message = "bqd,bkd->bqk"}> : () -> ()
    %cst_41 = arith.constant dense<0.000000e+00> : vector<1x12x12xf32>
    %139 = tpu.matmul %132, %135, %cst_41 {dimension_numbers = #tpu.dot_dimension_numbers<[2], [2], [1], [1], [0, 0, 0, 1, 1, 1], [0], [0]>} : vector<1x12x32xbf16>, vector<1x12x32xbf16>, vector<1x12x12xf32> -> vector<1x12x12xf32>
    "tpu.trace_stop"() : () -> ()
    %140 = vector.shape_cast %39 : vector<12x12xf32> to vector<1x12x12xf32>
    %141 = arith.addf %139, %140 : vector<1x12x12xf32>
    %cst_42 = arith.constant dense<0xFF800000> : vector<1x12xf32>
    %142 = vector.multi_reduction <maximumf>, %141, %cst_42 [2] : vector<1x12x12xf32> to vector<1x12xf32>
    %143 = vector.shape_cast %142 : vector<1x12xf32> to vector<1x12x1xf32>
    %144 = vector.broadcast %143 : vector<1x12x1xf32> to vector<1x12x12xf32>
    %145 = arith.subf %141, %144 : vector<1x12x12xf32>
    %146 = math.exp %145 : vector<1x12x12xf32>
    %cst_43 = arith.constant dense<0.000000e+00> : vector<1x12xf32>
    %147 = vector.multi_reduction <add>, %146, %cst_43 [2] : vector<1x12x12xf32> to vector<1x12xf32>
    %148 = vector.shape_cast %147 : vector<1x12xf32> to vector<1x12x1xf32>
    %149 = tpu.reciprocal %148 {approx = true} : vector<1x12x1xf32> -> vector<1x12x1xf32>
    %150 = vector.broadcast %149 : vector<1x12x1xf32> to vector<1x12x12xf32>
    %151 = arith.mulf %146, %150 : vector<1x12x12xf32>
    %152 = arith.truncf %151 : vector<1x12x12xf32> to vector<1x12x12xbf16>
    "tpu.trace_start"() <{level = 10 : i32, message = "bqk,bkd->bqd"}> : () -> ()
    %cst_44 = arith.constant dense<0.000000e+00> : vector<1x12x32xf32>
    %153 = tpu.matmul %152, %138, %cst_44 {dimension_numbers = #tpu.dot_dimension_numbers<[2], [1], [1], [2], [0, 0, 0, 1, 1, 2], [0], [0]>} : vector<1x12x12xbf16>, vector<1x12x32xbf16>, vector<1x12x32xf32> -> vector<1x12x32xf32>
    "tpu.trace_stop"() : () -> ()
    %154 = vector.shape_cast %153 : vector<1x12x32xf32> to vector<12x32xf32>
    %155 = arith.truncf %154 : vector<12x32xf32> to vector<12x32xbf16>
    %156 = vector.extract_strided_slice %41 {offsets = [96, 0], sizes = [32, 128], strides = [1, 1]} : vector<128x128xbf16> to vector<32x128xbf16>
    %cst_45 = arith.constant dense<0.000000e+00> : vector<12x128xf32>
    %157 = tpu.matmul %155, %156, %cst_45 {dimension_numbers = #tpu.dot_dimension_numbers<[1], [0], [0], [1], [0, 0, 1, 1], [], []>} : vector<12x32xbf16>, vector<32x128xbf16>, vector<12x128xf32> -> vector<12x128xf32>
    %158 = arith.addf %129, %157 : vector<12x128xf32>
    %159 = arith.addf %4, %158 : vector<12x128xf32>
    %c0_46 = arith.constant 0 : index
    %c0_47 = arith.constant 0 : index
    %c0_48 = arith.constant 0 : index
    %160 = vector.load %arg15[%c0_46, %c0_47, %c0_48] : memref<1x1x128xf32, #tpu.memory_space<vmem>>, vector<1x1x128xf32>
    %161 = vector.shape_cast %160 : vector<1x1x128xf32> to vector<1x128xf32>
    %162 = vector.broadcast %161 : vector<1x128xf32> to vector<12x128xf32>
    %163 = arith.addf %159, %162 : vector<12x128xf32>
    %c0_49 = arith.constant 0 : index
    %c0_50 = arith.constant 0 : index
    %c0_51 = arith.constant 0 : index
    %164 = vector.load %arg16[%c0_49, %c0_50, %c0_51] : memref<1x1x128xf32, #tpu.memory_space<vmem>>, vector<1x1x128xf32>
    %165 = vector.shape_cast %164 : vector<1x1x128xf32> to vector<1x128xf32>
    %c0_52 = arith.constant 0 : index
    %c0_53 = arith.constant 0 : index
    %c0_54 = arith.constant 0 : index
    %166 = vector.load %arg17[%c0_52, %c0_53, %c0_54] : memref<1x1x128xf32, #tpu.memory_space<vmem>>, vector<1x1x128xf32>
    %167 = vector.shape_cast %166 : vector<1x1x128xf32> to vector<1x128xf32>
    %cst_55 = arith.constant dense<0.000000e+00> : vector<12xf32>
    %168 = vector.multi_reduction <add>, %163, %cst_55 [1] : vector<12x128xf32> to vector<12xf32>
    %169 = vector.shape_cast %168 : vector<12xf32> to vector<12x1xf32>
    %cst_56 = arith.constant 1.280000e+02 : f32
    %170 = vector.broadcast %cst_56 : f32 to vector<12x1xf32>
    %171 = arith.divf %169, %170 : vector<12x1xf32>
    %172 = vector.broadcast %171 : vector<12x1xf32> to vector<12x128xf32>
    %173 = arith.subf %163, %172 : vector<12x128xf32>
    %174 = arith.mulf %173, %173 : vector<12x128xf32>
    %cst_57 = arith.constant dense<0.000000e+00> : vector<12xf32>
    %175 = vector.multi_reduction <add>, %174, %cst_57 [1] : vector<12x128xf32> to vector<12xf32>
    %176 = vector.shape_cast %175 : vector<12xf32> to vector<12x1xf32>
    %cst_58 = arith.constant 1.280000e+02 : f32
    %177 = vector.broadcast %cst_58 : f32 to vector<12x1xf32>
    %178 = arith.divf %176, %177 : vector<12x1xf32>
    %179 = vector.broadcast %171 : vector<12x1xf32> to vector<12x128xf32>
    %180 = arith.subf %163, %179 : vector<12x128xf32>
    %cst_59 = arith.constant 9.99999974E-6 : f32
    %181 = vector.broadcast %cst_59 : f32 to vector<12x1xf32>
    %182 = arith.addf %178, %181 : vector<12x1xf32>
    %183 = math.rsqrt %182 : vector<12x1xf32>
    %184 = vector.broadcast %183 : vector<12x1xf32> to vector<12x128xf32>
    %185 = arith.mulf %180, %184 : vector<12x128xf32>
    %186 = vector.broadcast %165 : vector<1x128xf32> to vector<12x128xf32>
    %187 = arith.mulf %185, %186 : vector<12x128xf32>
    %188 = vector.broadcast %167 : vector<1x128xf32> to vector<12x128xf32>
    %189 = arith.addf %187, %188 : vector<12x128xf32>
    %c0_60 = arith.constant 0 : index
    %c0_61 = arith.constant 0 : index
    %c0_62 = arith.constant 0 : index
    %190 = vector.load %arg18[%c0_60, %c0_61, %c0_62] : memref<1x128x512xbf16, #tpu.memory_space<vmem>>, vector<1x128x512xbf16>
    %191 = vector.shape_cast %190 : vector<1x128x512xbf16> to vector<128x512xbf16>
    %c0_63 = arith.constant 0 : index
    %c0_64 = arith.constant 0 : index
    %c0_65 = arith.constant 0 : index
    %192 = vector.load %arg19[%c0_63, %c0_64, %c0_65] : memref<1x1x512xf32, #tpu.memory_space<vmem>>, vector<1x1x512xf32>
    %193 = vector.shape_cast %192 : vector<1x1x512xf32> to vector<1x512xf32>
    %194 = arith.truncf %189 : vector<12x128xf32> to vector<12x128xbf16>
    %cst_66 = arith.constant dense<0.000000e+00> : vector<12x512xf32>
    %195 = tpu.matmul %194, %191, %cst_66 {dimension_numbers = #tpu.dot_dimension_numbers<[1], [0], [0], [1], [0, 0, 1, 1], [], []>} : vector<12x128xbf16>, vector<128x512xbf16>, vector<12x512xf32> -> vector<12x512xf32>
    %196 = vector.broadcast %193 : vector<1x512xf32> to vector<12x512xf32>
    %197 = arith.addf %195, %196 : vector<12x512xf32>
    %cst_67 = arith.constant 5.000000e-01 : f32
    %198 = vector.broadcast %cst_67 : f32 to vector<12x512xf32>
    %199 = arith.mulf %198, %197 : vector<12x512xf32>
    %cst_68 = arith.constant 4.471500e-02 : f32
    %200 = vector.broadcast %cst_68 : f32 to vector<12x512xf32>
    %201 = arith.mulf %200, %197 : vector<12x512xf32>
    %202 = arith.mulf %201, %197 : vector<12x512xf32>
    %203 = arith.mulf %202, %197 : vector<12x512xf32>
    %204 = arith.addf %197, %203 : vector<12x512xf32>
    %cst_69 = arith.constant 0.797884583 : f32
    %205 = vector.broadcast %cst_69 : f32 to vector<12x512xf32>
    %206 = arith.mulf %205, %204 : vector<12x512xf32>
    %207 = math.tanh %206 : vector<12x512xf32>
    %cst_70 = arith.constant 1.000000e+00 : f32
    %208 = vector.broadcast %cst_70 : f32 to vector<12x512xf32>
    %209 = arith.addf %208, %207 : vector<12x512xf32>
    %210 = arith.mulf %199, %209 : vector<12x512xf32>
    %c0_71 = arith.constant 0 : index
    %c0_72 = arith.constant 0 : index
    %c0_73 = arith.constant 0 : index
    %211 = vector.load %arg20[%c0_71, %c0_72, %c0_73] : memref<1x512x128xbf16, #tpu.memory_space<vmem>>, vector<1x512x128xbf16>
    %212 = vector.shape_cast %211 : vector<1x512x128xbf16> to vector<512x128xbf16>
    %c0_74 = arith.constant 0 : index
    %c0_75 = arith.constant 0 : index
    %c0_76 = arith.constant 0 : index
    %213 = vector.load %arg21[%c0_74, %c0_75, %c0_76] : memref<1x1x128xf32, #tpu.memory_space<vmem>>, vector<1x1x128xf32>
    %214 = vector.shape_cast %213 : vector<1x1x128xf32> to vector<1x128xf32>
    %215 = arith.truncf %210 : vector<12x512xf32> to vector<12x512xbf16>
    %cst_77 = arith.constant dense<0.000000e+00> : vector<12x128xf32>
    %216 = tpu.matmul %215, %212, %cst_77 {dimension_numbers = #tpu.dot_dimension_numbers<[1], [0], [0], [1], [0, 0, 1, 1], [], []>} : vector<12x512xbf16>, vector<512x128xbf16>, vector<12x128xf32> -> vector<12x128xf32>
    %217 = vector.broadcast %214 : vector<1x128xf32> to vector<12x128xf32>
    %218 = arith.addf %216, %217 : vector<12x128xf32>
    %219 = arith.addf %163, %218 : vector<12x128xf32>
    %220 = vector.shape_cast %219 : vector<12x128xf32> to vector<1x12x128xf32>
    %c0_78 = arith.constant 0 : index
    %c0_79 = arith.constant 0 : index
    %c0_80 = arith.constant 0 : index
    %221 = vector.load %arg23[%c0_78, %c0_79, %c0_80] : memref<1x12x128xf32, #tpu.memory_space<vmem>>, vector<1x12x128xf32>
    tpu.vector_store %arg23[%c0_78, %c0_79, %c0_80], %220 {strides = array<i32>} : memref<1x12x128xf32, #tpu.memory_space<vmem>>, vector<1x12x128xf32>,
    %c1_i32 = arith.constant 1 : i32
    %222 = arith.cmpi eq, %arg1, %c1_i32 : i32
    %223 = arith.extui %222 : i1 to i32
    %c0_i32_81 = arith.constant 0 : i32
    %224 = arith.cmpi ne, %223, %c0_i32_81 : i32
    scf.if %224 {
      %c0_82 = arith.constant 0 : index
      %c0_83 = arith.constant 0 : index
      %c0_84 = arith.constant 0 : index
      %225 = vector.load %arg23[%c0_82, %c0_83, %c0_84] : memref<1x12x128xf32, #tpu.memory_space<vmem>>, vector<1x4x128xf32>
      %226 = vector.shape_cast %225 : vector<1x4x128xf32> to vector<4x128xf32>
      %c0_85 = arith.constant 0 : index
      %c0_86 = arith.constant 0 : index
      %227 = vector.load %arg7[%c0_85, %c0_86] : memref<1x128xf32, #tpu.memory_space<vmem>>, vector<1x128xf32>
      %c0_87 = arith.constant 0 : index
      %c0_88 = arith.constant 0 : index
      %228 = vector.load %arg8[%c0_87, %c0_88] : memref<1x128xf32, #tpu.memory_space<vmem>>, vector<1x128xf32>
      %cst_89 = arith.constant dense<0.000000e+00> : vector<4xf32>
      %229 = vector.multi_reduction <add>, %226, %cst_89 [1] : vector<4x128xf32> to vector<4xf32>
      %230 = vector.shape_cast %229 : vector<4xf32> to vector<4x1xf32>
      %cst_90 = arith.constant 1.280000e+02 : f32
      %231 = vector.broadcast %cst_90 : f32 to vector<4x1xf32>
      %232 = arith.divf %230, %231 : vector<4x1xf32>
      %233 = vector.broadcast %232 : vector<4x1xf32> to vector<4x128xf32>
      %234 = arith.subf %226, %233 : vector<4x128xf32>
      %235 = arith.mulf %234, %234 : vector<4x128xf32>
      %cst_91 = arith.constant dense<0.000000e+00> : vector<4xf32>
      %236 = vector.multi_reduction <add>, %235, %cst_91 [1] : vector<4x128xf32> to vector<4xf32>
      %237 = vector.shape_cast %236 : vector<4xf32> to vector<4x1xf32>
      %cst_92 = arith.constant 1.280000e+02 : f32
      %238 = vector.broadcast %cst_92 : f32 to vector<4x1xf32>
      %239 = arith.divf %237, %238 : vector<4x1xf32>
      %240 = vector.broadcast %232 : vector<4x1xf32> to vector<4x128xf32>
      %241 = arith.subf %226, %240 : vector<4x128xf32>
      %cst_93 = arith.constant 9.99999974E-6 : f32
      %242 = vector.broadcast %cst_93 : f32 to vector<4x1xf32>
      %243 = arith.addf %239, %242 : vector<4x1xf32>
      %244 = math.rsqrt %243 : vector<4x1xf32>
      %245 = vector.broadcast %244 : vector<4x1xf32> to vector<4x128xf32>
      %246 = arith.mulf %241, %245 : vector<4x128xf32>
      %247 = vector.broadcast %227 : vector<1x128xf32> to vector<4x128xf32>
      %248 = arith.mulf %246, %247 : vector<4x128xf32>
      %249 = vector.broadcast %228 : vector<1x128xf32> to vector<4x128xf32>
      %250 = arith.addf %248, %249 : vector<4x128xf32>
      %251 = arith.truncf %250 : vector<4x128xf32> to vector<4x128xbf16>
      %c0_94 = arith.constant 0 : index
      %c0_95 = arith.constant 0 : index
      %c0_96 = arith.constant 0 : index
      %252 = vector.load %arg9[%c0_94, %c0_95, %c0_96] : memref<3x128x8xbf16, #tpu.memory_space<vmem>>, vector<1x128x8xbf16>
      %253 = vector.shape_cast %252 : vector<1x128x8xbf16> to vector<128x8xbf16>
      %cst_97 = arith.constant dense<0.000000e+00> : vector<4x8xf32>
      %254 = tpu.matmul %251, %253, %cst_97 {dimension_numbers = #tpu.dot_dimension_numbers<[1], [0], [0], [1], [0, 0, 1, 1], [], []>} : vector<4x128xbf16>, vector<128x8xbf16>, vector<4x8xf32> -> vector<4x8xf32>
      %c0_98 = arith.constant 0 : index
      %c4 = arith.constant 4 : index
      %c0_99 = arith.constant 0 : index
      %255 = vector.load %arg23[%c0_98, %c4, %c0_99] : memref<1x12x128xf32, #tpu.memory_space<vmem>>, vector<1x4x128xf32>
      %256 = vector.shape_cast %255 : vector<1x4x128xf32> to vector<4x128xf32>
      %c0_100 = arith.constant 0 : index
      %c0_101 = arith.constant 0 : index
      %257 = vector.load %arg7[%c0_100, %c0_101] : memref<1x128xf32, #tpu.memory_space<vmem>>, vector<1x128xf32>
      %c0_102 = arith.constant 0 : index
      %c0_103 = arith.constant 0 : index
      %258 = vector.load %arg8[%c0_102, %c0_103] : memref<1x128xf32, #tpu.memory_space<vmem>>, vector<1x128xf32>
      %cst_104 = arith.constant dense<0.000000e+00> : vector<4xf32>
      %259 = vector.multi_reduction <add>, %256, %cst_104 [1] : vector<4x128xf32> to vector<4xf32>
      %260 = vector.shape_cast %259 : vector<4xf32> to vector<4x1xf32>
      %cst_105 = arith.constant 1.280000e+02 : f32
      %261 = vector.broadcast %cst_105 : f32 to vector<4x1xf32>
      %262 = arith.divf %260, %261 : vector<4x1xf32>
      %263 = vector.broadcast %262 : vector<4x1xf32> to vector<4x128xf32>
      %264 = arith.subf %256, %263 : vector<4x128xf32>
      %265 = arith.mulf %264, %264 : vector<4x128xf32>
      %cst_106 = arith.constant dense<0.000000e+00> : vector<4xf32>
      %266 = vector.multi_reduction <add>, %265, %cst_106 [1] : vector<4x128xf32> to vector<4xf32>
      %267 = vector.shape_cast %266 : vector<4xf32> to vector<4x1xf32>
      %cst_107 = arith.constant 1.280000e+02 : f32
      %268 = vector.broadcast %cst_107 : f32 to vector<4x1xf32>
      %269 = arith.divf %267, %268 : vector<4x1xf32>
      %270 = vector.broadcast %262 : vector<4x1xf32> to vector<4x128xf32>
      %271 = arith.subf %256, %270 : vector<4x128xf32>
      %cst_108 = arith.constant 9.99999974E-6 : f32
      %272 = vector.broadcast %cst_108 : f32 to vector<4x1xf32>
      %273 = arith.addf %269, %272 : vector<4x1xf32>
      %274 = math.rsqrt %273 : vector<4x1xf32>
      %275 = vector.broadcast %274 : vector<4x1xf32> to vector<4x128xf32>
      %276 = arith.mulf %271, %275 : vector<4x128xf32>
      %277 = vector.broadcast %257 : vector<1x128xf32> to vector<4x128xf32>
      %278 = arith.mulf %276, %277 : vector<4x128xf32>
      %279 = vector.broadcast %258 : vector<1x128xf32> to vector<4x128xf32>
      %280 = arith.addf %278, %279 : vector<4x128xf32>
      %281 = arith.truncf %280 : vector<4x128xf32> to vector<4x128xbf16>
      %c1 = arith.constant 1 : index
      %c0_109 = arith.constant 0 : index
      %c0_110 = arith.constant 0 : index
      %282 = vector.load %arg9[%c1, %c0_109, %c0_110] : memref<3x128x8xbf16, #tpu.memory_space<vmem>>, vector<1x128x8xbf16>
      %283 = vector.shape_cast %282 : vector<1x128x8xbf16> to vector<128x8xbf16>
      %cst_111 = arith.constant dense<0.000000e+00> : vector<4x8xf32>
      %284 = tpu.matmul %281, %283, %cst_111 {dimension_numbers = #tpu.dot_dimension_numbers<[1], [0], [0], [1], [0, 0, 1, 1], [], []>} : vector<4x128xbf16>, vector<128x8xbf16>, vector<4x8xf32> -> vector<4x8xf32>
      %c0_112 = arith.constant 0 : index
      %c8 = arith.constant 8 : index
      %c0_113 = arith.constant 0 : index
      %285 = vector.load %arg23[%c0_112, %c8, %c0_113] : memref<1x12x128xf32, #tpu.memory_space<vmem>>, vector<1x4x128xf32>
      %286 = vector.shape_cast %285 : vector<1x4x128xf32> to vector<4x128xf32>
      %c0_114 = arith.constant 0 : index
      %c0_115 = arith.constant 0 : index
      %287 = vector.load %arg7[%c0_114, %c0_115] : memref<1x128xf32, #tpu.memory_space<vmem>>, vector<1x128xf32>
      %c0_116 = arith.constant 0 : index
      %c0_117 = arith.constant 0 : index
      %288 = vector.load %arg8[%c0_116, %c0_117] : memref<1x128xf32, #tpu.memory_space<vmem>>, vector<1x128xf32>
      %cst_118 = arith.constant dense<0.000000e+00> : vector<4xf32>
      %289 = vector.multi_reduction <add>, %286, %cst_118 [1] : vector<4x128xf32> to vector<4xf32>
      %290 = vector.shape_cast %289 : vector<4xf32> to vector<4x1xf32>
      %cst_119 = arith.constant 1.280000e+02 : f32
      %291 = vector.broadcast %cst_119 : f32 to vector<4x1xf32>
      %292 = arith.divf %290, %291 : vector<4x1xf32>
      %293 = vector.broadcast %292 : vector<4x1xf32> to vector<4x128xf32>
      %294 = arith.subf %286, %293 : vector<4x128xf32>
      %295 = arith.mulf %294, %294 : vector<4x128xf32>
      %cst_120 = arith.constant dense<0.000000e+00> : vector<4xf32>
      %296 = vector.multi_reduction <add>, %295, %cst_120 [1] : vector<4x128xf32> to vector<4xf32>
      %297 = vector.shape_cast %296 : vector<4xf32> to vector<4x1xf32>
      %cst_121 = arith.constant 1.280000e+02 : f32
      %298 = vector.broadcast %cst_121 : f32 to vector<4x1xf32>
      %299 = arith.divf %297, %298 : vector<4x1xf32>
      %300 = vector.broadcast %292 : vector<4x1xf32> to vector<4x128xf32>
      %301 = arith.subf %286, %300 : vector<4x128xf32>
      %cst_122 = arith.constant 9.99999974E-6 : f32
      %302 = vector.broadcast %cst_122 : f32 to vector<4x1xf32>
      %303 = arith.addf %299, %302 : vector<4x1xf32>
      %304 = math.rsqrt %303 : vector<4x1xf32>
      %305 = vector.broadcast %304 : vector<4x1xf32> to vector<4x128xf32>
      %306 = arith.mulf %301, %305 : vector<4x128xf32>
      %307 = vector.broadcast %287 : vector<1x128xf32> to vector<4x128xf32>
      %308 = arith.mulf %306, %307 : vector<4x128xf32>
      %309 = vector.broadcast %288 : vector<1x128xf32> to vector<4x128xf32>
      %310 = arith.addf %308, %309 : vector<4x128xf32>
      %311 = arith.truncf %310 : vector<4x128xf32> to vector<4x128xbf16>
      %c2 = arith.constant 2 : index
      %c0_123 = arith.constant 0 : index
      %c0_124 = arith.constant 0 : index
      %312 = vector.load %arg9[%c2, %c0_123, %c0_124] : memref<3x128x8xbf16, #tpu.memory_space<vmem>>, vector<1x128x8xbf16>
      %313 = vector.shape_cast %312 : vector<1x128x8xbf16> to vector<128x8xbf16>
      %cst_125 = arith.constant dense<0.000000e+00> : vector<4x8xf32>
      %314 = tpu.matmul %311, %313, %cst_125 {dimension_numbers = #tpu.dot_dimension_numbers<[1], [0], [0], [1], [0, 0, 1, 1], [], []>} : vector<4x128xbf16>, vector<128x8xbf16>, vector<4x8xf32> -> vector<4x8xf32>
      %315 = tpu.concatenate %254, %284, %314 in 1 : vector<4x8xf32>, vector<4x8xf32>, vector<4x8xf32> -> vector<4x24xf32>
      %316 = vector.shape_cast %315 : vector<4x24xf32> to vector<1x4x24xf32>
      %c0_126 = arith.constant 0 : index
      %c0_127 = arith.constant 0 : index
      %c0_128 = arith.constant 0 : index
      %317 = vector.load %arg22[%c0_126, %c0_127, %c0_128] : memref<1x4x24xf32, #tpu.memory_space<vmem>>, vector<1x4x24xf32>
      tpu.vector_store %arg22[%c0_126, %c0_127, %c0_128], %316 {strides = array<i32>} : memref<1x4x24xf32, #tpu.memory_space<vmem>>, vector<1x4x24xf32>,
    } else {
    }
    return
  }
  func.func @transform_0(%arg0: i32, %arg1: i32) -> (i32, i32, i32) {
    %c0_i32 = arith.constant 0 : i32
    %c0_i32_0 = arith.constant 0 : i32
    %c0_i32_1 = arith.constant 0 : i32
    return %arg0, %c0_i32, %c0_i32_0 : i32, i32, i32
  }
  func.func @transform_1(%arg0: i32, %arg1: i32) -> (i32, i32) {
    %c0_i32 = arith.constant 0 : i32
    %c0_i32_0 = arith.constant 0 : i32
    %c0_i32_1 = arith.constant 0 : i32
    return %c0_i32, %c0_i32_0 : i32, i32
  }
  func.func @transform_2(%arg0: i32, %arg1: i32) -> (i32, i32) {
    %c0_i32 = arith.constant 0 : i32
    %c0_i32_0 = arith.constant 0 : i32
    %c0_i32_1 = arith.constant 0 : i32
    return %c0_i32, %c0_i32_0 : i32, i32
  }
  func.func @transform_3(%arg0: i32, %arg1: i32) -> (i32, i32) {
    %c0_i32 = arith.constant 0 : i32
    %c0_i32_0 = arith.constant 0 : i32
    %c0_i32_1 = arith.constant 0 : i32
    return %c0_i32, %c0_i32_0 : i32, i32
  }
  func.func @transform_4(%arg0: i32, %arg1: i32) -> (i32, i32) {
    %c0_i32 = arith.constant 0 : i32
    %c0_i32_0 = arith.constant 0 : i32
    %c0_i32_1 = arith.constant 0 : i32
    return %c0_i32, %c0_i32_0 : i32, i32
  }
  func.func @transform_5(%arg0: i32, %arg1: i32) -> (i32, i32) {
    %c0_i32 = arith.constant 0 : i32
    %c0_i32_0 = arith.constant 0 : i32
    %c0_i32_1 = arith.constant 0 : i32
    return %c0_i32, %c0_i32_0 : i32, i32
  }
  func.func @transform_6(%arg0: i32, %arg1: i32) -> (i32, i32) {
    %c0_i32 = arith.constant 0 : i32
    %c0_i32_0 = arith.constant 0 : i32
    %c0_i32_1 = arith.constant 0 : i32
    return %c0_i32, %c0_i32_0 : i32, i32
  }
  func.func @transform_7(%arg0: i32, %arg1: i32) -> (i32, i32, i32) {
    %c0_i32 = arith.constant 0 : i32
    %c0_i32_0 = arith.constant 0 : i32
    %c0_i32_1 = arith.constant 0 : i32
    %c0_i32_2 = arith.constant 0 : i32
    return %c0_i32, %c0_i32_0, %c0_i32_1 : i32, i32, i32
  }
  func.func @transform_8(%arg0: i32, %arg1: i32) -> (i32, i32, i32) {
    %c0_i32 = arith.constant 0 : i32
    %c0_i32_0 = arith.constant 0 : i32
    %c0_i32_1 = arith.constant 0 : i32
    return %arg1, %c0_i32, %c0_i32_0 : i32, i32, i32
  }
  func.func @transform_9(%arg0: i32, %arg1: i32) -> (i32, i32, i32) {
    %c0_i32 = arith.constant 0 : i32
    %c0_i32_0 = arith.constant 0 : i32
    %c0_i32_1 = arith.constant 0 : i32
    return %arg1, %c0_i32, %c0_i32_0 : i32, i32, i32
  }
  func.func @transform_10(%arg0: i32, %arg1: i32) -> (i32, i32, i32) {
    %c0_i32 = arith.constant 0 : i32
    %c0_i32_0 = arith.constant 0 : i32
    %c0_i32_1 = arith.constant 0 : i32
    return %arg1, %c0_i32, %c0_i32_0 : i32, i32, i32
  }
  func.func @transform_11(%arg0: i32, %arg1: i32) -> (i32, i32, i32) {
    %c0_i32 = arith.constant 0 : i32
    %c0_i32_0 = arith.constant 0 : i32
    %c0_i32_1 = arith.constant 0 : i32
    return %arg1, %c0_i32, %c0_i32_0 : i32, i32, i32
  }
  func.func @transform_12(%arg0: i32, %arg1: i32) -> (i32, i32, i32) {
    %c0_i32 = arith.constant 0 : i32
    %c0_i32_0 = arith.constant 0 : i32
    %c0_i32_1 = arith.constant 0 : i32
    return %arg1, %c0_i32, %c0_i32_0 : i32, i32, i32
  }
  func.func @transform_13(%arg0: i32, %arg1: i32) -> (i32, i32, i32) {
    %c0_i32 = arith.constant 0 : i32
    %c0_i32_0 = arith.constant 0 : i32
    %c0_i32_1 = arith.constant 0 : i32
    return %arg1, %c0_i32, %c0_i32_0 : i32, i32, i32
  }
  func.func @transform_14(%arg0: i32, %arg1: i32) -> (i32, i32, i32) {
    %c0_i32 = arith.constant 0 : i32
    %c0_i32_0 = arith.constant 0 : i32
    %c0_i32_1 = arith.constant 0 : i32
    return %arg1, %c0_i32, %c0_i32_0 : i32, i32, i32
  }
  func.func @transform_15(%arg0: i32, %arg1: i32) -> (i32, i32, i32) {
    %c0_i32 = arith.constant 0 : i32
    %c0_i32_0 = arith.constant 0 : i32
    %c0_i32_1 = arith.constant 0 : i32
    return %arg1, %c0_i32, %c0_i32_0 : i32, i32, i32
  }
  func.func @transform_16(%arg0: i32, %arg1: i32) -> (i32, i32, i32) {
    %c0_i32 = arith.constant 0 : i32
    %c0_i32_0 = arith.constant 0 : i32
    %c0_i32_1 = arith.constant 0 : i32
    return %arg1, %c0_i32, %c0_i32_0 : i32, i32, i32
  }
  func.func @transform_17(%arg0: i32, %arg1: i32) -> (i32, i32, i32) {
    %c0_i32 = arith.constant 0 : i32
    %c0_i32_0 = arith.constant 0 : i32
    %c0_i32_1 = arith.constant 0 : i32
    return %arg1, %c0_i32, %c0_i32_0 : i32, i32, i32
  }
  func.func @transform_18(%arg0: i32, %arg1: i32) -> (i32, i32, i32) {
    %c0_i32 = arith.constant 0 : i32
    %c0_i32_0 = arith.constant 0 : i32
    %c0_i32_1 = arith.constant 0 : i32
    return %arg1, %c0_i32, %c0_i32_0 : i32, i32, i32
  }
  func.func @transform_19(%arg0: i32, %arg1: i32) -> (i32, i32, i32) {
    %c0_i32 = arith.constant 0 : i32
    %c0_i32_0 = arith.constant 0 : i32
    %c0_i32_1 = arith.constant 0 : i32
    return %arg1, %c0_i32, %c0_i32_0 : i32, i32, i32
  }
  func.func @transform_20(%arg0: i32, %arg1: i32) -> (i32, i32, i32) {
    %c0_i32 = arith.constant 0 : i32
    %c0_i32_0 = arith.constant 0 : i32
    %c0_i32_1 = arith.constant 0 : i32
    return %arg0, %c0_i32, %c0_i32_0 : i32, i32, i32
  }
}

</mosaic_0001>

<bundles_post_ra>
// kernel: gpt_agent_forward.1
= control target key start
LH: loop header
LB: loop body
LE: loop exit
PB: predicated region body
PF: predicated region fallthrough
CT: control target
= control target key end

     0   :  { %s6437_s0 = inlined_call_operand.vmem [shape: f32[2,4,19], index: 0, kind: input, shape index: {}]   ;;  %s6438_s1 = inlined_call_operand.vmem [shape: f32[12,128], index: 1, kind: input, shape index: {}]   ;;  %s6439_s2 = inlined_call_operand.vmem [shape: f32[12,12], index: 2, kind: input, shape index: {}]   ;;  %s6440_s3 = inlined_call_operand.vmem [shape: bf16[19,384], index: 3, kind: input, shape index: {}]   ;;  %s6441_s4 = inlined_call_operand.hbm [shape: f32[1,384], index: 4, kind: input, shape index: {}]   ;;  %s6442_s5 = inlined_call_operand.hbm [shape: f32[1,128], index: 5, kind: input, shape index: {}]   ;;  %s6443_s6 = inlined_call_operand.hbm [shape: f32[1,128], index: 6, kind: input, shape index: {}]   ;;  %s6444_s7 = inlined_call_operand.vmem [shape: bf16[3,128,8], index: 7, kind: input, shape index: {}]   ;;  %s6445_s8 = inlined_call_operand.hbm [shape: f32[2,1,128], index: 8, kind: input, shape index: {}]   ;;  %s6446_s9 = inlined_call_operand.hbm [shape: f32[2,1,128], index: 9, kind: input, shape index: {}]   ;;  %s6447_s10 = inlined_call_operand.hbm [shape: bf16[2,128,384], index: 10, kind: input, shape index: {}]   ;;  %s6448_s11 = inlined_call_operand.hbm [shape: f32[2,1,384], index: 11, kind: input, shape index: {}]   ;;  %s6449_s12 = inlined_call_operand.hbm [shape: bf16[2,128,128], index: 12, kind: input, shape index: {}]   ;;  %s6450_s13 = inlined_call_operand.hbm [shape: f32[2,1,128], index: 13, kind: input, shape index: {}]   ;;  %s6451_s14 = inlined_call_operand.hbm [shape: f32[2,1,128], index: 14, kind: input, shape index: {}]   ;;  %s6452_s15 = inlined_call_operand.hbm [shape: f32[2,1,128], index: 15, kind: input, shape index: {}]   ;;  %s6453_s16 = inlined_call_operand.vmem [shape: bf16[2,128,512], index: 16, kind: input, shape index: {}]   ;;  %s6454_s17 = inlined_call_operand.hbm [shape: f32[2,1,512], index: 17, kind: input, shape index: {}]   ;;  %s6455_s18 = inlined_call_operand.hbm [shape: bf16[2,512,128], index: 18, kind: input, shape index: {}]   ;;  %s6456_s19 = inlined_call_operand.hbm [shape: f32[2,1,128], index: 19, kind: input, shape index: {}]   ;;  %s6457_s20 = inlined_call_operand.vmem [shape: f32[2,4,24], index: 20, kind: output, shape index: {}]  }
   0x1   :  { %6494 = sst [smem:[#allocation45_spill]] %s6437_s0 }
   0x2   :  { %6495 = sst [smem:[#allocation46_spill]] %s6438_s1 }
   0x3   :  { %6496 = sst [smem:[#allocation47_spill]] %s6439_s2 }
   0x4   :  { %6497 = sst [smem:[#allocation48_spill]] %s6440_s3 }
   0x5   :  { %6498 = sst [smem:[#allocation49_spill]] %s6441_s4 }
   0x6   :  { %6499 = sst [smem:[#allocation50_spill]] %s6442_s5 }
   0x7   :  { %6500 = sst [smem:[#allocation51_spill]] %s6443_s6 }
   0x8   :  { %6501 = sst [smem:[#allocation52_spill]] %s6444_s7 }
   0x9   :  { %6502 = sst [smem:[#allocation53_spill]] %s6445_s8 }
   0xa   :  { %6503 = sst [smem:[#allocation54_spill]] %s6446_s9 }
   0xb   :  { %6504 = sst [smem:[#allocation55_spill]] %s6447_s10 }
   0xc   :  { %6505 = sst [smem:[#allocation56_spill]] %s6448_s11 }
   0xd   :  { %6506 = sst [smem:[#allocation57_spill]] %s6449_s12 }
   0xe   :  { %6507 = sst [smem:[#allocation58_spill]] %s6450_s13 }
   0xf   :  { %6508 = sst [smem:[#allocation59_spill]] %s6451_s14 }
  0x10   :  { %6509 = sst [smem:[#allocation60_spill]] %s6453_s16 }
  0x11   :  { %6510 = sst [smem:[#allocation61_spill]] %s6456_s19 }
  0x12   :  { %6511 = sst [smem:[#allocation62_spill]] %s6457_s20 }
  0x13   :  { %25 = vsyncpa [#allocation4], 0 }
  0x14   :  { %26 = vsyncpa [#allocation6], 0 }
  0x15   :  { %27 = vsyncpa [#allocation9], 0 }
  0x16   :  { %29 = vsyncpa [#allocation9 + $0x1], 0 }
  0x17   :  { %30 = vsyncpa [#allocation12], 0 }
  0x18   :  { %32 = vsyncpa [#allocation12 + $0x1], 0 }
  0x19   :  { %33 = vsyncpa [#allocation15], 0 }
  0x1a   :  { %35 = vsyncpa [#allocation15 + $0x1], 0 }
  0x1b   :  { %36 = vsyncpa [#allocation18], 0 }
  0x1c   :  { %38 = vsyncpa [#allocation18 + $0x1], 0 }
  0x1d   :  { %39 = vsyncpa [#allocation21], 0 }
  0x1e   :  { %41 = vsyncpa [#allocation21 + $0x1], 0 }
  0x1f   :  { %42 = vsyncpa [#allocation24], 0 }
  0x20   :  { %44 = vsyncpa [#allocation24 + $0x1], 0  ;;  %s5339_s1 = smov 0   ;;  %s5341_s22 = smov 0  }
  0x21   :  { %s5343_s23 = smov 0   ;;  %s5345_s24 = smov 0  }
  0x22   :  { %s5347_s2 = smov 0   ;;  %s5349_s25 = smov 0  }
  0x23   :  { %s5351_s3 = smov 0   ;;  %s5353_s26 = smov 0  }
  0x24 LB: > { %6512 = sst [smem:[#allocation33_spill]] %s5176_s22  ;;  %s6463_s27 = sadd.s32 4294967295, %s5200_s26   ;;  %s5200_s26 = sphi %s5353_s26, %s50_s26   ;;  %s5196_s3 = sphi %s5351_s3, %s6595_s3   ;;  %s5192_s25 = sphi %s5349_s25, %s6597_s25   ;;  %s5188_s2 = sphi %s5347_s2, %s6593_s2   ;;  %s5184_s24 = sphi %s5345_s24, %s6596_s24   ;;  %s5180_s23 = sphi %s5343_s23, %s6592_s23   ;;  %s5176_s22 = sphi %s5341_s22, %s6591_s22   ;;  %s5172_s1 = sphi %s5339_s1, %s6590_s1  }
  0x25   : > { %6513 = sst [smem:[#allocation34_spill]] %s5180_s23  ;;  %s59_s28 = sadd.s32 1, %s5192_s25 }
  0x26   : > { %6514 = sst [smem:[#allocation35_spill]] %s5184_s24  ;;  %p60_p0 = scmp.ge.s32.totalorder %s59_s28, 2 }
  0x27   : > { %6515 = sst [smem:[#allocation36_spill]] %s5188_s2  ;;  %s62_s4 = sadd.s32 1, %s5196_s3 }
  0x28   : > { %6516 = sst [smem:[#allocation37_spill]] %s5196_s3  ;;  %s242_s29 = sadd.s32 1, %s5180_s23 }
  0x29   : > { %6517 = sst [smem:[#allocation38_spill]] %s5200_s26  ;;  %p249_p1 = scmp.ne.s32.totalorder %s5180_s23, %s5176_s22 }
  0x2a   : > { %s6599_s28 = smov (%p60_p0, %s59_s28), 0  ;;  %s6601_s4 = smov (!%p60_p0, %s62_s4), %s5196_s3 }
  0x2b   : > { %6518 = sst [smem:[#allocation39_spill]] %s6599_s28  ;;  %s239_s30 = ssub.s32 %s5192_s25, %s6599_s28 }
  0x2c   : > { %p250_p2 = scmp.eq.s32.totalorder %s5200_s26, 0  ;;  %p64_p3 = scmp.ge.s32.totalorder %s6601_s4, 2 }
  0x2d   : > { %p240_p4 = scmp.eq.s32.totalorder %s239_s30, 0  ;;  %p255_p6 = scmp.ne.s32.totalorder %s5176_s22, %s5172_s1 }
  0x2e   : > { %p5389_p5 = por %p250_p2, %p249_p1  ;;  %s6603_s4 = smov (%p64_p3, %s6601_s4), 0 }
  0x2f   : > { %6520 = sst [smem:[#allocation40_spill]] %s6603_s4  ;;  %p5401_p7 = scmp.eq.s32.totalorder %s6463_s27, 0 }
  0x30   : > { %s5397_s21 = scalar_select %p240_p4, %s5180_s23, %s242_s29  }
  0x31   : > { %s6522_s3 = scalar_select %p5401_p7, 1, 0 }
  0x32   : > { %6521 = sst [smem:[#allocation41_spill]] %s5397_s21  ;;  %p3801_p8 = scmp.ge.s32.totalorder %s5200_s26, 1 }
  0x33   : > { %6523 = sst [smem:[#allocation42_spill]] %s6522_s3  ;;  %p578_p9 = scmp.lt.s32.totalorder %s5200_s26, 5 }
  0x34   : > { %p5409_p10 = por %p5401_p7, %p255_p6  ;;  %s5202_s29 = smov [#allocation5]  }
  0x35   : > { %p5413_p11 = pnand %p3801_p8, %p578_p9  ;;  %s611_s4 = sshll.u32 %s5202_s29, 4  ;;  %s612_s4 = int_to_ptr.vmem [resolvable:$true] %s611_s4 }
  0x36   : > { %s6524_s30 = scalar_select %p5409_p10, 1, 0 }
  0x37   : > { %s6526_s1 = scalar_select %p5413_p11, 1, 0 }
  0x38   : > { %6525 = sst [smem:[#allocation43_spill]] %s6524_s30  ;;  %p4341_p12 = pneg %p5413_p11 }
  0x39   : > { %6527 = sst [smem:[#allocation44_spill]] %s6526_s1  ;;  %p4388_p13 = scmp.lt.s32.totalorder %s5200_s26, 4 }
  0x3a   : > { %s5421_s27 = sand.u32 1, %s5180_s23   ;;  %s5424_s28 = sand.u32 1, %s5200_s26  }
  0x3b   : > { %p5428_p0 = pnand %p4341_p12, %p5401_p7  ;;  %p5434_p1 = pnand %p4388_p13, %p5389_p5 }
  0x3c   : > { %s6530_s5 = sld [smem:[#allocation50_spill]] }
  0x3d   : > { %s6528_s21 = scalar_select %p5428_p0, 1, 0 }
  0x3e   : > { %s6529_s7 = scalar_select %p5434_p1, 1, 0 }
  0x3f   : > { %p5446_p3 = pneg %p5428_p0 }
  0x41   : > { %s6531_s2 = scalar_select %p5446_p3, 1, 0 }
  0x42   : > { %s4692_s16 = scalar_lea.hbm %s6530_s5, 16 }
  0x43   : > { %p4693_p2 = scmp.ne.s32.totalorder %s6530_s5, %s4692_s16  ;;  %p4699_p6 = scmp.lt.u32.totalorder %s4692_s16, %s6530_s5 }
  0x45   : > { %p4695_p4 = pnand %p5446_p3, %p4693_p2 }
  0x47   : > { %p4696_p5 = pneg %p4695_p4 }
  0x49   : > { %p4701_p8 = pnand %p4699_p6, %p4696_p5 }
  0x4b   : > { %4704 = shalt.err (!%p4701_p8)
}
  0x4c   : > { %s4705_s20 = scalar_lea.vmem %s612_s4, 16  ;;  %s4712_s23 = scalar_lea.vmem %s612_s4, 32 }
  0x4d   : > { %p4706_p9 = scmp.ne.s32.totalorder %s612_s4, %s4705_s20  ;;  %p4713_p10 = scmp.lt.s32.totalorder %s612_s4, %s612_s4 }
  0x4e   : > { %p4714_p7 = scmp.lt.s32.totalorder %s4712_s23, %s4705_s20 }
  0x4f   : > { %p4708_p12 = pnand %p4706_p9, %p5446_p3 }
  0x50   : > { %p4715_p11 = por %p4714_p7, %p4713_p10 }
  0x51   : > { %p4709_p13 = pneg %p4708_p12 }
  0x53   : > { %p4716_p1 = pnand %p4715_p11, %p4709_p13 }
  0x55   : > { %4719 = shalt.err (!%p4716_p1)
}
  0x56   : > { %4347 = dma.hbm_to_vmem [thread:$0]  (!%p5428_p0), %s6530_s5, 16, %s612_s4, [#allocation6]  }
  0x57   : > { %s5463_s16 = sshll.u32 %s5192_s25, 4  ;;  %s646_s30 = scalar_lea.vmem [#allocation8], %s5421_s27 }
  0x58   : > { %s653_s0 = sshll.u32 %s646_s30, 4  ;;  %s6532_s8 = sld [smem:[#allocation53_spill]]  ;;  %s5472_s0 = int_to_ptr.vmem [resolvable:$true] %s653_s0 }
  0x59   : > { %p6533_p10 = scmp.ne.s32.totalorder %s6529_s7, 0 }
  0x5b   : > { %p5479_p11 = pneg %p6533_p10 }
  0x5e   : > { %s5470_s23 = scalar_lea.hbm %s6532_s8, %s5463_s16  ;;  %s4725_s20 = scalar_lea.hbm %s6532_s8, 32 }
  0x5f   : > { %s4720_s29 = scalar_lea.hbm %s5470_s23, 16  ;;  %p4726_p4 = scmp.lt.u32.totalorder %s5470_s23, %s6532_s8 }
  0x60   : > { %p4721_p7 = scmp.ne.s32.totalorder %s5470_s23, %s4720_s29  ;;  %p4727_p5 = scmp.lt.u32.totalorder %s4725_s20, %s4720_s29 }
  0x61   : > { %p4729_p8 = scmp.lt.u32.totalorder %s4720_s29, %s5470_s23 }
  0x62   : > { %p4723_p1 = pnand %p5479_p11, %p4721_p7  ;;  %p4728_p6 = por %p4727_p5, %p4726_p4 }
  0x64   : > { %p4724_p2 = pneg %p4723_p1  ;;  %p4730_p9 = por %p4729_p8, %p4728_p6 }
  0x66   : > { %p4731_p12 = pnand %p4730_p9, %p4724_p2 }
  0x68   : > { %4734 = shalt.err (!%p4731_p12)
}
  0x69   : > { %s4735_s24 = scalar_lea.vmem %s5472_s0, 16  ;;  %s5203_s22 = smov [#allocation8]  }
  0x6a   : > { %p4736_p13 = scmp.ne.s32.totalorder %s5472_s0, %s4735_s24  ;;  %s4740_s30 = sshll.u32 %s5203_s22, 4  ;;  %s4741_s30 = int_to_ptr.vmem [resolvable:$false] %s4740_s30 }
  0x6b   : > { %s4742_s5 = scalar_lea.vmem %s4741_s30, 32  ;;  %p4743_p0 = scmp.lt.s32.totalorder %s5472_s0, %s4741_s30 }
  0x6c   : > { %p4738_p7 = pnand %p4736_p13, %p5479_p11  ;;  %p4744_p3 = scmp.lt.s32.totalorder %s4742_s5, %s4735_s24 }
  0x6e   : > { %p4739_p1 = pneg %p4738_p7  ;;  %p4745_p4 = por %p4744_p3, %p4743_p0 }
  0x70   : > { %p4746_p5 = pnand %p4745_p4, %p4739_p1 }
  0x72   : > { %4749 = shalt.err (!%p4746_p5)
}
  0x73   : > { %s6535_s26 = scalar_lea.sflag [#allocation9], %s5424_s28  ;;  %s4301_s29 = smul.u32 192, %s5421_s27 }
  0x74   : > { %4354 = dma.hbm_to_vmem [thread:$0]  (!%p6533_p10), %s5470_s23, 16, %s5472_s0, %s6535_s26  }
  0x75   : > { %s4302_s20 = smul.u32 3072, %s5192_s25  ;;  %s6536_s10 = sld [smem:[#allocation55_spill]] }
  0x76   : > { %s681_s30 = scalar_lea.vmem [#allocation11], %s4301_s29  ;;  %s6491_s3 = scalar_lea.sflag [#allocation12], %s5424_s28 }
  0x77   : > { %s688_s5 = sshll.u32 %s681_s30, 4  ;;  %s5511_s5 = int_to_ptr.vmem [resolvable:$true] %s688_s5 }
  0x7b   : > { %s5509_s24 = scalar_lea.hbm %s6536_s10, %s4302_s20  ;;  %s4755_s8 = scalar_lea.hbm %s6536_s10, 6144 }
  0x7c   : > { %s4750_s1 = scalar_lea.hbm %s5509_s24, 3072  ;;  %p4756_p6 = scmp.lt.u32.totalorder %s5509_s24, %s6536_s10 }
  0x7d   : > { %p4751_p0 = scmp.ne.s32.totalorder %s5509_s24, %s4750_s1  ;;  %p4757_p8 = scmp.lt.u32.totalorder %s4755_s8, %s4750_s1 }
  0x7e   : > { %p4759_p12 = scmp.lt.u32.totalorder %s4750_s1, %s5509_s24 }
  0x7f   : > { %p4753_p3 = pnand %p4751_p0, %p5479_p11  ;;  %p4758_p9 = por %p4757_p8, %p4756_p6 }
  0x81   : > { %p4754_p2 = pneg %p4753_p3  ;;  %p4760_p13 = por %p4759_p12, %p4758_p9 }
  0x83   : > { %p4761_p7 = pnand %p4760_p13, %p4754_p2 }
  0x85   : > { %4764 = shalt.err (!%p4761_p7)
}
  0x86   : > { %s4765_s29 = scalar_lea.vmem %s5511_s5, 3072  ;;  %s5204_s22 = smov [#allocation11]  }
  0x87   : > { %p4766_p1 = scmp.ne.s32.totalorder %s5511_s5, %s4765_s29  ;;  %s4770_s30 = sshll.u32 %s5204_s22, 4  ;;  %s4771_s30 = int_to_ptr.vmem [resolvable:$false] %s4770_s30 }
  0x88   : > { %s4772_s0 = scalar_lea.vmem %s4771_s30, 6144  ;;  %p4773_p0 = scmp.lt.s32.totalorder %s5511_s5, %s4771_s30 }
  0x89   : > { %p4768_p4 = pnand %p4766_p1, %p5479_p11  ;;  %p4774_p3 = scmp.lt.s32.totalorder %s4772_s0, %s4765_s29 }
  0x8b   : > { %p4769_p5 = pneg %p4768_p4  ;;  %p4775_p6 = por %p4774_p3, %p4773_p0 }
  0x8d   : > { %p4776_p8 = pnand %p4775_p6, %p4769_p5 }
  0x8f   : > { %4779 = shalt.err (!%p4776_p8)
}
  0x90   : > { %s5205_s1 = smov 192   ;;  %s5206_s23 = smov 12  }
  0x91   : > { %4360 = dma.hbm_to_vmem [thread:$0]  (!%p6533_p10), %s5509_s24, 3072, %s5511_s5, %s6491_s3, %s5205_s1, %s5205_s1, %s5206_s23  }
  0x92   : > { %s3810_s8 = sshll.u32 %s5421_s27, 6  ;;  %s4018_s26 = sshll.u32 %s5192_s25, 10 }
  0x93   : > { %s6537_s12 = sld [smem:[#allocation57_spill]]  ;;  %s721_s30 = scalar_lea.vmem [#allocation14], %s3810_s8 }
  0x94   : > { %s728_s0 = sshll.u32 %s721_s30, 4  ;;  %s6490_s10 = scalar_lea.sflag [#allocation15], %s5424_s28  ;;  %s5544_s0 = int_to_ptr.vmem [resolvable:$true] %s728_s0 }
  0x99   : > { %s5542_s22 = scalar_lea.hbm %s6537_s12, %s4018_s26  ;;  %s4785_s1 = scalar_lea.hbm %s6537_s12, 2048 }
  0x9a   : > { %s4780_s19 = scalar_lea.hbm %s5542_s22, 1024  ;;  %p4786_p13 = scmp.lt.u32.totalorder %s5542_s22, %s6537_s12 }
  0x9b   : > { %p4781_p2 = scmp.ne.s32.totalorder %s5542_s22, %s4780_s19  ;;  %p4787_p7 = scmp.lt.u32.totalorder %s4785_s1, %s4780_s19 }
  0x9c   : > { %p4789_p4 = scmp.lt.u32.totalorder %s4780_s19, %s5542_s22 }
  0x9d   : > { %p4783_p9 = pnand %p4781_p2, %p5479_p11  ;;  %p4788_p1 = por %p4787_p7, %p4786_p13 }
  0x9f   : > { %p4784_p12 = pneg %p4783_p9  ;;  %p4790_p5 = por %p4789_p4, %p4788_p1 }
  0xa1   : > { %p4791_p0 = pnand %p4790_p5, %p4784_p12 }
  0xa3   : > { %4794 = shalt.err (!%p4791_p0)
}
  0xa4   : > { %s4795_s8 = scalar_lea.vmem %s5544_s0, 1024  ;;  %s5207_s20 = smov [#allocation14]  }
  0xa5   : > { %p4796_p3 = scmp.ne.s32.totalorder %s5544_s0, %s4795_s8  ;;  %s4800_s29 = sshll.u32 %s5207_s20, 4  ;;  %s4801_s29 = int_to_ptr.vmem [resolvable:$false] %s4800_s29 }
  0xa6   : > { %s4802_s30 = scalar_lea.vmem %s4801_s29, 2048  ;;  %p4803_p2 = scmp.lt.s32.totalorder %s5544_s0, %s4801_s29 }
  0xa7   : > { %p4798_p6 = pnand %p4796_p3, %p5479_p11  ;;  %p4804_p9 = scmp.lt.s32.totalorder %s4802_s30, %s4795_s8 }
  0xa9   : > { %p4799_p8 = pneg %p4798_p6  ;;  %p4805_p13 = por %p4804_p9, %p4803_p2 }
  0xab   : > { %p4806_p7 = pnand %p4805_p13, %p4799_p8 }
  0xad   : > { %4809 = shalt.err (!%p4806_p7)
}
  0xae   : > { %s6486_s19 = smov 64   ;;  %s6487_s24 = smov 4  }
  0xaf   : > { %4366 = dma.hbm_to_vmem [thread:$0]  (!%p6533_p10), %s5542_s22, 1024, %s5544_s0, %s6490_s10, %s6486_s19, %s6486_s19, %s6487_s24  }
  0xb0   : > { %s6538_s14 = sld [smem:[#allocation59_spill]]  ;;  %s758_s26 = scalar_lea.vmem [#allocation17], %s5421_s27 }
  0xb1   : > { %s765_s8 = sshll.u32 %s758_s26, 4  ;;  %s6489_s20 = scalar_lea.sflag [#allocation18], %s5424_s28  ;;  %s766_s8 = int_to_ptr.vmem [resolvable:$true] %s765_s8 }
  0xb6   : > { %s5577_s23 = scalar_lea.hbm %s6538_s14, %s5463_s16  ;;  %s4815_s0 = scalar_lea.hbm %s6538_s14, 32 }
  0xb7   : > { %s4810_s29 = scalar_lea.hbm %s5577_s23, 16  ;;  %p4816_p5 = scmp.lt.u32.totalorder %s5577_s23, %s6538_s14 }
  0xb8   : > { %p4811_p12 = scmp.ne.s32.totalorder %s5577_s23, %s4810_s29  ;;  %p4817_p0 = scmp.lt.u32.totalorder %s4815_s0, %s4810_s29 }
  0xb9   : > { %p4819_p6 = scmp.lt.u32.totalorder %s4810_s29, %s5577_s23 }
  0xba   : > { %p4813_p1 = pnand %p4811_p12, %p5479_p11  ;;  %p4818_p3 = por %p4817_p0, %p4816_p5 }
  0xbc   : > { %p4814_p4 = pneg %p4813_p1  ;;  %p4820_p8 = por %p4819_p6, %p4818_p3 }
  0xbe   : > { %p4821_p2 = pnand %p4820_p8, %p4814_p4 }
  0xc0   : > { %4824 = shalt.err (!%p4821_p2)
}
  0xc1   : > { %s4825_s26 = scalar_lea.vmem %s766_s8, 16  ;;  %s5210_s19 = smov [#allocation17]  }
  0xc2   : > { %p4826_p9 = scmp.ne.s32.totalorder %s766_s8, %s4825_s26  ;;  %s4830_s24 = sshll.u32 %s5210_s19, 4  ;;  %s4831_s24 = int_to_ptr.vmem [resolvable:$false] %s4830_s24 }
  0xc3   : > { %s4832_s30 = scalar_lea.vmem %s4831_s24, 32  ;;  %p4833_p12 = scmp.lt.s32.totalorder %s766_s8, %s4831_s24 }
  0xc4   : > { %p4828_p13 = pnand %p4826_p9, %p5479_p11  ;;  %p4834_p1 = scmp.lt.s32.totalorder %s4832_s30, %s4825_s26 }
  0xc6   : > { %p4829_p7 = pneg %p4828_p13  ;;  %p4835_p10 = por %p4834_p1, %p4833_p12 }
  0xc8   : > { %p4836_p0 = pnand %p4835_p10, %p4829_p7 }
  0xca   : > { %4839 = shalt.err (!%p4836_p0)
}
  0xcb   : > { %p6539_p5 = scmp.ne.s32.totalorder %s6529_s7, 0  ;;  %s3816_s29 = sshll.u32 %s5421_s27, 2 }
  0xcc   : > { %s4019_s22 = sshll.u32 %s5192_s25, 6  ;;  %s801_s5 = scalar_lea.vmem [#allocation20], %s3816_s29 }
  0xcd   : > { %4372 = dma.hbm_to_vmem [thread:$0]  (!%p6539_p5), %s5577_s23, 16, %s766_s8, %s6489_s20  }
  0xce   : > { %s5605_s24 = scalar_lea.hbm %s6454_s17, %s4019_s22  ;;  %s809_s1 = sshll.u32 %s801_s5, 4  ;;  %s810_s1 = int_to_ptr.vmem [resolvable:$true] %s809_s1 }
  0xcf   : > { %s6492_s26 = scalar_lea.sflag [#allocation21], %s5424_s28  ;;  %s4840_s30 = scalar_lea.hbm %s5605_s24, 64 }
  0xd0   : > { %p4841_p10 = scmp.ne.s32.totalorder %s5605_s24, %s4840_s30  ;;  %s4845_s20 = scalar_lea.hbm %s6454_s17, 128 }
  0xd1   : > { %p4846_p6 = scmp.lt.u32.totalorder %s5605_s24, %s6454_s17  ;;  %p4847_p8 = scmp.lt.u32.totalorder %s4845_s20, %s4840_s30 }
  0xd2   : > { %p4843_p4 = pnand %p4841_p10, %p5479_p11  ;;  %p4849_p9 = scmp.lt.u32.totalorder %s4840_s30, %s5605_s24 }
  0xd3   : > { %p4848_p2 = por %p4847_p8, %p4846_p6 }
  0xd4   : > { %p4844_p3 = pneg %p4843_p4 }
  0xd5   : > { %p4850_p13 = por %p4849_p9, %p4848_p2 }
  0xd7   : > { %p4851_p7 = pnand %p4850_p13, %p4844_p3 }
  0xd9   : > { %4854 = shalt.err (!%p4851_p7)
}
  0xda   : > { %s4855_s29 = scalar_lea.vmem %s810_s1, 64  ;;  %s5211_s0 = smov [#allocation20]  }
  0xdb   : > { %p4856_p12 = scmp.ne.s32.totalorder %s810_s1, %s4855_s29  ;;  %s4860_s5 = sshll.u32 %s5211_s0, 4  ;;  %s4861_s5 = int_to_ptr.vmem [resolvable:$false] %s4860_s5 }
  0xdc   : > { %s4862_s23 = scalar_lea.vmem %s4861_s5, 128  ;;  %p4863_p10 = scmp.lt.s32.totalorder %s810_s1, %s4861_s5 }
  0xdd   : > { %p4858_p1 = pnand %p4856_p12, %p5479_p11  ;;  %p4864_p4 = scmp.lt.s32.totalorder %s4862_s23, %s4855_s29 }
  0xdf   : > { %p4859_p0 = pneg %p4858_p1  ;;  %p4865_p5 = por %p4864_p4, %p4863_p10 }
  0xe1   : > { %p4866_p6 = pnand %p4865_p5, %p4859_p0 }
  0xe3   : > { %4869 = shalt.err (!%p4866_p6)
}
  0xe4   : > { %p6540_p8 = scmp.ne.s32.totalorder %s6529_s7, 0  ;;  %s5212_s20 = smov [#allocation3]  }
  0xe5   : > { %s600_s30 = sshll.u32 %s5212_s20, 4  ;;  %s5213_s8 = smov [#allocation7]   ;;  %s601_s30 = int_to_ptr.vmem [resolvable:$true] %s600_s30 }
  0xe6   : > { %4378 = dma.hbm_to_vmem [thread:$0]  (!%p6540_p8), %s5605_s24, 64, %s810_s1, %s6492_s26  }
  0xe7   : > { %s622_s19 = sshll.u32 %s5213_s8, 4  ;;  %s6541_s29 = sld [smem:[#allocation49_spill]]  ;;  %s5627_s19 = int_to_ptr.vmem [resolvable:$true] %s622_s19 }
  0xe8   : > { %p6542_p3 = scmp.ne.s32.totalorder %s6531_s2, 0 }
  0xed   : > { %s4870_s5 = scalar_lea.hbm %s6541_s29, 48 }
  0xee   : > { %p4871_p5 = scmp.ne.s32.totalorder %s6541_s29, %s4870_s5  ;;  %p4877_p13 = scmp.lt.u32.totalorder %s4870_s5, %s6541_s29 }
  0xf0   : > { %p4873_p2 = pnand %p4871_p5, %p6542_p3 }
  0xf2   : > { %p4874_p9 = pneg %p4873_p2 }
  0xf4   : > { %p4879_p7 = pnand %p4877_p13, %p4874_p9 }
  0xf6   : > { %4882 = shalt.err (!%p4879_p7)
}
  0xf7   : > { %s4883_s1 = scalar_lea.vmem %s601_s30, 48  ;;  %s4890_s20 = scalar_lea.vmem %s601_s30, 64 }
  0xf8   : > { %p4884_p12 = scmp.ne.s32.totalorder %s601_s30, %s4883_s1  ;;  %p4891_p10 = scmp.lt.s32.totalorder %s601_s30, %s601_s30 }
  0xf9   : > { %p4892_p4 = scmp.lt.s32.totalorder %s4890_s20, %s4883_s1 }
  0xfa   : > { %p4886_p1 = pnand %p4884_p12, %p6542_p3 }
  0xfb   : > { %p4893_p6 = por %p4892_p4, %p4891_p10 }
  0xfc   : > { %p4887_p0 = pneg %p4886_p1 }
  0xfe   : > { %p4894_p8 = pnand %p4893_p6, %p4887_p0 }
 0x100   : > { %4897 = shalt.err (!%p4894_p8)
}
 0x101   : > { %p6543_p5 = scmp.ne.s32.totalorder %s6528_s21, 0  ;;  %s6544_s6 = sld [smem:[#allocation51_spill]] }
 0x103   : > { %4344 = dma.hbm_to_vmem [thread:$0]  (!%p6543_p5), %s6541_s29, 48, %s601_s30, [#allocation4]  }
 0x107   : > { %s4898_s0 = scalar_lea.hbm %s6544_s6, 16 }
 0x108   : > { %p4899_p2 = scmp.ne.s32.totalorder %s6544_s6, %s4898_s0  ;;  %p4905_p8 = scmp.lt.u32.totalorder %s4898_s0, %s6544_s6 }
 0x10a   : > { %p4901_p9 = pnand %p4899_p2, %p6542_p3 }
 0x10c   : > { %p4902_p13 = pneg %p4901_p9 }
 0x10e   : > { %p4907_p7 = pnand %p4905_p8, %p4902_p13 }
 0x110   : > { %4910 = shalt.err (!%p4907_p7)
}
 0x111   : > { %s4911_s30 = scalar_lea.vmem %s5627_s19, 16  ;;  %s4918_s20 = scalar_lea.vmem %s5627_s19, 32 }
 0x112   : > { %p4912_p12 = scmp.ne.s32.totalorder %s5627_s19, %s4911_s30  ;;  %p4919_p10 = scmp.lt.s32.totalorder %s5627_s19, %s5627_s19 }
 0x113   : > { %p4920_p4 = scmp.lt.s32.totalorder %s4918_s20, %s4911_s30 }
 0x114   : > { %p4914_p1 = pnand %p4912_p12, %p6542_p3 }
 0x115   : > { %p4921_p6 = por %p4920_p4, %p4919_p10 }
 0x116   : > { %p4915_p0 = pneg %p4914_p1 }
 0x118   : > { %p4922_p2 = pnand %p4921_p6, %p4915_p0 }
 0x11a   : > { %4925 = shalt.err (!%p4922_p2)
}
 0x11b   : > { %4350 = dma.hbm_to_vmem [thread:$0]  (!%p6543_p5), %s6544_s6, 16, %s5627_s19, [#allocation6]  }
 0x11c   : > { %s6545_s9 = sld [smem:[#allocation54_spill]]  ;;  %s663_s21 = scalar_lea.vmem [#allocation10], %s5421_s27 }
 0x11d   : > { %s670_s0 = sshll.u32 %s663_s21, 4  ;;  %s4303_s5 = smul.u32 3, %s5421_s27  ;;  %s671_s0 = int_to_ptr.vmem [resolvable:$true] %s670_s0 }
 0x11e   : > { %s4304_s23 = smul.u32 48, %s5192_s25 }
 0x122   : > { %s5675_s22 = scalar_lea.hbm %s6545_s9, %s5463_s16  ;;  %s4931_s30 = scalar_lea.hbm %s6545_s9, 32 }
 0x123   : > { %s4926_s24 = scalar_lea.hbm %s5675_s22, 16  ;;  %p4932_p5 = scmp.lt.u32.totalorder %s5675_s22, %s6545_s9 }
 0x124   : > { %p4927_p3 = scmp.ne.s32.totalorder %s5675_s22, %s4926_s24  ;;  %p4933_p8 = scmp.lt.u32.totalorder %s4931_s30, %s4926_s24 }
 0x125   : > { %p4935_p12 = scmp.lt.u32.totalorder %s4926_s24, %s5675_s22 }
 0x126   : > { %p4929_p9 = pnand %p4927_p3, %p5479_p11  ;;  %p4934_p7 = por %p4933_p8, %p4932_p5 }
 0x128   : > { %p4930_p13 = pneg %p4929_p9  ;;  %p4936_p1 = por %p4935_p12, %p4934_p7 }
 0x12a   : > { %p4937_p0 = pnand %p4936_p1, %p4930_p13 }
 0x12c   : > { %4940 = shalt.err (!%p4937_p0)
}
 0x12d   : > { %s4941_s8 = scalar_lea.vmem %s671_s0, 16  ;;  %s5214_s2 = smov [#allocation10]  }
 0x12e   : > { %p4942_p10 = scmp.ne.s32.totalorder %s671_s0, %s4941_s8  ;;  %s4946_s3 = sshll.u32 %s5214_s2, 4  ;;  %s4947_s3 = int_to_ptr.vmem [resolvable:$false] %s4946_s3 }
 0x12f   : > { %s4948_s21 = scalar_lea.vmem %s4947_s3, 32  ;;  %p4949_p2 = scmp.lt.s32.totalorder %s671_s0, %s4947_s3 }
 0x130   : > { %p4944_p4 = pnand %p4942_p10, %p5479_p11  ;;  %p4950_p3 = scmp.lt.s32.totalorder %s4948_s21, %s4941_s8 }
 0x132   : > { %p4945_p6 = pneg %p4944_p4  ;;  %p4951_p9 = por %p4950_p3, %p4949_p2 }
 0x134   : > { %p4952_p5 = pnand %p4951_p9, %p4945_p6 }
 0x136   : > { %4955 = shalt.err (!%p4952_p5)
}
 0x137   : > { %p6546_p8 = scmp.ne.s32.totalorder %s6529_s7, 0  ;;  %s6547_s24 = scalar_lea.sflag [#allocation9], %s5424_s28 }
 0x138   : > { %s6548_s11 = sld [smem:[#allocation56_spill]]  ;;  %s702_s20 = scalar_lea.vmem [#allocation13], %s4303_s5 }
 0x139   : > { %4357 = dma.hbm_to_vmem [thread:$0]  (!%p6546_p8), %s5675_s22, 16, %s671_s0, %s6547_s24  }
 0x13a   : > { %s710_s10 = sshll.u32 %s702_s20, 4  ;;  %s6549_s13 = sld [smem:[#allocation58_spill]]  ;;  %s711_s10 = int_to_ptr.vmem [resolvable:$true] %s710_s10 }
 0x13e   : > { %s5702_s30 = scalar_lea.hbm %s6548_s11, %s4304_s23  ;;  %s4961_s23 = scalar_lea.hbm %s6548_s11, 96 }
 0x13f   : > { %s4956_s21 = scalar_lea.hbm %s5702_s30, 48  ;;  %p4962_p1 = scmp.lt.u32.totalorder %s5702_s30, %s6548_s11 }
 0x140   : > { %s5710_s3 = scalar_lea.hbm %s6549_s13, %s5463_s16  ;;  %p4957_p13 = scmp.ne.s32.totalorder %s5702_s30, %s4956_s21 }
 0x141   : > { %p4963_p0 = scmp.lt.u32.totalorder %s4961_s23, %s4956_s21  ;;  %p4965_p4 = scmp.lt.u32.totalorder %s4956_s21, %s5702_s30 }
 0x142   : > { %p4959_p7 = pnand %p4957_p13, %p5479_p11 }
 0x143   : > { %p4964_p10 = por %p4963_p0, %p4962_p1 }
 0x144   : > { %p4960_p12 = pneg %p4959_p7 }
 0x145   : > { %p4966_p6 = por %p4965_p4, %p4964_p10 }
 0x147   : > { %p4967_p2 = pnand %p4966_p6, %p4960_p12 }
 0x149   : > { %4970 = shalt.err (!%p4967_p2)
}
 0x14a   : > { %s4971_s5 = scalar_lea.vmem %s711_s10, 48  ;;  %s5215_s1 = smov [#allocation13]  }
 0x14b   : > { %p4972_p3 = scmp.ne.s32.totalorder %s711_s10, %s4971_s5  ;;  %s4976_s20 = sshll.u32 %s5215_s1, 4  ;;  %s4977_s20 = int_to_ptr.vmem [resolvable:$false] %s4976_s20 }
 0x14c   : > { %s4978_s8 = scalar_lea.vmem %s4977_s20, 96  ;;  %p4979_p13 = scmp.lt.s32.totalorder %s711_s10, %s4977_s20 }
 0x14d   : > { %p4974_p9 = pnand %p4972_p3, %p5479_p11  ;;  %p4980_p7 = scmp.lt.s32.totalorder %s4978_s8, %s4971_s5 }
 0x14f   : > { %p4975_p5 = pneg %p4974_p9  ;;  %p4981_p8 = por %p4980_p7, %p4979_p13 }
 0x151   : > { %p4982_p0 = pnand %p4981_p8, %p4975_p5 }
 0x153   : > { %4985 = shalt.err (!%p4982_p0)
}
 0x154   : > { %p6550_p1 = scmp.ne.s32.totalorder %s6529_s7, 0  ;;  %s6551_s2 = scalar_lea.sflag [#allocation12], %s5424_s28 }
 0x155   : > { %s741_s21 = scalar_lea.vmem [#allocation16], %s5421_s27  ;;  %s5736_s24 = scalar_lea.hbm %s6452_s15, %s5463_s16 }
 0x156   : > { %4363 = dma.hbm_to_vmem [thread:$0]  (!%p6550_p1), %s5702_s30, 48, %s711_s10, %s6551_s2  }
 0x157   : > { %s748_s22 = sshll.u32 %s741_s21, 4  ;;  %s4986_s19 = scalar_lea.hbm %s5710_s3, 16  ;;  %s749_s22 = int_to_ptr.vmem [resolvable:$true] %s748_s22 }
 0x158   : > { %p4987_p8 = scmp.ne.s32.totalorder %s5710_s3, %s4986_s19  ;;  %s4991_s20 = scalar_lea.hbm %s6549_s13, 32 }
 0x159   : > { %p4992_p4 = scmp.lt.u32.totalorder %s5710_s3, %s6549_s13  ;;  %p4993_p6 = scmp.lt.u32.totalorder %s4991_s20, %s4986_s19 }
 0x15a   : > { %p4989_p12 = pnand %p4987_p8, %p5479_p11  ;;  %p4995_p3 = scmp.lt.u32.totalorder %s4986_s19, %s5710_s3 }
 0x15b   : > { %p4994_p2 = por %p4993_p6, %p4992_p4 }
 0x15c   : > { %p4990_p10 = pneg %p4989_p12 }
 0x15d   : > { %p4996_p9 = por %p4995_p3, %p4994_p2 }
 0x15f   : > { %p4997_p5 = pnand %p4996_p9, %p4990_p10 }
 0x161   : > { %5000 = shalt.err (!%p4997_p5)
}
 0x162   : > { %s5001_s30 = scalar_lea.vmem %s749_s22, 16  ;;  %s5216_s10 = smov [#allocation16]  }
 0x163   : > { %p5002_p13 = scmp.ne.s32.totalorder %s749_s22, %s5001_s30  ;;  %s5006_s2 = sshll.u32 %s5216_s10, 4  ;;  %s5007_s2 = int_to_ptr.vmem [resolvable:$false] %s5006_s2 }
 0x164   : > { %s5008_s21 = scalar_lea.vmem %s5007_s2, 32  ;;  %p5009_p8 = scmp.lt.s32.totalorder %s749_s22, %s5007_s2 }
 0x165   : > { %p5004_p7 = pnand %p5002_p13, %p5479_p11  ;;  %p5010_p12 = scmp.lt.s32.totalorder %s5008_s21, %s5001_s30 }
 0x167   : > { %p5005_p0 = pneg %p5004_p7  ;;  %p5011_p1 = por %p5010_p12, %p5009_p8 }
 0x169   : > { %p5012_p4 = pnand %p5011_p1, %p5005_p0 }
 0x16b   : > { %5015 = shalt.err (!%p5012_p4)
}
 0x16c   : > { %p6552_p6 = scmp.ne.s32.totalorder %s6529_s7, 0  ;;  %s6553_s26 = scalar_lea.sflag [#allocation15], %s5424_s28 }
 0x16d   : > { %s775_s0 = scalar_lea.vmem [#allocation19], %s5421_s27  ;;  %s3819_s19 = sshll.u32 %s5421_s27, 8 }
 0x16e   : > { %4369 = dma.hbm_to_vmem [thread:$0]  (!%p6552_p6), %s5710_s3, 16, %s749_s22, %s6553_s26  }
 0x16f   : > { %s782_s23 = sshll.u32 %s775_s0, 4  ;;  %s5016_s5 = scalar_lea.hbm %s5736_s24, 16  ;;  %s783_s23 = int_to_ptr.vmem [resolvable:$true] %s782_s23 }
 0x170   : > { %p5017_p1 = scmp.ne.s32.totalorder %s5736_s24, %s5016_s5  ;;  %s5021_s8 = scalar_lea.hbm %s6452_s15, 32 }
 0x171   : > { %p5022_p3 = scmp.lt.u32.totalorder %s5736_s24, %s6452_s15  ;;  %p5023_p9 = scmp.lt.u32.totalorder %s5021_s8, %s5016_s5 }
 0x172   : > { %p5019_p10 = pnand %p5017_p1, %p5479_p11  ;;  %p5025_p13 = scmp.lt.u32.totalorder %s5016_s5, %s5736_s24 }
 0x173   : > { %p5024_p5 = por %p5023_p9, %p5022_p3 }
 0x174   : > { %p5020_p2 = pneg %p5019_p10 }
 0x175   : > { %p5026_p7 = por %p5025_p13, %p5024_p5 }
 0x177   : > { %p5027_p0 = pnand %p5026_p7, %p5020_p2 }
 0x179   : > { %5030 = shalt.err (!%p5027_p0)
}
 0x17a   : > { %s5031_s3 = scalar_lea.vmem %s783_s23, 16  ;;  %s5217_s22 = smov [#allocation19]  }
 0x17b   : > { %p5032_p8 = scmp.ne.s32.totalorder %s783_s23, %s5031_s3  ;;  %s5036_s2 = sshll.u32 %s5217_s22, 4  ;;  %s5037_s2 = int_to_ptr.vmem [resolvable:$false] %s5036_s2 }
 0x17c   : > { %s5038_s21 = scalar_lea.vmem %s5037_s2, 32  ;;  %p5039_p1 = scmp.lt.s32.totalorder %s783_s23, %s5037_s2 }
 0x17d   : > { %p5034_p12 = pnand %p5032_p8, %p5479_p11  ;;  %p5040_p10 = scmp.lt.s32.totalorder %s5038_s21, %s5031_s3 }
 0x17f   : > { %p5035_p4 = pneg %p5034_p12  ;;  %p5041_p6 = por %p5040_p10, %p5039_p1 }
 0x181   : > { %p5042_p3 = pnand %p5041_p6, %p5035_p4 }
 0x183   : > { %5045 = shalt.err (!%p5042_p3)
}
 0x184   : > { %p6554_p9 = scmp.ne.s32.totalorder %s6529_s7, 0  ;;  %s6555_s26 = scalar_lea.sflag [#allocation18], %s5424_s28 }
 0x185   : > { %s4020_s0 = sshll.u32 %s5192_s25, 12  ;;  %s820_s5 = scalar_lea.vmem [#allocation22], %s3819_s19 }
 0x186   : > { %4375 = dma.hbm_to_vmem [thread:$0]  (!%p6554_p9), %s5736_s24, 16, %s783_s23, %s6555_s26  }
 0x187   : > { %s827_s1 = sshll.u32 %s820_s5, 4  ;;  %s5784_s30 = scalar_lea.hbm %s6455_s18, %s4020_s0  ;;  %s5786_s1 = int_to_ptr.vmem [resolvable:$true] %s827_s1 }
 0x188   : > { %s5046_s10 = scalar_lea.hbm %s5784_s30, 4096  ;;  %s5051_s19 = scalar_lea.hbm %s6455_s18, 8192 }
 0x189   : > { %p5047_p6 = scmp.ne.s32.totalorder %s5784_s30, %s5046_s10  ;;  %p5052_p13 = scmp.lt.u32.totalorder %s5784_s30, %s6455_s18 }
 0x18a   : > { %p5053_p7 = scmp.lt.u32.totalorder %s5051_s19, %s5046_s10  ;;  %p5055_p8 = scmp.lt.u32.totalorder %s5046_s10, %s5784_s30 }
 0x18b   : > { %p5049_p2 = pnand %p5047_p6, %p5479_p11 }
 0x18c   : > { %p5054_p0 = por %p5053_p7, %p5052_p13 }
 0x18d   : > { %p5050_p5 = pneg %p5049_p2 }
 0x18e   : > { %p5056_p12 = por %p5055_p8, %p5054_p0 }
 0x190   : > { %p5057_p4 = pnand %p5056_p12, %p5050_p5 }
 0x192   : > { %5060 = shalt.err (!%p5057_p4)
}
 0x193   : > { %s5061_s2 = scalar_lea.vmem %s5786_s1, 4096  ;;  %s5218_s21 = smov [#allocation22]  }
 0x194   : > { %p5062_p1 = scmp.ne.s32.totalorder %s5786_s1, %s5061_s2  ;;  %s5066_s26 = sshll.u32 %s5218_s21, 4  ;;  %s5067_s26 = int_to_ptr.vmem [resolvable:$false] %s5066_s26 }
 0x195   : > { %s5068_s0 = scalar_lea.vmem %s5067_s26, 8192  ;;  %p5069_p6 = scmp.lt.s32.totalorder %s5786_s1, %s5067_s26 }
 0x196   : > { %p5064_p10 = pnand %p5062_p1, %p5479_p11  ;;  %p5070_p2 = scmp.lt.s32.totalorder %s5068_s0, %s5061_s2 }
 0x198   : > { %p5065_p3 = pneg %p5064_p10  ;;  %p5071_p13 = por %p5070_p2, %p5069_p6 }
 0x19a   : > { %p5072_p7 = pnand %p5071_p13, %p5065_p3 }
 0x19c   : > { %5075 = shalt.err (!%p5072_p7)
}
 0x19d   : > { %s6556_s5 = smov 4   ;;  %s6557_s20 = smov 64  }
 0x19e   : > { %s6558_s8 = scalar_lea.sflag [#allocation21], %s5424_s28  ;;  %s6559_s23 = sld [smem:[#allocation61_spill]] }
 0x19f   : > { %4381 = dma.hbm_to_vmem [thread:$0]  (!%p6554_p9), %s5784_s30, 4096, %s5786_s1, %s6558_s8, %s6557_s20, %s6557_s20, %s6556_s5  }
 0x1a0   : > { %s840_s22 = scalar_lea.vmem [#allocation23], %s5421_s27  ;;  %s838_s28 = scalar_lea.sflag [#allocation24], %s5421_s27 }
 0x1a1   : > { %s847_s2 = sshll.u32 %s840_s22, 4  ;;  %s848_s2 = int_to_ptr.vmem [resolvable:$true] %s847_s2 }
 0x1a4   : > { %s6560_s19 = smov %s6559_s23  ;;  %s5818_s3 = scalar_lea.hbm %s6559_s23, %s5463_s16 }
 0x1a5   : > { %s5076_s21 = scalar_lea.hbm %s5818_s3, 16  ;;  %s5081_s30 = scalar_lea.hbm %s6560_s19, 32 }
 0x1a6   : > { %p5077_p5 = scmp.ne.s32.totalorder %s5818_s3, %s5076_s21  ;;  %p5082_p12 = scmp.lt.u32.totalorder %s5818_s3, %s6560_s19 }
 0x1a7   : > { %p5083_p4 = scmp.lt.u32.totalorder %s5081_s30, %s5076_s21  ;;  %p5085_p10 = scmp.lt.u32.totalorder %s5076_s21, %s5818_s3 }
 0x1a8   : > { %p5079_p0 = pnand %p5077_p5, %p5479_p11 }
 0x1a9   : > { %p5084_p1 = por %p5083_p4, %p5082_p12 }
 0x1aa   : > { %p5080_p8 = pneg %p5079_p0 }
 0x1ab   : > { %p5086_p3 = por %p5085_p10, %p5084_p1 }
 0x1ad   : > { %p5087_p6 = pnand %p5086_p3, %p5080_p8 }
 0x1af   : > { %5090 = shalt.err (!%p5087_p6)
}
 0x1b0   : > { %s5091_s27 = scalar_lea.vmem %s848_s2, 16  ;;  %s5219_s5 = smov [#allocation23]  }
 0x1b1   : > { %p5092_p2 = scmp.ne.s32.totalorder %s848_s2, %s5091_s27  ;;  %s5096_s20 = sshll.u32 %s5219_s5, 4  ;;  %s5097_s20 = int_to_ptr.vmem [resolvable:$false] %s5096_s20 }
 0x1b2   : > { %s5098_s8 = scalar_lea.vmem %s5097_s20, 32  ;;  %p5099_p5 = scmp.lt.s32.totalorder %s848_s2, %s5097_s20 }
 0x1b3   : > { %p5094_p13 = pnand %p5092_p2, %p5479_p11  ;;  %p5100_p0 = scmp.lt.s32.totalorder %s5098_s8, %s5091_s27 }
 0x1b5   : > { %p5095_p7 = pneg %p5094_p13  ;;  %p5101_p9 = por %p5100_p0, %p5099_p5 }
 0x1b7   : > { %p5102_p4 = pnand %p5101_p9, %p5095_p7 }
 0x1b9   : > { %5105 = shalt.err (!%p5102_p4)
}
 0x1ba   : > { %p6561_p12 = scmp.ne.s32.totalorder %s6529_s7, 0  ;;  %s6562_s10 = sld [smem:[#allocation44_spill]] }
 0x1bc   : > { %4384 = dma.hbm_to_vmem [thread:$0]  (!%p6561_p12), %s5818_s3, 16, %s848_s2, %s838_s28  }
 0x1c0   : > { %p6563_p8 = scmp.ne.s32.totalorder %s6562_s10, 0 }
 0x1c1   : > { %s6564_s24 = sld [smem:[#allocation42_spill]] (!%p6563_p8) }
 0x1c2   : > { %856 = sbr.rel (%p6563_p8) target bundleno = 5136 (0x1410), region = 100 }
 0x1c7   : > { %p6565_p1 = scmp.ne.s32.totalorder (!%p6563_p8), %s6564_s24, 0 }
 0x1c9   : > { %5139 = dma.done.wait (%p6565_p1), [#allocation4], 48  }
 0x1ca   : > { %5141 = vsyncadd (%p6565_p1), [#allocation4], 4294967248 }
 0x1cb   : > { %5143 = dma.done.wait (%p6565_p1), [#allocation6], 32  }
 0x1cc   : > { %5145 = vsyncadd (%p6565_p1), [#allocation6], 4294967264  ;;  %s6566_s4 = sld [smem:[#allocation38_spill]]  ;;  %s6568_s7 = sld [smem:[#allocation33_spill]] }
 0x1cd   : > { %s6569_s22 = sld [smem:[#allocation43_spill]] }
 0x1d2   : > { %s6567_s23 = sadd.s32 4294967295, %s6566_s4   ;;  %s5854_s2 = sand.u32 1, %s6568_s7  }
 0x1d3   : > { %s5851_s3 = sand.u32 1, %s6567_s23   ;;  %p6570_p11 = scmp.ne.s32.totalorder %s6569_s22, 0 }
 0x1d4   : > { %s871_s28 = scalar_lea.sflag [#allocation9], %s5851_s3 }
 0x1d5   : > { %5147 = dma.done.wait (%p6570_p11), %s871_s28, 32  }
 0x1d6   : > { %5149 = vsyncadd (%p6570_p11), %s871_s28, 4294967264  ;;  %s4305_s26 = smul.u32 192, %s5854_s2  ;;  %s887_s30 = scalar_lea.sflag [#allocation12], %s5851_s3 }
 0x1d8   : > { %s5865_s0 = scalar_lea.vmem [#allocation11], %s4305_s26 }
 0x1d9   : > { %5151 = dma.done.wait (%p6570_p11), %s887_s30, 3120  }
 0x1da   : > { %5153 = vsyncadd (%p6570_p11), %s887_s30, 4294964176  ;;  %s4306_s16 = smul.u32 3, %s5854_s2  ;;  %s3827_s27 = sshll.u32 %s5854_s2, 6 }
 0x1db   : > { %s905_s20 = scalar_lea.sflag [#allocation15], %s5851_s3  ;;  %s5876_s8 = scalar_lea.vmem [#allocation14], %s3827_s27 }
 0x1dc   : > { %s5873_s5 = scalar_lea.vmem [#allocation13], %s4306_s16 }
 0x1dd   : > { %5155 = dma.done.wait (%p6570_p11), %s905_s20, 1040  }
 0x1de   : > { %5157 = vsyncadd (%p6570_p11), %s905_s20, 4294966256  ;;  %s922_s24 = scalar_lea.sflag [#allocation18], %s5851_s3 }
 0x1df   : > { %5159 = dma.done.wait (%p6570_p11), %s922_s24, 32  }
 0x1e0   : > { %5161 = vsyncadd (%p6570_p11), %s922_s24, 4294967264  ;;  %s3828_s23 = sshll.u32 %s5854_s2, 2  ;;  %s938_s28 = scalar_lea.sflag [#allocation21], %s5851_s3 }
 0x1e1   : > { %s5892_s26 = scalar_lea.vmem [#allocation20], %s3828_s23 }
 0x1e2   : > { %5163 = dma.done.wait (%p6570_p11), %s938_s28, 4160  }
 0x1e3   : > { %5165 = vsyncadd (%p6570_p11), %s938_s28, 4294963136  ;;  %s3829_s30 = sshll.u32 %s5854_s2, 8  ;;  %s956_s27 = scalar_lea.sflag [#allocation24], %s5854_s2 }
 0x1e4   : > { %s5899_s16 = scalar_lea.vmem [#allocation22], %s3829_s30 }
 0x1e5   : > { %5167 = dma.done.wait (%p6570_p11), %s956_s27, 16  }
 0x1e6   : > { %5169 = vsyncadd (%p6570_p11), %s956_s27, 4294967280  ;;  %s6571_s3 = sld [smem:[#allocation36_spill]]  ;;  %s6572_s24 = sld [smem:[#allocation35_spill]] }
 0x1e7   : > { %s6573_s30 = sld [smem:[#allocation45_spill]]  ;;  %s6574_s6 = sld [smem:[#allocation60_spill]] }
 0x1e8   : > { %s6575_s11 = sld [smem:[#allocation62_spill]] }
 0x1ec   : > { %p1067_p9 = scmp.lt.s32.totalorder %s6571_s3, 1  ;;  %p1071_p10 = scmp.lt.s32.totalorder %s6572_s24, 1 }
 0x1ed   : > { %p3834_p3 = scmp.ne.s32.totalorder %s6572_s24, 0 }
 0x1ee   : > { %s6605_s3 = smov (!%p1067_p9, %s6571_s3), 1  ;;  %s6576_s14 = sld [smem:[#allocation48_spill]] (!%p3834_p3)  ;;  %vm1138_vm0 = vcmask (!%p3834_p3), 1040384   ;;  %v5220_v1 = vmov (!%p3834_p3), 0.0   ;;  %vm1139_vm1 = vcmask (!%p3834_p3), 1041408   ;;  %v5221_v6 = vmov (!%p3834_p3), 65535  }
 0x1ef   : > { %s1072_s23 = scalar_select %p1071_p10, %s6572_s24, 1 }
 0x1f0   : > { %s3830_s28 = sshll.u32 %s6605_s3, 2  ;;  %1084 = sbr.rel (%p3834_p3) target bundleno = 728 (0x2d8), region = 160  ;;  %4133 = vmatprep.subr.bf16.mxu1 (!%p3834_p3), %v5220_v1  ;;  %v1140_v7 = vsel (!%p3834_p3), %vm1138_vm0, 4294967295, %v5221_v6  ;;  %vm5222_vm2 = vmmov (!%p3834_p3), 0   ;;  %v5223_v15 = vmov (!%p3834_p3), 0   ;;  %vm1134_vm3 = vcmask (!%p3834_p3), 154624  }
 0x1f1   : > { %s1070_s10 = scalar_lea.vmem %s6573_s30, %s3830_s28  ;;  %s4021_s1 = sshll.u32 %s1072_s23, 8  ;;  %v1141_v10 = vsel (!%p3834_p3), %vm1139_vm1, %v1140_v7, 0  ;;  %4137 = vmatprep.mubr.msk.bf16.mxu1 (!%p3834_p3), %vm5222_vm2, %v5220_v1  ;;  %1183 = vmatprep.mubr.bf16.mxu0 (!%p3834_p3), %v5223_v15  ;;  %v1095_v17 = vlaneseq (!%p3834_p3)  ;;  %v1092_v20 = vld [vmem:[#allocation3] sm:$0x7] (!%p3834_p3) }
 0x1f2   : > { %s5917_s9 = scalar_lea.vmem %s6574_s6, %s4021_s1  ;;  %s5922_s12 = scalar_lea.vmem %s6575_s11, %s3830_s28  ;;  %v1085_v11 = vld [vmem:[%s1070_s10] sm:$0xf] (!%p3834_p3) }
 0x1f3   : > { %v1093_v16 = vpack.c.bf16 (!%p3834_p3), %v1085_v11, %v1085_v11  ;;  %v1096_v18 = vshrl.u32 (!%p3834_p3), %v1095_v17, 7  ;;  %s6577_s23 = sld [smem:[#allocation46_spill]] (!%p3834_p3) }
 0x1f4   : > { %v4477_v0 = vld [vmem:[%s6576_s14 + $0x4] ss:$12 sps:$4 sm:$0xff] (!%p3834_p3)   ;;  %v4479_v2 = vld [vmem:[%s6576_s14 + $0x8] ss:$12 sps:$4 sm:$0xff] (!%p3834_p3)   ;;  %v4480_v3 = vld [vmem:[%s6576_s14] ss:$12 sps:$4 sm:$0xff] (!%p3834_p3)  }
 0x1f5   : > { %1151 = vmatprep.subr.bf16.mxu0 (!%p3834_p3), %v4477_v0  ;;  %v1090_v4 = vld [vmem:[%s6576_s14 + $0x18] sm:$0x33] (!%p3834_p3)  ;;  %4134 = vmatpush3.bf16.msra.mxu1 (!%p3834_p3), %v4479_v2  ;;  %v4482_v8 = vld [vmem:[%s6576_s14 + $0x20] ss:$0 sps:$4 sm:$0x33] (!%p3834_p3)   ;;  %v1105_v19 = vsub.s32 (!%p3834_p3), 2, %v1096_v18 }
 0x1f6   : > { %v3839_v5 = vcombine.high (!%p3834_p3), %v1090_v4, %v1090_v4  ;;  %v3838_v9 = vcombine.low (!%p3834_p3), %v1090_v4, %v1090_v4  ;;  %1152 = vmatpush1.bf16.msra.mxu0 (!%p3834_p3), %v4480_v3  ;;  %4135 = vmatprep.subr.bf16.mxu1 (!%p3834_p3), %v5220_v1  ;;  %v1149_v13 = vand.u32 (!%p3834_p3), %v4482_v8, %v1141_v10  ;;  %v1097_v21 = vsub.s32 (!%p3834_p3), 0, %v1096_v18 }
 0x1f7   : > { %v1101_v22 = vsub.s32 1, %v1096_v18  ;;  %v1106_v23 = vrot.slane %v1092_v20, %v1105_v19 }
 0x1f8   : > { %v1146_v12 = vand.u32 %v3839_v5, %v1141_v10  ;;  %v1143_v14 = vand.u32 %v3838_v9, %v1141_v10  ;;  %v1098_v24 = vrot.slane %v1092_v20, %v1097_v21 }
 0x1f9   : > { %4136 = vmatpush3.bf16.msra.mxu1 %v1149_v13  ;;  %v1102_v25 = vrot.slane %v1092_v20, %v1101_v22  ;;  %s6578_s28 = smov %s6577_s23  ;;  %v1238_v27 = vld [vmem:[%s6577_s23 + $0x8] sm:$0xf] }
 0x1fa   : > { %1153 = vmatprep.subr.bf16.mxu0 %v1146_v12  ;;  %v1232_v30 = vld [vmem:[%s6578_s28] sm:$0xf]  ;;  %v1235_v34 = vld [vmem:[%s6578_s28 + $0x4] sm:$0xf] }
 0x1fb   : > { %1154 = vmatpush1.bf16.msra.mxu0 %v1143_v14 }
 0x1fc   : > { %4138 = vmatmul.mubr.msk.bf16.vlgmr.msra.gmra.mrb[0].mxu1 %vm1134_vm3, %v1093_v16 }
 0x1fe   : > { %3841 = vmatmul.mubr.msk.bf16.vlgmr.msra.gmra.mrb[0].mxu0 %vm1134_vm3, %v1093_v16 }
 0x2cf   : > { %v1226_v26 = vpop.f32.mrb[0].mxu1 }
 0x2d0   : > { %v1227_v28 = vadd.f32 %v1226_v26, %v1106_v23  ;;  %v4139_v31 = vpop.f32.mrb[1].mxu1 }
 0x2d1   : > { %v1185_v29 = vpop.f32.mrb[0].mxu0  ;;  %v1229_v35 = vpop.f32.mrb[2].mxu1 }
 0x2d2   : > { %v1186_v32 = vadd.f32 %v1185_v29, %v1098_v24  ;;  %v1187_v33 = vpop.f32.mrb[1].mxu0  ;;  %v1239_v36 = vadd.f32 %v1238_v27, %v1227_v28  ;;  %v4140_v39 = vpop.f32.mrb[3].mxu1 }
 0x2d3   : > { %v1188_v37 = vadd.f32 %v1187_v33, %v1102_v25  ;;  %v1189_v38 = vpop.f32.mrb[2].mxu0 }
 0x2d4   : > { %v1233_v40 = vadd.f32 %v1232_v30, %v1186_v32  ;;  %v1190_v41 = vpop.f32.mrb[3].mxu0  ;;  %1240 = vst [vmem:[#allocation2 + $0x8] sm:$0xf] %v1239_v36 }
 0x2d5   : > { %v1236_v42 = vadd.f32 %v1235_v34, %v1188_v37 }
 0x2d6   : > { %1234 = vst [vmem:[#allocation2] sm:$0xf] %v1233_v40 }
 0x2d7   : > { %1237 = vst [vmem:[#allocation2 + $0x4] sm:$0xf] %v1236_v42 }
 0x2d8 PF: > { %vm1247_vm4 = vcmask 1043456   ;;  %v4484_v46 = vld [vmem:[%s5865_s0 + $0x4] ss:$12 sps:$4 sm:$0xff]   ;;  %v4486_v47 = vld [vmem:[%s5865_s0] ss:$12 sps:$4 sm:$0xff]   ;;  %v5224_v48 = vmov 0.0   ;;  %v1322_v34 = vlaneseq }
 0x2d9   : > { %4141 = vmatprep.subr.bf16.mxu1 %v5224_v48  ;;  %v4487_v49 = vld [vmem:[%s5865_s0 + $0x8] ss:$12 sps:$4 sm:$0xff]   ;;  %1465 = vmatprep.subr.bf16.mxu0 %v4484_v46  ;;  %v4490_v60 = vld [vmem:[%s5865_s0 + $0x18] ss:$12 sps:$4 sm:$0xff]   ;;  %v4491_v61 = vld [vmem:[%s5865_s0 + $0x20] ss:$12 sps:$4 sm:$0xff]  }
 0x2da   : > { %v4488_v50 = vld [vmem:[%s5865_s0 + $0x1c] ss:$12 sps:$4 sm:$0xff]   ;;  %1466 = vmatpush1.bf16.msra.mxu0 %v4486_v47  ;;  %4142 = vmatpush3.bf16.msra.mxu1 %v4487_v49  ;;  %v4492_v62 = vld [vmem:[%s5865_s0 + $0x34] ss:$12 sps:$4 sm:$0xff]   ;;  %v4495_v0 = vld [vmem:[%s5865_s0 + $0x38] ss:$12 sps:$4 sm:$0xff]  }
 0x2db   : > { %v1242_v43 = vld [vmem:[#allocation2 + $0x8] sm:$0xf]  ;;  %1467 = vmatprep.subr.bf16.mxu0 %v4488_v50  ;;  %4143 = vmatprep.subr.bf16.mxu1 %v5224_v48  ;;  %v4494_v63 = vld [vmem:[%s5865_s0 + $0x30] ss:$12 sps:$4 sm:$0xff]   ;;  %v4498_v2 = vld [vmem:[%s5865_s0 + $0x48] ss:$12 sps:$4 sm:$0xff]  }
 0x2dc   : > { %v1248_v44 = vsel %vm1247_vm4, %v1242_v43, 0.0  ;;  %v4496_v1 = vld [vmem:[%s5865_s0 + $0x4c] ss:$12 sps:$4 sm:$0xff]   ;;  %v4499_v3 = vld [vmem:[%s5865_s0 + $0x50] ss:$12 sps:$4 sm:$0xff]   ;;  %v5225_v11 = vmov 0  }
 0x2dd   : > { %1249 = vadd.xlane.f32.xlu0 %v1248_v44  ;;  %v4500_v4 = vld [vmem:[%s5865_s0 + $0x64] ss:$12 sps:$4 sm:$0xff]   ;;  %v4502_v5 = vld [vmem:[%s5865_s0 + $0x60] ss:$12 sps:$4 sm:$0xff]   ;;  %v4503_v6 = vld [vmem:[%s5865_s0 + $0x68] ss:$12 sps:$4 sm:$0xff]   ;;  %1497 = vmatprep.mubr.bf16.mxu0 %v5225_v11 }
 0x2de   : > { %v1241_v45 = vld [vmem:[#allocation2] sm:$0xff]  ;;  %1468 = vmatpush1.bf16.msra.mxu0 %v4490_v60  ;;  %4144 = vmatpush3.bf16.msra.mxu1 %v4491_v61  ;;  %v4507_v9 = vld [vmem:[%s5865_s0 + $0x80] ss:$12 sps:$4 sm:$0xff]   ;;  %vm5226_vm5 = vmmov 0   ;;  %v4510_v12 = vld [vmem:[%s5865_s0 + $0x90] ss:$12 sps:$4 sm:$0xff]  }
 0x2df   : > { %4145 = vmatprep.subr.bf16.mxu1 %v5224_v48  ;;  %1469 = vmatprep.subr.bf16.mxu0 %v4492_v62  ;;  %v4504_v7 = vld [vmem:[%s5865_s0 + $0x7c] ss:$12 sps:$4 sm:$0xff]   ;;  %v4506_v8 = vld [vmem:[%s5865_s0 + $0x78] ss:$12 sps:$4 sm:$0xff]   ;;  %v4508_v10 = vld [vmem:[%s5865_s0 + $0x94] ss:$12 sps:$4 sm:$0xff]  }
 0x2e0   : > { %4157 = vmatprep.mubr.msk.bf16.mxu1 %vm5226_vm5, %v5224_v48  ;;  %v4511_v13 = vld [vmem:[%s5865_s0 + $0x98] ss:$12 sps:$4 sm:$0xff]   ;;  %v4514_v15 = vld [vmem:[%s5865_s0 + $0xa8] ss:$12 sps:$4 sm:$0xff]   ;;  %v4515_v16 = vld [vmem:[%s5865_s0 + $0xb0] ss:$12 sps:$4 sm:$0xff]  }
 0x2e1   : > { %1245 = vadd.xlane.f32.xlu0 %v1241_v45  ;;  %v4512_v14 = vld [vmem:[%s5865_s0 + $0xac] ss:$12 sps:$4 sm:$0xff]   ;;  %s6579_s0 = scalar_lea.vmem [#allocation8], %s5854_s2  ;;  %s6580_s4 = scalar_lea.vmem [#allocation10], %s5854_s2  ;;  %v6006_v35 = vshrl.u32 %v1322_v34, 7  ;;  %vm1646_vm6 = vcmask 1045504  }
 0x2e2   : > { %1470 = vmatpush1.bf16.msra.mxu0 %v4494_v63  ;;  %4146 = vmatpush3.bf16.msra.mxu1 %v4495_v0  ;;  %v3843_v25 = vld [vmem:[%s6579_s0] ss:$0 sm:$0xff]  ;;  %vm1570_vm7 = vcmask 261120   ;;  %s6581_s21 = sld [smem:[#allocation47_spill]]  ;;  %vm1618_vm8 = vcmask 97280   ;;  %vm1622_vm9 = vcmask 93184  }
 0x2e3   : > { %4147 = vmatprep.subr.bf16.mxu1 %v5224_v48  ;;  %1471 = vmatprep.subr.bf16.mxu0 %v4496_v1  ;;  %v3844_v29 = vld [vmem:[%s6580_s4] ss:$0 sm:$0xff]  ;;  %v1324_v36 = vsub.s32 0, %v6006_v35  ;;  %v1332_v37 = vsub.s32 2, %v6006_v35  ;;  %v1328_v39 = vsub.s32 1, %v6006_v35  ;;  %s5228_s13 = smov 64  }
 0x2e4   : > { %v1319_v38 = vld [vmem:[%s5873_s5] sm:$0x7]  ;;  %s5227_s5 = smov 96   ;;  %s5229_s20 = smov 32  }
 0x2e5   : > { %v1325_v40 = vrot.slane %v1319_v38, %v1324_v36  ;;  %v1333_v41 = vrot.slane %v1319_v38, %v1332_v37  ;;  %v1329_v44 = vrot.slane %v1319_v38, %v1328_v39  ;;  %s6584_s10 = scalar_lea.vmem [#allocation19], %s5854_s2 }
 0x2e6   : > { %1472 = vmatpush1.bf16.msra.mxu0 %v4498_v2  ;;  %4148 = vmatpush3.bf16.msra.mxu1 %v4499_v3 }
 0x2e7   : > { %4149 = vmatprep.subr.bf16.mxu1 %v5224_v48  ;;  %1473 = vmatprep.subr.bf16.mxu0 %v4500_v4 }
 0x2e8   : > { %v6046_v2 = vld [vmem:[%s6581_s21] sm:$0xff]  ;;  %v6051_v4 = vld [vmem:[%s6581_s21 + $0x8] sm:$0xf] }
 0x2ea   : > { %1474 = vmatpush1.bf16.msra.mxu0 %v4502_v5  ;;  %4150 = vmatpush3.bf16.msra.mxu1 %v4503_v6 }
 0x2eb   : > { %1475 = vmatprep.subr.bf16.mxu0 %v4504_v7  ;;  %4151 = vmatprep.subr.bf16.mxu1 %v5224_v48 }
 0x2ee   : > { %1476 = vmatpush1.bf16.msra.mxu0 %v4506_v8  ;;  %4152 = vmatpush3.bf16.msra.mxu1 %v4507_v9 }
 0x2ef   : > { %1477 = vmatprep.subr.bf16.mxu0 %v4508_v10  ;;  %4153 = vmatprep.subr.bf16.mxu1 %v5224_v48 }
 0x2f2   : > { %1478 = vmatpush1.bf16.msra.mxu0 %v4510_v12  ;;  %4154 = vmatpush3.bf16.msra.mxu1 %v4511_v13 }
 0x2f3   : > { %1479 = vmatprep.subr.bf16.mxu0 %v4512_v14  ;;  %4155 = vmatprep.subr.bf16.mxu1 %v5224_v48 }
 0x2f6   : > { %1480 = vmatpush1.bf16.msra.mxu0 %v4514_v15  ;;  %4156 = vmatpush3.bf16.msra.mxu1 %v4515_v16 }
 0x2f7   : > { %4167 = vmatprep.subr.bf16.mxu1 %v5224_v48  ;;  %4161 = vmatprep.subr.bf16.mxu0 %v5224_v48 }
 0x36a   : > { %v1250_v51 = vpop.xlane.xlu0 %1249 }
 0x36b   : > { %v1253_v52 = vmul.f32 0.0078125, %v1250_v51 }
 0x36d   : > { %v5956_v55 = vsub.f32 %v1242_v43, %v1253_v52 }
 0x36e   : > { %v1246_v53 = vpop.xlane.xlu0 %1245 }
 0x36f   : > { %v1252_v54 = vmul.f32 0.0078125, %v1246_v53  ;;  %v1257_v58 = vmul.f32 %v5956_v55, %v5956_v55 }
 0x371   : > { %v5958_v56 = vsub.f32 %v1241_v45, %v1252_v54  ;;  %v1260_v59 = vsel %vm1247_vm4, %v1257_v58, 0.0 }
 0x373   : > { %v1256_v57 = vmul.f32 %v5958_v56, %v5958_v56 }
 0x375   : > { %1258 = vadd.xlane.f32.xlu1 %v1256_v57 }
 0x379   : > { %1261 = vadd.xlane.f32.xlu1 %v1260_v59 }
 0x402   : > { %v1259_v17 = vpop.xlane.xlu1 %1258 }
 0x403   : > { %v1263_v18 = vmul.f32 0.0078125, %v1259_v17 }
 0x405   : > { %v1265_v19 = vadd.f32 1e-05, %v1263_v18 }
 0x406   : > { %v1262_v20 = vpop.xlane.xlu1 %1261 }
 0x407   : > { %4604 = vrsqrt.f32 %v1265_v19  ;;  %v1264_v21 = vmul.f32 0.0078125, %v1262_v20 }
 0x409   : > { %v1266_v22 = vadd.f32 1e-05, %v1264_v21 }
 0x40b   : > { %4606 = vrsqrt.f32 %v1266_v22 }
 0x411   : > { %v4605_v23 = vpop.eup %4604 }
 0x412   : > { %v1269_v24 = vmul.f32 %v4605_v23, %v5958_v56 }
 0x414   : > { %v1277_v28 = vmul.f32 %v3843_v25, %v1269_v24 }
 0x415   : > { %v4607_v26 = vpop.eup %4606 }
 0x416   : > { %v1270_v27 = vmul.f32 %v4607_v26, %v5956_v55  ;;  %v1285_v31 = vadd.f32 %v3844_v29, %v1277_v28 }
 0x418   : > { %v1278_v30 = vmul.f32 %v3843_v25, %v1270_v27 }
 0x41a   : > { %v1286_v32 = vadd.f32 %v3844_v29, %v1278_v30 }
 0x41c   : > { %v1320_v33 = vpack.c.bf16 %v1286_v32, %v1285_v31 }
 0x41e   : > { %1498 = vmatmul.mubr.bf16.vlgmr.msra.gmra.mrb[0].mxu0 %v1320_v33  ;;  %4158 = vmatmul.mubr.bf16.vlgmr.msra.gmra.mrb[0].mxu1 %v1320_v33 }
 0x41f   : > { %4163 = vmatprep.mubr.msk.bf16.mxu0 %vm5226_vm5, %v5224_v48  ;;  %4169 = vmatprep.mubr.msk.bf16.mxu1 %vm5226_vm5, %v5224_v48 }
 0x4f1   : > { %v1499_v42 = vpop.f32.mrb[0].mxu0  ;;  %v1542_v43 = vpop.f32.mrb[0].mxu1 }
 0x4f2   : > { %v1501_v45 = vpop.f32.mrb[1].mxu0  ;;  %v4159_v46 = vpop.f32.mrb[1].mxu1  ;;  %v1500_v50 = vadd.f32 %v1499_v42, %v1325_v40  ;;  %v1543_v51 = vadd.f32 %v1542_v43, %v1333_v41 }
 0x4f3   : > { %v1503_v47 = vpop.f32.mrb[2].mxu0  ;;  %v1545_v49 = vpop.f32.mrb[2].mxu1  ;;  %v1502_v56 = vadd.f32 %v1501_v45, %v1329_v44 }
 0x4f4   : > { %v1504_v52 = vadd.f32 %v1503_v47, %v1325_v40  ;;  %v1546_v53 = vadd.f32 %v1545_v49, %v1333_v41  ;;  %v1505_v54 = vpop.f32.mrb[3].mxu0  ;;  %v4160_v55 = vpop.f32.mrb[3].mxu1 }
 0x4f5   : > { %v1506_v57 = vadd.f32 %v1505_v54, %v1329_v44  ;;  %v4519_v54 = vld [vmem:[%s5876_s8 + $0x18] sm:$0xff]  }
 0x4f6   : > { %v6018_v58 = vpack.c.bf16 %v1504_v52, %v1500_v50  ;;  %v6020_v59 = vpack.c.bf16 %v1546_v53, %v1543_v51  ;;  %v4518_v53 = vld [vmem:[%s5876_s8 + $0x10] sm:$0xff]  }
 0x4f7   : > { %v6022_v60 = vpack.c.bf16 %v1506_v57, %v1502_v56 }
 0x4f8   : > { %1693 = vrot.lane.b32.xlu1 %v6018_v58, %s5227_s5  ;;  %v1648_v61 = vsel %vm1646_vm6, %v6020_v59, 0 }
 0x4f9   : > { %4168 = vmatpush3.bf16.msra.mxu1 %v1648_v61  ;;  %1696 = vrot.lane.b32.xlu0 %v6022_v60, %s5227_s5  ;;  %v1575_v62 = vsel %vm1570_vm7, %v6022_v60, 0 }
 0x4fa   : > { %4162 = vmatpush3.bf16.xpose.msra.mxu0 %v1575_v62  ;;  %4179 = vmatprep.subr.bf16.mxu1 %v5224_v48 }
 0x4fb   : > { %4173 = vmatprep.subr.bf16.mxu0 %v5224_v48 }
 0x501   : > { %4164 = vmatmul.mubr.msk.bf16.vlgmr.msra.gmra.mrb[4].mxu0 %vm1570_vm7, %v6018_v58 }
 0x502   : > { %4175 = vmatprep.mubr.msk.bf16.mxu0 %vm5226_vm5, %v5224_v48 }
 0x56a   : > { %v1694_v1 = vpop.permute.xlu1 %1693 }
 0x56b   : > { %v1697_v63 = vpop.permute.xlu0 %1696 }
 0x56c   : > { %v1702_v0 = vsel %vm1570_vm7, %v1697_v63, 0 }
 0x56d   : > { %4174 = vmatpush3.bf16.xpose.msra.mxu0 %v1702_v0 }
 0x56e   : > { %4185 = vmatprep.subr.bf16.mxu0 %v5224_v48 }
 0x574   : > { %4176 = vmatmul.mubr.msk.bf16.vlgmr.msra.gmra.mrb[8].mxu0 %vm1570_vm7, %v1694_v1 }
 0x575   : > { %4189 = vmatprep.mubr.msk.bf16.mxu0 %vm5226_vm5, %v5224_v48  ;;  %4186 = vmatpush3.bf16.msra.mxu0 %v4518_v53 }
 0x576   : > { %4187 = vmatprep.subr.bf16.mxu0 %v5224_v48 }
 0x579   : > { %4188 = vmatpush3.bf16.msra.mxu0 %v4519_v54 }
 0x57a   : > { %4201 = vmatprep.subr.bf16.mxu0 %v5224_v48 }
 0x5d4   : > { %v1611_v3 = vpop.f32.mrb[4].mxu0 }
 0x5d5   : > { %v1612_v5 = vadd.f32 %v1611_v3, %v6046_v2  ;;  %v4165_v6 = vpop.f32.mrb[5].mxu0  ;;  %v4516_v3 = vld [vmem:[%s5876_s8] sm:$0xff]  }
 0x5d6   : > { %v1614_v7 = vpop.f32.mrb[6].mxu0  ;;  %v4517_v6 = vld [vmem:[%s5876_s8 + $0x8] sm:$0xff]  }
 0x5d7   : > { %v1615_v8 = vadd.f32 %v1614_v7, %v6051_v4  ;;  %v4166_v9 = vpop.f32.mrb[7].mxu0  ;;  %v1619_v10 = vsel %vm1618_vm8, %v1612_v5, -inf }
 0x5d8   : > { %1620 = vmax.xlane.f32.xlu1 %v1619_v10 }
 0x5d9   : > { %v1623_v12 = vsel %vm1622_vm9, %v1615_v8, -inf }
 0x5da   : > { %1624 = vmax.xlane.f32.xlu0 %v1623_v12 }
 0x647   : > { %v1738_v13 = vpop.f32.mrb[8].mxu0 }
 0x648   : > { %v1739_v14 = vadd.f32 %v1738_v13, %v6046_v2  ;;  %v4177_v15 = vpop.f32.mrb[9].mxu0 }
 0x649   : > { %v1741_v16 = vpop.f32.mrb[10].mxu0 }
 0x64a   : > { %v1742_v17 = vadd.f32 %v1741_v16, %v6051_v4  ;;  %v4178_v18 = vpop.f32.mrb[11].mxu0  ;;  %v1745_v19 = vsel %vm1618_vm8, %v1739_v14, -inf }
 0x64b   : > { %1746 = vmax.xlane.f32.xlu0 %v1745_v19 }
 0x64c   : > { %v1748_v20 = vsel %vm1622_vm9, %v1742_v17, -inf }
 0x64d   : > { %1749 = vmax.xlane.f32.xlu1 %v1748_v20 }
 0x665   : > { %v1621_v21 = vpop.xlane.xlu1 %1620 }
 0x666   : > { %v1626_v22 = vsub.f32 %v1612_v5, %v1621_v21 }
 0x667   : > { %v1625_v23 = vpop.xlane.xlu0 %1624 }
 0x668   : > { %v1628_v24 = vmul.f32 1.442695, %v1626_v22  ;;  %v1627_v25 = vsub.f32 %v1615_v8, %v1625_v23 }
 0x66a   : > { %4608 = vpow2.f32 %v1628_v24  ;;  %v1630_v26 = vmul.f32 1.442695, %v1627_v25 }
 0x66c   : > { %4610 = vpow2.f32 %v1630_v26 }
 0x674   : > { %v4609_v27 = vpop.eup %4608 }
 0x675   : > { %v1632_v28 = vsel %vm1618_vm8, %v4609_v27, 0.0 }
 0x676   : > { %v4611_v29 = vpop.eup %4610  ;;  %1633 = vadd.xlane.f32.xlu0 %v1632_v28 }
 0x677   : > { %v1635_v30 = vsel %vm1622_vm9, %v4611_v29, 0.0 }
 0x678   : > { %1636 = vadd.xlane.f32.xlu1 %v1635_v30 }
 0x6d8   : > { %v1747_v31 = vpop.xlane.xlu0 %1746 }
 0x6d9   : > { %v1751_v32 = vsub.f32 %v1739_v14, %v1747_v31 }
 0x6da   : > { %v1750_v33 = vpop.xlane.xlu1 %1749 }
 0x6db   : > { %v1753_v34 = vmul.f32 1.442695, %v1751_v32  ;;  %v1752_v38 = vsub.f32 %v1742_v17, %v1750_v33 }
 0x6dd   : > { %4612 = vpow2.f32 %v1753_v34  ;;  %v1755_v40 = vmul.f32 1.442695, %v1752_v38 }
 0x6df   : > { %4614 = vpow2.f32 %v1755_v40 }
 0x6e7   : > { %v4613_v41 = vpop.eup %4612 }
 0x6e8   : > { %v1757_v42 = vsel %vm1618_vm8, %v4613_v41, 0.0 }
 0x6e9   : > { %v4615_v43 = vpop.eup %4614  ;;  %1758 = vadd.xlane.f32.xlu0 %v1757_v42 }
 0x6ea   : > { %v1760_v44 = vsel %vm1622_vm9, %v4615_v43, 0.0 }
 0x6eb   : > { %1761 = vadd.xlane.f32.xlu1 %v1760_v44 }
 0x6fc   : > { %1933 = vrot.lane.b32.xlu1 %v6022_v60, %s5228_s13 }
 0x6ff   : > { %1769 = vrot.lane.b32.xlu0 %v6020_v59, %s5227_s5 }
 0x700   : > { %1931 = vrot.lane.b32.xlu1 %v6018_v58, %s5228_s13 }
 0x703   : > { %v1634_v45 = vpop.xlane.xlu0 %1633 }
 0x704   : > { %4616 = vrcp.f32 %v1634_v45 }
 0x705   : > { %v1637_v46 = vpop.xlane.xlu1 %1636 }
 0x706   : > { %4618 = vrcp.f32 %v1637_v46 }
 0x70e   : > { %v4617_v47 = vpop.eup %4616 }
 0x70f   : > { %v1640_v50 = vmul.f32 %v4617_v47, %v4609_v27 }
 0x710   : > { %v4619_v49 = vpop.eup %4618 }
 0x711   : > { %v1641_v51 = vmul.f32 %v4619_v49, %v4611_v29 }
 0x713   : > { %v1642_v52 = vpack.c.bf16 %v1641_v51, %v1640_v50 }
 0x715   : > { %4170 = vmatmul.mubr.msk.bf16.vlgmr.msra.gmra.mrb[4].mxu1 %vm1618_vm8, %v1642_v52 }
 0x716   : > { %4181 = vmatprep.mubr.msk.bf16.mxu1 %vm5226_vm5, %v5224_v48 }
 0x776   : > { %v1759_v55 = vpop.xlane.xlu0 %1758 }
 0x777   : > { %4620 = vrcp.f32 %v1759_v55  ;;  %v4520_v55 = vld [vmem:[%s5876_s8 + $0x20] sm:$0xff]  }
 0x778   : > { %v1762_v56 = vpop.xlane.xlu1 %1761 }
 0x779   : > { %4622 = vrcp.f32 %v1762_v56 }
 0x77a   : > { %v1770_v57 = vpop.permute.xlu0 %1769 }
 0x77b   : > { %v1775_v61 = vsel %vm1646_vm6, %v1770_v57, 0 }
 0x77c   : > { %4180 = vmatpush3.bf16.msra.mxu1 %v1775_v61  ;;  %v1934_v15 = vpop.permute.xlu1 %1933 }
 0x77d   : > { %4193 = vmatprep.subr.bf16.mxu1 %v5224_v48  ;;  %v1939_v19 = vsel %vm1570_vm7, %v1934_v15, 0 }
 0x780   : > { %v1932_v20 = vpop.permute.xlu1 %1931 }
 0x781   : > { %v4621_v62 = vpop.eup %4620 }
 0x782   : > { %v1765_v0 = vmul.f32 %v4621_v62, %v4613_v41 }
 0x783   : > { %v4623_v63 = vpop.eup %4622 }
 0x784   : > { %v1766_v1 = vmul.f32 %v4623_v63, %v4615_v43 }
 0x786   : > { %v1767_v5 = vpack.c.bf16 %v1766_v1, %v1765_v0 }
 0x788   : > { %4182 = vmatmul.mubr.msk.bf16.vlgmr.msra.gmra.mrb[8].mxu1 %vm1618_vm8, %v1767_v5 }
 0x789   : > { %4194 = vmatpush3.bf16.msra.mxu1 %v4516_v3  ;;  %4197 = vmatprep.mubr.msk.bf16.mxu1 %vm5226_vm5, %v5224_v48 }
 0x78a   : > { %4195 = vmatprep.subr.bf16.mxu1 %v5224_v48 }
 0x78d   : > { %4196 = vmatpush3.bf16.msra.mxu1 %v4517_v6  ;;  %v4521_v6 = vld [vmem:[%s5876_s8 + $0x28] sm:$0xff]  }
 0x78e   : > { %4207 = vmatprep.subr.bf16.mxu1 %v5224_v48 }
 0x7e8   : > { %v1684_v7 = vpop.f32.mrb[4].mxu1 }
 0x7e9   : > { %v4171_v8 = vpop.f32.mrb[5].mxu1 }
 0x7ea   : > { %v1687_v9 = vpop.f32.mrb[6].mxu1 }
 0x7eb   : > { %v1691_v10 = vpack.c.bf16 %v1687_v9, %v1684_v7  ;;  %v4172_v12 = vpop.f32.mrb[7].mxu1 }
 0x7ed   : > { %4198 = vmatmul.mubr.msk.bf16.vlgmr.msra.gmra.mrb[12].mxu1 %vm1570_vm7, %v1691_v10 }
 0x7ee   : > { %4209 = vmatprep.mubr.msk.bf16.mxu1 %vm5226_vm5, %v5224_v48 }
 0x85b   : > { %v1811_v13 = vpop.f32.mrb[8].mxu1 }
 0x85c   : > { %v4183_v14 = vpop.f32.mrb[9].mxu1 }
 0x85d   : > { %v1814_v16 = vpop.f32.mrb[10].mxu1 }
 0x85e   : > { %v1818_v17 = vpack.c.bf16 %v1814_v16, %v1811_v13  ;;  %v4184_v18 = vpop.f32.mrb[11].mxu1 }
 0x860   : > { %4190 = vmatmul.mubr.msk.bf16.vlgmr.msra.gmra.mrb[12].mxu0 %vm1570_vm7, %v1818_v17 }
 0x861   : > { %4202 = vmatpush3.bf16.xpose.msra.mxu0 %v1939_v19  ;;  %4203 = vmatprep.mubr.msk.bf16.mxu0 %vm5226_vm5, %v5224_v48 }
 0x862   : > { %4213 = vmatprep.subr.bf16.mxu0 %v5224_v48 }
 0x868   : > { %4204 = vmatmul.mubr.msk.bf16.vlgmr.msra.gmra.mrb[16].mxu0 %vm1570_vm7, %v1932_v20 }
 0x869   : > { %4217 = vmatprep.mubr.msk.bf16.mxu0 %vm5226_vm5, %v5224_v48  ;;  %4214 = vmatpush3.bf16.msra.mxu0 %v4520_v55 }
 0x86a   : > { %4215 = vmatprep.subr.bf16.mxu0 %v5224_v48 }
 0x86d   : > { %4216 = vmatpush3.bf16.msra.mxu0 %v4521_v6  ;;  %v4524_v6 = vld [vmem:[%s5917_s9] ss:$16 sps:$4 sm:$0xff]  }
 0x86e   : > { %4227 = vmatprep.subr.bf16.mxu0 %v5224_v48 }
 0x8c0   : > { %v1924_v21 = vpop.f32.mrb[12].mxu1 }
 0x8c1   : > { %v4199_v22 = vpop.f32.mrb[13].mxu1 }
 0x8c2   : > { %v1927_v23 = vpop.f32.mrb[14].mxu1 }
 0x8c3   : > { %v4200_v24 = vpop.f32.mrb[15].mxu1 }
 0x933   : > { %v1868_v25 = vpop.f32.mrb[12].mxu0 }
 0x934   : > { %v6098_v26 = vadd.f32 %v1924_v21, %v1868_v25  ;;  %v4191_v27 = vpop.f32.mrb[13].mxu0 }
 0x935   : > { %v1871_v28 = vpop.f32.mrb[14].mxu0 }
 0x936   : > { %v6100_v29 = vadd.f32 %v1927_v23, %v1871_v28  ;;  %v4192_v30 = vpop.f32.mrb[15].mxu0 }
 0x93b   : > { %v1975_v31 = vpop.f32.mrb[16].mxu0 }
 0x93c   : > { %v1976_v32 = vadd.f32 %v1975_v31, %v6046_v2  ;;  %v4205_v33 = vpop.f32.mrb[17].mxu0  ;;  %v4522_v31 = vld [vmem:[%s5876_s8 + $0x30] sm:$0xff]  }
 0x93d   : > { %v1978_v34 = vpop.f32.mrb[18].mxu0 }
 0x93e   : > { %v1979_v38 = vadd.f32 %v1978_v34, %v6051_v4  ;;  %v4206_v40 = vpop.f32.mrb[19].mxu0  ;;  %v1982_v41 = vsel %vm1618_vm8, %v1976_v32, -inf }
 0x93f   : > { %1983 = vmax.xlane.f32.xlu1 %v1982_v41 }
 0x940   : > { %v1985_v42 = vsel %vm1622_vm9, %v1979_v38, -inf }
 0x941   : > { %1986 = vmax.xlane.f32.xlu0 %v1985_v42 }
 0x950   : > { %2005 = vrot.lane.b32.xlu1 %v6020_v59, %s5228_s13 }
 0x954   : > { %2113 = vrot.lane.b32.xlu1 %v6018_v58, %s5229_s20 }
 0x9cc   : > { %v1984_v43 = vpop.xlane.xlu1 %1983 }
 0x9cd   : > { %v1988_v44 = vsub.f32 %v1976_v32, %v1984_v43 }
 0x9ce   : > { %v1987_v45 = vpop.xlane.xlu0 %1986 }
 0x9cf   : > { %v1990_v46 = vmul.f32 1.442695, %v1988_v44  ;;  %v1989_v47 = vsub.f32 %v1979_v38, %v1987_v45 }
 0x9d0   : > { %v2006_v49 = vpop.permute.xlu1 %2005 }
 0x9d1   : > { %4624 = vpow2.f32 %v1990_v46  ;;  %v1992_v50 = vmul.f32 1.442695, %v1989_v47  ;;  %v2011_v51 = vsel %vm1646_vm6, %v2006_v49, 0 }
 0x9d2   : > { %4208 = vmatpush3.bf16.msra.mxu1 %v2011_v51 }
 0x9d3   : > { %4626 = vpow2.f32 %v1992_v50  ;;  %4221 = vmatprep.subr.bf16.mxu1 %v5224_v48 }
 0x9db   : > { %v4625_v52 = vpop.eup %4624 }
 0x9dc   : > { %v1994_v53 = vsel %vm1618_vm8, %v4625_v52, 0.0 }
 0x9dd   : > { %v4627_v54 = vpop.eup %4626  ;;  %1995 = vadd.xlane.f32.xlu0 %v1994_v53 }
 0x9de   : > { %v1997_v58 = vsel %vm1622_vm9, %v4627_v54, 0.0 }
 0x9e1   : > { %1998 = vadd.xlane.f32.xlu0 %v1997_v58 }
 0x9f7   : > { %2115 = vrot.lane.b32.xlu0 %v6022_v60, %s5229_s20  ;;  %v2114_v60 = vpop.permute.xlu1 %2113 }
 0xa6a   : > { %v1996_v56 = vpop.xlane.xlu0 %1995 }
 0xa6b   : > { %4628 = vrcp.f32 %v1996_v56 }
 0xa6e   : > { %v1999_v57 = vpop.xlane.xlu0 %1998 }
 0xa6f   : > { %4630 = vrcp.f32 %v1999_v57 }
 0xa72   : > { %v2116_v1 = vpop.permute.xlu0 %2115 }
 0xa73   : > { %v2121_v5 = vsel %vm1570_vm7, %v2116_v1, 0 }
 0xa75   : > { %v4629_v61 = vpop.eup %4628 }
 0xa76   : > { %v2002_v63 = vmul.f32 %v4629_v61, %v4625_v52 }
 0xa79   : > { %v4631_v62 = vpop.eup %4630 }
 0xa7a   : > { %v2003_v0 = vmul.f32 %v4631_v62, %v4627_v54  ;;  %v4660_v62 = vld [vmem:[#allocation2 + $0x8] sm:$0xf] }
 0xa7c   : > { %v2004_v3 = vpack.c.bf16 %v2003_v0, %v2002_v63 }
 0xa7e   : > { %4210 = vmatmul.mubr.msk.bf16.vlgmr.msra.gmra.mrb[16].mxu1 %vm1618_vm8, %v2004_v3 }
 0xa7f   : > { %4222 = vmatpush3.bf16.xpose.msra.mxu1 %v2121_v5  ;;  %4223 = vmatprep.mubr.msk.bf16.mxu1 %vm5226_vm5, %v5224_v48 }
 0xa80   : > { %4233 = vmatprep.subr.bf16.mxu1 %v5224_v48 }
 0xa86   : > { %4224 = vmatmul.mubr.msk.bf16.vlgmr.msra.gmra.mrb[20].mxu1 %vm1570_vm7, %v2114_v60 }
 0xa87   : > { %4237 = vmatprep.mubr.msk.bf16.mxu1 %vm5226_vm5, %v5224_v48  ;;  %4234 = vmatpush3.bf16.msra.mxu1 %v4522_v31  ;;  %v4545_v31 = vld [vmem:[%s5917_s9 + $0x68] ss:$16 sps:$4 sm:$0xff]  }
 0xa88   : > { %4235 = vmatprep.subr.bf16.mxu1 %v5224_v48 }
 0xb51   : > { %v2047_v7 = vpop.f32.mrb[16].mxu1 }
 0xb52   : > { %v4211_v8 = vpop.f32.mrb[17].mxu1 }
 0xb53   : > { %v2050_v9 = vpop.f32.mrb[18].mxu1  ;;  %v4527_v8 = vld [vmem:[%s5917_s9 + $0x8] ss:$16 sps:$4 sm:$0xff]  }
 0xb54   : > { %v2054_v10 = vpack.c.bf16 %v2050_v9, %v2047_v7  ;;  %v4212_v12 = vpop.f32.mrb[19].mxu1  ;;  %v4526_v7 = vld [vmem:[%s5917_s9 + $0x4] ss:$16 sps:$4 sm:$0xff]   ;;  %v4529_v9 = vld [vmem:[%s5917_s9 + $0xc] ss:$16 sps:$4 sm:$0xff]  }
 0xb55   : > { %v4535_v12 = vld [vmem:[%s5917_s9 + $0x2c] ss:$16 sps:$4 sm:$0xff]  }
 0xb56   : > { %4218 = vmatmul.mubr.msk.bf16.vlgmr.msra.gmra.mrb[20].mxu0 %vm1570_vm7, %v2054_v10  ;;  %v4532_v10 = vld [vmem:[%s5917_s9 + $0x24] ss:$16 sps:$4 sm:$0xff]  }
 0xb57   : > { %4229 = vmatprep.mubr.msk.bf16.mxu0 %vm5226_vm5, %v5224_v48 }
 0xb59   : > { %v2157_v13 = vpop.f32.mrb[20].mxu1 }
 0xb5a   : > { %v2158_v14 = vadd.f32 %v2157_v13, %v6046_v2  ;;  %v4225_v15 = vpop.f32.mrb[21].mxu1  ;;  %v4530_v13 = vld [vmem:[%s5917_s9 + $0x20] ss:$16 sps:$4 sm:$0xff]  }
 0xb5b   : > { %v2160_v16 = vpop.f32.mrb[22].mxu1 }
 0xb5c   : > { %v2161_v17 = vadd.f32 %v2160_v16, %v6051_v4  ;;  %v4226_v18 = vpop.f32.mrb[23].mxu1  ;;  %v2164_v19 = vsel %vm1618_vm8, %v2158_v14, -inf }
 0xb5d   : > { %2165 = vmax.xlane.f32.xlu1 %v2164_v19 }
 0xb5e   : > { %v2167_v20 = vsel %vm1622_vm9, %v2161_v17, -inf }
 0xb5f   : > { %2168 = vmax.xlane.f32.xlu0 %v2167_v20 }
 0xbea   : > { %v2166_v21 = vpop.xlane.xlu1 %2165 }
 0xbeb   : > { %v2170_v22 = vsub.f32 %v2158_v14, %v2166_v21  ;;  %v4533_v14 = vld [vmem:[%s5917_s9 + $0x28] ss:$16 sps:$4 sm:$0xff]  }
 0xbec   : > { %v2169_v23 = vpop.xlane.xlu0 %2168 }
 0xbed   : > { %v2172_v24 = vmul.f32 1.442695, %v2170_v22  ;;  %v2171_v25 = vsub.f32 %v2161_v17, %v2169_v23 }
 0xbef   : > { %4632 = vpow2.f32 %v2172_v24  ;;  %v2174_v27 = vmul.f32 1.442695, %v2171_v25  ;;  %v4538_v24 = vld [vmem:[%s5917_s9 + $0x44] ss:$16 sps:$4 sm:$0xff]   ;;  %v4541_v25 = vld [vmem:[%s5917_s9 + $0x4c] ss:$16 sps:$4 sm:$0xff]  }
 0xbf1   : > { %4634 = vpow2.f32 %v2174_v27  ;;  %v4536_v27 = vld [vmem:[%s5917_s9 + $0x40] ss:$16 sps:$4 sm:$0xff]  }
 0xbf9   : > { %v4633_v2 = vpop.eup %4632 }
 0xbfa   : > { %v2176_v28 = vsel %vm1618_vm8, %v4633_v2, 0.0 }
 0xbfb   : > { %v4635_v4 = vpop.eup %4634  ;;  %2177 = vadd.xlane.f32.xlu0 %v2176_v28  ;;  %v4544_v28 = vld [vmem:[%s5917_s9 + $0x64] ss:$16 sps:$4 sm:$0xff]  }
 0xbfc   : > { %v2179_v30 = vsel %vm1622_vm9, %v4635_v4, 0.0 }
 0xbfd   : > { %2180 = vadd.xlane.f32.xlu1 %v2179_v30  ;;  %v4542_v30 = vld [vmem:[%s5917_s9 + $0x60] ss:$16 sps:$4 sm:$0xff]  }
 0xc11   : > { %2187 = vrot.lane.b32.xlu0 %v6020_v59, %s5229_s20 }
 0xc29   : > { %v2104_v32 = vpop.f32.mrb[20].mxu0 }
 0xc2a   : > { %v2111_v33 = vadd.f32 %v2104_v32, %v6098_v26  ;;  %v4219_v34 = vpop.f32.mrb[21].mxu0  ;;  %v4523_v26 = vld [vmem:[%s5876_s8 + $0x38] sm:$0xff]   ;;  %s6582_s8 = scalar_lea.vmem [#allocation16], %s5854_s2  ;;  %v4550_v32 = vld [vmem:[%s5917_s9 + $0x84] ss:$16 sps:$4 sm:$0xff]  }
 0xc2b   : > { %v2107_v38 = vpop.f32.mrb[22].mxu0  ;;  %4236 = vmatpush3.bf16.msra.mxu1 %v4523_v26  ;;  %v3889_v0 = vld [vmem:[%s6582_s8] ss:$0 sm:$0xff]  ;;  %v4569_v26 = vld [vmem:[%s5917_s9 + $0xe8] ss:$16 sps:$4 sm:$0xff]  }
 0xc2c   : > { %v2112_v40 = vadd.f32 %v2107_v38, %v6100_v29  ;;  %v4220_v41 = vpop.f32.mrb[23].mxu0  ;;  %2606 = vmatprep.subr.bf16.mxu1 %v4529_v9  ;;  %v4548_v34 = vld [vmem:[%s5917_s9 + $0x80] ss:$16 sps:$4 sm:$0xff]   ;;  %v4551_v38 = vld [vmem:[%s5917_s9 + $0x88] ss:$16 sps:$4 sm:$0xff]  }
 0xc2d   : > { %v4559_v41 = vld [vmem:[%s5917_s9 + $0xac] ss:$16 sps:$4 sm:$0xff]   ;;  %v4575_v9 = vld [vmem:[%s5899_s16 + $0x80] sm:$0xff]  }
 0xc88   : > { %v2178_v42 = vpop.xlane.xlu0 %2177 }
 0xc89   : > { %4636 = vrcp.f32 %v2178_v42  ;;  %v4554_v42 = vld [vmem:[%s5917_s9 + $0xa0] ss:$16 sps:$4 sm:$0xff]  }
 0xc8a   : > { %v2181_v43 = vpop.xlane.xlu1 %2180 }
 0xc8b   : > { %4638 = vrcp.f32 %v2181_v43  ;;  %v4557_v43 = vld [vmem:[%s5917_s9 + $0xa8] ss:$16 sps:$4 sm:$0xff]  }
 0xc8c   : > { %v2188_v44 = vpop.permute.xlu0 %2187 }
 0xc8d   : > { %v2193_v59 = vsel %vm1646_vm6, %v2188_v44, 0  ;;  %v4562_v44 = vld [vmem:[%s5917_s9 + $0xc4] ss:$16 sps:$4 sm:$0xff]  }
 0xc8e   : > { %4228 = vmatpush3.bf16.msra.mxu0 %v2193_v59  ;;  %v4565_v59 = vld [vmem:[%s5917_s9 + $0xcc] ss:$16 sps:$4 sm:$0xff]  }
 0xc8f   : > { %2563 = vmatprep.subr.bf16.mxu0 %v4526_v7  ;;  %v4573_v7 = vld [vmem:[%s5899_s16 + $0xc0] sm:$0xff]  }
 0xc93   : > { %v4637_v45 = vpop.eup %4636 }
 0xc94   : > { %v2184_v48 = vmul.f32 %v4637_v45, %v4633_v2  ;;  %v4539_v2 = vld [vmem:[%s5917_s9 + $0x48] ss:$16 sps:$4 sm:$0xff]   ;;  %v4560_v45 = vld [vmem:[%s5917_s9 + $0xc0] ss:$16 sps:$4 sm:$0xff]  }
 0xc95   : > { %v4639_v46 = vpop.eup %4638 }
 0xc96   : > { %v2185_v47 = vmul.f32 %v4639_v46, %v4635_v4  ;;  %v4547_v4 = vld [vmem:[%s5917_s9 + $0x6c] ss:$16 sps:$4 sm:$0xff]   ;;  %v4563_v46 = vld [vmem:[%s5917_s9 + $0xc8] ss:$16 sps:$4 sm:$0xff]  }
 0xc98   : > { %v2186_v49 = vpack.c.bf16 %v2185_v47, %v2184_v48  ;;  %v4568_v48 = vld [vmem:[%s5917_s9 + $0xe4] ss:$16 sps:$4 sm:$0xff]   ;;  %v4571_v47 = vld [vmem:[%s5917_s9 + $0xec] ss:$16 sps:$4 sm:$0xff]  }
 0xc9a   : > { %4230 = vmatmul.mubr.msk.bf16.vlgmr.msra.gmra.mrb[24].mxu0 %vm1618_vm8, %v2186_v49  ;;  %v4566_v49 = vld [vmem:[%s5917_s9 + $0xe0] ss:$16 sps:$4 sm:$0xff]  }
 0xc9b   : > { %2595 = vmatprep.mubr.bf16.mxu0 %v5225_v11  ;;  %2564 = vmatpush1.bf16.msra.mxu0 %v4524_v6  ;;  %v4572_v6 = vld [vmem:[%s5899_s16 + $0x40] sm:$0xff]  }
 0xc9c   : > { %2565 = vmatprep.subr.bf16.mxu0 %v4532_v10  ;;  %v4576_v10 = vld [vmem:[%s5899_s16 + $0x48] sm:$0xff]  }
 0xc9f   : > { %2566 = vmatpush1.bf16.msra.mxu0 %v4530_v13  ;;  %v4578_v13 = vld [vmem:[%s5899_s16 + $0x8] sm:$0xff]  }
 0xca0   : > { %2567 = vmatprep.subr.bf16.mxu0 %v4538_v24  ;;  %v4589_v24 = vld [vmem:[%s5899_s16 + $0xe0] sm:$0xff]  }
 0xca3   : > { %2568 = vmatpush1.bf16.msra.mxu0 %v4536_v27  ;;  %v4591_v27 = vld [vmem:[%s5899_s16 + $0xa0] sm:$0xff]  }
 0xca4   : > { %2569 = vmatprep.subr.bf16.mxu0 %v4544_v28  ;;  %v4593_v28 = vld [vmem:[%s5899_s16 + $0xe8] sm:$0xff]  }
 0xca7   : > { %2570 = vmatpush1.bf16.msra.mxu0 %v4542_v30  ;;  %v4595_v30 = vld [vmem:[%s5899_s16 + $0xa8] sm:$0xff]  }
 0xca8   : > { %2571 = vmatprep.subr.bf16.mxu0 %v4550_v32  ;;  %v4597_v32 = vld [vmem:[%s5899_s16 + $0xf0] sm:$0xff]  }
 0xcab   : > { %2572 = vmatpush1.bf16.msra.mxu0 %v4548_v34  ;;  %v4599_v34 = vld [vmem:[%s5899_s16 + $0xb0] sm:$0xff]  }
 0xd6d   : > { %v2229_v29 = vpop.f32.mrb[24].mxu0 }
 0xd6e   : > { %v4231_v50 = vpop.f32.mrb[25].mxu0 }
 0xd6f   : > { %v2232_v51 = vpop.f32.mrb[26].mxu0 }
 0xd70   : > { %v2236_v52 = vpack.c.bf16 %v2232_v51, %v2229_v29  ;;  %v4232_v53 = vpop.f32.mrb[27].mxu0 }
 0xd72   : > { %4238 = vmatmul.mubr.msk.bf16.vlgmr.msra.gmra.mrb[24].mxu1 %vm1570_vm7, %v2236_v52 }
 0xd73   : > { %2638 = vmatprep.mubr.bf16.mxu1 %v5225_v11  ;;  %v4661_v11 = vld [vmem:[#allocation2] sm:$0xff]  ;;  %2607 = vmatpush1.bf16.msra.mxu1 %v4527_v8  ;;  %v4574_v8 = vld [vmem:[%s5899_s16] sm:$0xff]  }
 0xd74   : > { %2608 = vmatprep.subr.bf16.mxu1 %v4535_v12  ;;  %v4577_v12 = vld [vmem:[%s5899_s16 + $0xc8] sm:$0xff]  }
 0xd77   : > { %2609 = vmatpush1.bf16.msra.mxu1 %v4533_v14  ;;  %v4579_v14 = vld [vmem:[%s5899_s16 + $0x88] sm:$0xff]  }
 0xd78   : > { %2610 = vmatprep.subr.bf16.mxu1 %v4541_v25  ;;  %v4590_v25 = vld [vmem:[%s5899_s16 + $0x20] sm:$0xff]  }
 0xd7b   : > { %2611 = vmatpush1.bf16.msra.mxu1 %v4539_v2  ;;  %v4592_v2 = vld [vmem:[%s5899_s16 + $0x68] sm:$0xff]  }
 0xd7c   : > { %2612 = vmatprep.subr.bf16.mxu1 %v4547_v4  ;;  %v4594_v4 = vld [vmem:[%s5899_s16 + $0x28] sm:$0xff]  }
 0xd7f   : > { %2613 = vmatpush1.bf16.msra.mxu1 %v4545_v31  ;;  %v4596_v31 = vld [vmem:[%s5899_s16 + $0x70] sm:$0xff]  }
 0xe45   : > { %v2286_v54 = vpop.f32.mrb[24].mxu1 }
 0xe46   : > { %v2293_v58 = vadd.f32 %v2286_v54, %v2111_v33  ;;  %v4239_v55 = vpop.f32.mrb[25].mxu1  ;;  %v4553_v33 = vld [vmem:[%s5917_s9 + $0x8c] ss:$16 sps:$4 sm:$0xff]  }
 0xe47   : > { %v2289_v56 = vpop.f32.mrb[26].mxu1  ;;  %2614 = vmatprep.subr.bf16.mxu1 %v4553_v33  ;;  %v4598_v33 = vld [vmem:[%s5899_s16 + $0x30] sm:$0xff]  }
 0xe48   : > { %v2294_v57 = vadd.f32 %v2289_v56, %v2112_v40  ;;  %v4240_v61 = vpop.f32.mrb[27].mxu1  ;;  %v2295_v3 = vadd.f32 %v4661_v11, %v2293_v58  ;;  %2615 = vmatpush1.bf16.msra.mxu1 %v4551_v38  ;;  %v4556_v40 = vld [vmem:[%s5917_s9 + $0xa4] ss:$16 sps:$4 sm:$0xff]   ;;  %s6583_s9 = scalar_lea.vmem [#allocation17], %s5854_s2  ;;  %v4600_v38 = vld [vmem:[%s5899_s16 + $0x78] sm:$0xff]  }
 0xe49   : > { %2573 = vmatprep.subr.bf16.mxu0 %v4556_v40  ;;  %2616 = vmatprep.subr.bf16.mxu1 %v4559_v41  ;;  %v3890_v56 = vld [vmem:[%s6583_s9] ss:$0 sm:$0xff]  ;;  %v4601_v40 = vld [vmem:[%s5899_s16 + $0xf8] sm:$0xff]  }
 0xe4a   : > { %v2296_v63 = vadd.f32 %v4660_v62, %v2294_v57  ;;  %v6155_v60 = vadd.f32 %v3889_v0, %v2295_v3  ;;  %2574 = vmatpush1.bf16.msra.mxu0 %v4554_v42  ;;  %v4602_v41 = vld [vmem:[%s5899_s16 + $0x38] sm:$0xff]  }
 0xe4b   : > { %2575 = vmatprep.subr.bf16.mxu0 %v4562_v44  ;;  %v4603_v42 = vld [vmem:[%s5899_s16 + $0xb8] sm:$0xff]   ;;  %v2397_v44 = vsub.s32 3, %v6006_v35 }
 0xe4c   : > { %v6151_v1 = vadd.f32 %v3889_v0, %v2296_v63  ;;  %2617 = vmatpush1.bf16.msra.mxu1 %v4557_v43  ;;  %v3891_v63 = vld [vmem:[%s6584_s10] ss:$0 sm:$0xff]  ;;  %v2380_v43 = vld [vmem:[%s5892_s26] sm:$0xf]  ;;  %s6585_s26 = scalar_lea.vmem [#allocation23], %s5854_s2  ;;  %s6586_s2 = sld [smem:[#allocation35_spill]] }
 0xe4d   : > { %2618 = vmatprep.subr.bf16.mxu1 %v4565_v59  ;;  %v2386_v59 = vrot.slane %v2380_v43, %v1324_v36 }
 0xe4e   : > { %v2310_v5 = vsel %vm1247_vm4, %v6151_v1, 0.0  ;;  %2576 = vmatpush1.bf16.msra.mxu0 %v4560_v45  ;;  %v2394_v45 = vrot.slane %v2380_v43, %v1332_v37 }
 0xe4f   : > { %2311 = vadd.xlane.f32.xlu1 %v2310_v5  ;;  %2577 = vmatprep.subr.bf16.mxu0 %v4568_v48  ;;  %v2398_v48 = vrot.slane %v2380_v43, %v2397_v44 }
 0xe50   : > { %2619 = vmatpush1.bf16.msra.mxu1 %v4563_v46  ;;  %v2390_v46 = vrot.slane %v2380_v43, %v1328_v39 }
 0xe51   : > { %2620 = vmatprep.subr.bf16.mxu1 %v4571_v47 }
 0xe52   : > { %2578 = vmatpush1.bf16.msra.mxu0 %v4566_v49  ;;  %p3957_p6 = scmp.ne.s32.totalorder %s6586_s2, 1 }
 0xe53   : > { %2308 = vadd.xlane.f32.xlu1 %v6155_v60  ;;  %4062 = vmatprep.subr.bf16.mxu0 %v4572_v6  ;;  %s6587_s23 = sld [smem:[#allocation52_spill]] (!%p3957_p6)  ;;  %vm5231_vm10 = vmmov (!%p3957_p6), 0   ;;  %s5232_s7 = smov (!%p3957_p6), 8   ;;  %vm3465_vm11 = vcmask (!%p3957_p6), 64512   ;;  %vm3467_vm12 = vcmask (!%p3957_p6), 130048   ;;  %vm3469_vm13 = vcmask (!%p3957_p6), 191488  }
 0xe54   : > { %2621 = vmatpush1.bf16.msra.mxu1 %v4569_v26  ;;  %s5233_s6 = smov (!%p3957_p6), 16  }
 0xe55   : > { %4084 = vmatprep.subr.bf16.mxu1 %v4573_v7 }
 0xe59   : > { %s6588_s30 = smov (!%p3957_p6), %s6587_s23 }
 0xedc   : > { %v2312_v15 = vpop.xlane.xlu1 %2311 }
 0xedd   : > { %v2314_v16 = vmul.f32 0.0078125, %v2312_v15  ;;  %v4580_v15 = vld [vmem:[%s5899_s16 + $0x50] sm:$0xff]  }
 0xedf   : > { %v6167_v19 = vsub.f32 %v6151_v1, %v2314_v16  ;;  %v4581_v16 = vld [vmem:[%s5899_s16 + $0xd0] sm:$0xff]  }
 0xee0   : > { %v2309_v17 = vpop.xlane.xlu1 %2308 }
 0xee1   : > { %v2313_v18 = vmul.f32 0.0078125, %v2309_v17  ;;  %v2318_v22 = vmul.f32 %v6167_v19, %v6167_v19  ;;  %v4582_v17 = vld [vmem:[%s5899_s16 + $0x10] sm:$0xff]  }
 0xee3   : > { %v6170_v20 = vsub.f32 %v6155_v60, %v2313_v18  ;;  %v2321_v23 = vsel %vm1247_vm4, %v2318_v22, 0.0  ;;  %v4583_v18 = vld [vmem:[%s5899_s16 + $0x90] sm:$0xff]   ;;  %v4587_v22 = vld [vmem:[%s5899_s16 + $0x98] sm:$0xff]  }
 0xee5   : > { %v2317_v21 = vmul.f32 %v6170_v20, %v6170_v20 }
 0xee7   : > { %2319 = vadd.xlane.f32.xlu1 %v2317_v21  ;;  %v4586_v21 = vld [vmem:[%s5899_s16 + $0x18] sm:$0xff]  }
 0xeeb   : > { %2322 = vadd.xlane.f32.xlu1 %v2321_v23  ;;  %v4588_v23 = vld [vmem:[%s5899_s16 + $0x60] sm:$0xff]  }
 0xf74   : > { %v2320_v29 = vpop.xlane.xlu1 %2319 }
 0xf75   : > { %v2324_v50 = vmul.f32 0.0078125, %v2320_v29 }
 0xf77   : > { %v2326_v51 = vadd.f32 1e-05, %v2324_v50 }
 0xf78   : > { %v2323_v52 = vpop.xlane.xlu1 %2322 }
 0xf79   : > { %4640 = vrsqrt.f32 %v2326_v51  ;;  %v2325_v53 = vmul.f32 0.0078125, %v2323_v52 }
 0xf7b   : > { %v2327_v54 = vadd.f32 1e-05, %v2325_v53 }
 0xf7d   : > { %4642 = vrsqrt.f32 %v2327_v54 }
 0xf83   : > { %v4641_v58 = vpop.eup %4640 }
 0xf84   : > { %v2330_v55 = vmul.f32 %v4641_v58, %v6170_v20  ;;  %v4585_v20 = vld [vmem:[%s5899_s16 + $0xd8] sm:$0xff]  }
 0xf86   : > { %v2338_v62 = vmul.f32 %v3890_v56, %v2330_v55 }
 0xf87   : > { %v4643_v57 = vpop.eup %4642 }
 0xf88   : > { %v2331_v61 = vmul.f32 %v4643_v57, %v6167_v19  ;;  %v2346_v11 = vadd.f32 %v3891_v63, %v2338_v62  ;;  %v4584_v19 = vld [vmem:[%s5899_s16 + $0x58] sm:$0xff]  }
 0xf8a   : > { %v2339_v0 = vmul.f32 %v3890_v56, %v2331_v61 }
 0xf8c   : > { %v2347_v3 = vadd.f32 %v3891_v63, %v2339_v0 }
 0xf8e   : > { %v2381_v5 = vpack.c.bf16 %v2347_v3, %v2346_v11 }
 0xf90   : > { %2596 = vmatmul.mubr.bf16.vlgmr.msra.gmra.mrb[28].mxu0 %v2381_v5  ;;  %2639 = vmatmul.mubr.bf16.vlgmr.msra.gmra.mrb[28].mxu1 %v2381_v5 }
 0xf91   : > { %4063 = vmatpush3.bf16.msra.mxu0 %v4574_v8  ;;  %4085 = vmatpush3.bf16.msra.mxu1 %v4575_v9 }
 0xf92   : > { %4064 = vmatprep.subr.bf16.mxu0 %v4576_v10  ;;  %4086 = vmatprep.subr.bf16.mxu1 %v4577_v12 }
 0xf95   : > { %4065 = vmatpush3.bf16.msra.mxu0 %v4578_v13  ;;  %4087 = vmatpush3.bf16.msra.mxu1 %v4579_v14 }
 0xf96   : > { %4066 = vmatprep.subr.bf16.mxu0 %v4580_v15  ;;  %4088 = vmatprep.subr.bf16.mxu1 %v4581_v16 }
 0xf99   : > { %4067 = vmatpush3.bf16.msra.mxu0 %v4582_v17  ;;  %4089 = vmatpush3.bf16.msra.mxu1 %v4583_v18 }
 0xf9a   : > { %4068 = vmatprep.subr.bf16.mxu0 %v4584_v19  ;;  %4090 = vmatprep.subr.bf16.mxu1 %v4585_v20 }
 0xf9d   : > { %4069 = vmatpush3.bf16.msra.mxu0 %v4586_v21  ;;  %4091 = vmatpush3.bf16.msra.mxu1 %v4587_v22 }
 0xf9e   : > { %4070 = vmatprep.subr.bf16.mxu0 %v4588_v23  ;;  %4092 = vmatprep.subr.bf16.mxu1 %v4589_v24 }
 0xfa1   : > { %4071 = vmatpush3.bf16.msra.mxu0 %v4590_v25  ;;  %4093 = vmatpush3.bf16.msra.mxu1 %v4591_v27 }
 0xfa2   : > { %4072 = vmatprep.subr.bf16.mxu0 %v4592_v2  ;;  %4094 = vmatprep.subr.bf16.mxu1 %v4593_v28 }
 0xfa5   : > { %4073 = vmatpush3.bf16.msra.mxu0 %v4594_v4  ;;  %4095 = vmatpush3.bf16.msra.mxu1 %v4595_v30 }
 0xfa6   : > { %4074 = vmatprep.subr.bf16.mxu0 %v4596_v31  ;;  %4096 = vmatprep.subr.bf16.mxu1 %v4597_v32 }
 0xfa9   : > { %4075 = vmatpush3.bf16.msra.mxu0 %v4598_v33  ;;  %4097 = vmatpush3.bf16.msra.mxu1 %v4599_v34 }
 0xfaa   : > { %4076 = vmatprep.subr.bf16.mxu0 %v4600_v38  ;;  %4098 = vmatprep.subr.bf16.mxu1 %v4601_v40 }
 0xfad   : > { %4077 = vmatpush3.bf16.msra.mxu0 %v4602_v41  ;;  %4099 = vmatpush3.bf16.msra.mxu1 %v4603_v42 }
0x1063   : > { %v2597_v47 = vpop.f32.mrb[28].mxu0  ;;  %v2640_v49 = vpop.f32.mrb[28].mxu1 }
0x1064   : > { %v6247_v26 = vadd.f32 %v2597_v47, %v2386_v59  ;;  %v6249_v29 = vadd.f32 %v2640_v49, %v2394_v45  ;;  %v2599_v50 = vpop.f32.mrb[29].mxu0  ;;  %v2642_v51 = vpop.f32.mrb[29].mxu1 }
0x1065   : > { %v6251_v52 = vadd.f32 %v2599_v50, %v2390_v46  ;;  %v6253_v53 = vadd.f32 %v2642_v51, %v2398_v48  ;;  %v2601_v36 = vpop.f32.mrb[30].mxu0  ;;  %v2644_v54 = vpop.f32.mrb[30].mxu1 }
0x1066   : > { %v2657_v37 = vmul.f32 0.044715, %v6247_v26  ;;  %v2659_v35 = vmul.f32 0.044715, %v6249_v29  ;;  %v2602_v39 = vadd.f32 %v2601_v36, %v2386_v59  ;;  %v2645_v58 = vadd.f32 %v2644_v54, %v2394_v45  ;;  %v2603_v55 = vpop.f32.mrb[31].mxu0  ;;  %v2646_v56 = vpop.f32.mrb[31].mxu1 }
0x1067   : > { %v2658_v57 = vmul.f32 0.044715, %v6251_v52  ;;  %v2660_v61 = vmul.f32 0.044715, %v6253_v53  ;;  %v6259_v62 = vadd.f32 %v2603_v55, %v2390_v46  ;;  %v6261_v63 = vadd.f32 %v2646_v56, %v2398_v48 }
0x1068   : > { %v2665_v0 = vmul.f32 %v2657_v37, %v6247_v26  ;;  %v2667_v11 = vmul.f32 %v2659_v35, %v6249_v29  ;;  %v2661_v3 = vmul.f32 0.044715, %v2602_v39  ;;  %v2663_v5 = vmul.f32 0.044715, %v2645_v58 }
0x1069   : > { %v2666_v6 = vmul.f32 %v2658_v57, %v6251_v52  ;;  %v2668_v7 = vmul.f32 %v2660_v61, %v6253_v53  ;;  %v2662_v8 = vmul.f32 0.044715, %v6259_v62  ;;  %v2664_v9 = vmul.f32 0.044715, %v6261_v63 }
0x106a   : > { %v2673_v10 = vmul.f32 %v2665_v0, %v6247_v26  ;;  %v2675_v12 = vmul.f32 %v2667_v11, %v6249_v29  ;;  %v2669_v13 = vmul.f32 %v2661_v3, %v2602_v39  ;;  %v2671_v14 = vmul.f32 %v2663_v5, %v2645_v58 }
0x106b   : > { %v2674_v15 = vmul.f32 %v2666_v6, %v6251_v52  ;;  %v2676_v16 = vmul.f32 %v2668_v7, %v6253_v53  ;;  %v2670_v17 = vmul.f32 %v2662_v8, %v6259_v62  ;;  %v2672_v18 = vmul.f32 %v2664_v9, %v6261_v63 }
0x106c   : > { %v2681_v19 = vadd.f32 %v2673_v10, %v6247_v26  ;;  %v2683_v20 = vadd.f32 %v2675_v12, %v6249_v29  ;;  %v2677_v21 = vmul.f32 %v2669_v13, %v2602_v39  ;;  %v2679_v22 = vmul.f32 %v2671_v14, %v2645_v58 }
0x106d   : > { %v2678_v23 = vmul.f32 %v2670_v17, %v6259_v62  ;;  %v2680_v24 = vmul.f32 %v2672_v18, %v6261_v63  ;;  %v2682_v4 = vadd.f32 %v2674_v15, %v6251_v52  ;;  %v2684_v33 = vadd.f32 %v2676_v16, %v6253_v53 }
0x106e   : > { %v2689_v25 = vmul.f32 0.7978846, %v2681_v19  ;;  %v2691_v27 = vmul.f32 0.7978846, %v2683_v20  ;;  %v2685_v2 = vadd.f32 %v2677_v21, %v2602_v39  ;;  %v2687_v28 = vadd.f32 %v2679_v22, %v2645_v58 }
0x106f   : > { %v2686_v30 = vadd.f32 %v2678_v23, %v6259_v62  ;;  %v2690_v34 = vmul.f32 0.7978846, %v2682_v4  ;;  %v2688_v40 = vadd.f32 %v2680_v24, %v6261_v63  ;;  %v2692_v41 = vmul.f32 0.7978846, %v2684_v33 }
0x1070   : > { %4644 = vtanh.f32 %v2689_v25  ;;  %v2693_v31 = vmul.f32 0.7978846, %v2685_v2  ;;  %v2695_v32 = vmul.f32 0.7978846, %v2687_v28  ;;  %v2649_v47 = vmul.f32 0.5, %v6247_v26 }
0x1071   : > { %4646 = vtanh.f32 %v2691_v27  ;;  %v2694_v38 = vmul.f32 0.7978846, %v2686_v30  ;;  %v2696_v42 = vmul.f32 0.7978846, %v2688_v40  ;;  %v2653_v49 = vmul.f32 0.5, %v2602_v39 }
0x1072   : > { %4648 = vtanh.f32 %v2693_v31  ;;  %v2651_v36 = vmul.f32 0.5, %v6249_v29  ;;  %v2655_v54 = vmul.f32 0.5, %v2645_v58  ;;  %v2650_v55 = vmul.f32 0.5, %v6251_v52 }
0x1073   : > { %4650 = vtanh.f32 %v2695_v32  ;;  %v2654_v11 = vmul.f32 0.5, %v6259_v62  ;;  %v2652_v39 = vmul.f32 0.5, %v6253_v53  ;;  %v2656_v7 = vmul.f32 0.5, %v6261_v63  ;;  %v3924_v53 = vld [vmem:[%s6585_s26] ss:$0 sm:$0xff] }
0x1074   : > { %4652 = vtanh.f32 %v2690_v34 }
0x1075   : > { %4654 = vtanh.f32 %v2694_v38 }
0x1076   : > { %4656 = vtanh.f32 %v2692_v41 }
0x1077   : > { %4658 = vtanh.f32 %v2696_v42  ;;  %v5230_v42 = vmov (!%p3957_p6), 0.0  }
0x1078   : > { %4241 = vmatprep.subr.bf16.mxu0 (!%p3957_p6), %v5230_v42  ;;  %4261 = vmatprep.subr.bf16.mxu1 (!%p3957_p6), %v5230_v42 }
0x107a   : > { %v4645_v43 = vpop.eup %4644 }
0x107b   : > { %v4647_v44 = vpop.eup %4646  ;;  %v2705_v59 = vadd.f32 1.0, %v4645_v43  ;;  %v4663_v43 = vld [vmem:[%s6588_s30 + $0x8] sm:$0xff] (!%p3957_p6)  }
0x107c   : > { %v4649_v45 = vpop.eup %4648  ;;  %v2707_v46 = vadd.f32 1.0, %v4647_v44  ;;  %v4665_v44 = vld [vmem:[%s6588_s30 + $0x10] sm:$0xff] (!%p3957_p6)  }
0x107d   : > { %v4651_v48 = vpop.eup %4650  ;;  %v2709_v50 = vadd.f32 1.0, %v4649_v45  ;;  %v2713_v57 = vmul.f32 %v2705_v59, %v2649_v47 }
0x107e   : > { %v4653_v51 = vpop.eup %4652  ;;  %v2711_v37 = vadd.f32 1.0, %v4651_v48  ;;  %v2715_v5 = vmul.f32 %v2707_v46, %v2651_v36 }
0x107f   : > { %v4655_v35 = vpop.eup %4654  ;;  %v2706_v56 = vadd.f32 1.0, %v4653_v51  ;;  %v2717_v61 = vmul.f32 %v2709_v50, %v2653_v49 }
0x1080   : > { %v4657_v0 = vpop.eup %4656  ;;  %v2710_v3 = vadd.f32 1.0, %v4655_v35  ;;  %v2719_v6 = vmul.f32 %v2711_v37, %v2655_v54 }
0x1081   : > { %v4659_v26 = vpop.eup %4658  ;;  %v2708_v29 = vadd.f32 1.0, %v4657_v0  ;;  %v2786_v58 = vpack.c.bf16 %v2717_v61, %v2713_v57  ;;  %v2714_v8 = vmul.f32 %v2706_v56, %v2650_v55  ;;  %v4666_v61 = vld [vmem:[%s6588_s30 + $0x48] sm:$0xff] (!%p3957_p6)   ;;  %v4667_v0 = vld [vmem:[%s6588_s30 + $0x18] sm:$0xff] (!%p3957_p6)  }
0x1082   : > { %v2718_v9 = vmul.f32 %v2710_v3, %v2654_v11  ;;  %v2712_v52 = vadd.f32 1.0, %v4659_v26  ;;  %v2788_v10 = vpack.c.bf16 %v2719_v6, %v2715_v5  ;;  %v4668_v11 = vld [vmem:[%s6588_s30 + $0x50] sm:$0xff] (!%p3957_p6)   ;;  %v4669_v3 = vld [vmem:[%s6588_s30 + $0x20] sm:$0xff] (!%p3957_p6)   ;;  %v4670_v5 = vld [vmem:[%s6588_s30 + $0x58] sm:$0xff] (!%p3957_p6)  }
0x1083   : > { %v2716_v13 = vmul.f32 %v2708_v29, %v2652_v39  ;;  %v4671_v6 = vld [vmem:[%s6588_s30 + $0x28] sm:$0xff] (!%p3957_p6)   ;;  %v4672_v26 = vld [vmem:[%s6588_s30 + $0x60] sm:$0xff] (!%p3957_p6)   ;;  %v4673_v39 = vld [vmem:[%s6588_s30 + $0x30] sm:$0xff] (!%p3957_p6)  }
0x1084   : > { %v2787_v12 = vpack.c.bf16 %v2718_v9, %v2714_v8  ;;  %v2720_v14 = vmul.f32 %v2712_v52, %v2656_v7  ;;  %v4674_v7 = vld [vmem:[%s6588_s30 + $0x68] sm:$0xff] (!%p3957_p6)   ;;  %v4675_v29 = vld [vmem:[%s6588_s30 + $0x38] sm:$0xff] (!%p3957_p6)  }
0x1085   : > { %v4678_v8 = vld [vmem:[%s6588_s30 + $0x78] sm:$0xff] (!%p3957_p6)  }
0x1086   : > { %3020 = vmatprep.mubr.bf16.mxu0 %v2787_v12  ;;  %v2789_v62 = vpack.c.bf16 %v2720_v14, %v2716_v13 }
0x1087   : > { %3021 = vmatmul.mubr.bf16.vlgmr.msra.gmra.mrb[32].mxu0 %v2786_v58  ;;  %v4676_v58 = vld [vmem:[%s6588_s30 + $0x70] sm:$0xff] (!%p3957_p6)  }
0x1088   : > { %3061 = vmatprep.mubr.bf16.mxu1 %v2789_v62  ;;  %4257 = vmatprep.mubr.msk.bf16.mxu0 (!%p3957_p6), %vm5231_vm10, %v5230_v42 }
0x1089   : > { %3062 = vmatmul.mubr.bf16.vlgmr.msra.gmra.mrb[32].mxu1 %v2788_v10 }
0x108a   : > { %4277 = vmatprep.mubr.msk.bf16.mxu1 (!%p3957_p6), %vm5231_vm10, %v5230_v42 }
0x115a   : > { %v4078_v15 = vpop.f32.mrb[32].mxu0 }
0x115b   : > { %v4079_v16 = vpop.f32.mrb[33].mxu0 }
0x115c   : > { %v4100_v63 = vpop.f32.mrb[32].mxu1  ;;  %v4080_v17 = vadd.f32 %v4079_v16, %v4078_v15  ;;  %v4081_v18 = vpop.f32.mrb[34].mxu0  ;;  %v3958_v15 = vld [vmem:[#allocation5] ss:$0 sm:$0xff] (!%p3957_p6)  ;;  %v3959_v16 = vld [vmem:[#allocation7] ss:$0 sm:$0xff] (!%p3957_p6) }
0x115d   : > { %v4101_v19 = vpop.f32.mrb[33].mxu1  ;;  %v4082_v20 = vpop.f32.mrb[35].mxu0 }
0x115e   : > { %v3023_v21 = vadd.f32 %v4080_v17, %v3924_v53  ;;  %v4102_v22 = vadd.f32 %v4101_v19, %v4100_v63  ;;  %v4103_v23 = vpop.f32.mrb[34].mxu1  ;;  %v4083_v24 = vadd.f32 %v4082_v20, %v4081_v18 }
0x115f   : > { %v4104_v25 = vpop.f32.mrb[35].mxu1 }
0x1160   : > { %v3064_v27 = vadd.f32 %v4102_v22, %v3023_v21  ;;  %v3026_v2 = vadd.f32 %v4083_v24, %v3924_v53  ;;  %v4105_v28 = vadd.f32 %v4104_v25, %v4103_v23  ;;  %3077 = sbr.rel (%p3957_p6) target bundleno = 5136 (0x1410), region = 164  ;;  %v4677_v21 = vld [vmem:[%s6588_s30 + $0x80] sm:$0xff] (!%p3957_p6)  }
0x1162   : > { %v3070_v4 = vadd.f32 %v3064_v27, %v6155_v60  ;;  %v3067_v30 = vadd.f32 %v4105_v28, %v3026_v2  ;;  %v4664_v60 = vld [vmem:[%s6588_s30 + $0x40] sm:$0xff] (!%p3957_p6)   ;;  %v4679_v2 = vld [vmem:[%s6588_s30 + $0x88] sm:$0xff] (!%p3957_p6)  }
0x1163   : > { %4262 = vmatpush3.bf16.msra.mxu1 (!%p3957_p6), %v4664_v60 }
0x1164   : > { %3072 = vst [vmem:[#allocation2] sm:$0xff] %v3070_v4  ;;  %v3071_v31 = vadd.f32 %v3067_v30, %v6151_v1  ;;  %v4662_v1 = vld [vmem:[%s6587_s23] sm:$0xff] (!%p3957_p6)   ;;  %4263 = vmatprep.subr.bf16.mxu1 (!%p3957_p6), %v5230_v42  ;;  %v4680_v4 = vld [vmem:[%s6588_s30 + $0x90] sm:$0xff] (!%p3957_p6)   ;;  %v4681_v30 = vld [vmem:[%s6588_s30 + $0x98] sm:$0xff] (!%p3957_p6)  }
0x1165   : > { %4242 = vmatpush3.bf16.msra.mxu0 (!%p3957_p6), %v4662_v1 }
0x1166   : > { %3073 = vst [vmem:[#allocation2 + $0x8] sm:$0xf] %v3071_v31  ;;  %4243 = vmatprep.subr.bf16.mxu0 (!%p3957_p6), %v5230_v42  ;;  %v4682_v31 = vld [vmem:[%s6588_s30 + $0xa0] sm:$0xff] (!%p3957_p6)  }
0x1167   : > { %4264 = vmatpush3.bf16.msra.mxu1 %v4666_v61 }
0x1168   : > { %4265 = vmatprep.subr.bf16.mxu1 %v5230_v42 }
0x1169   : > { %4244 = vmatpush3.bf16.msra.mxu0 %v4663_v43 }
0x116a   : > { %4245 = vmatprep.subr.bf16.mxu0 %v5230_v42 }
0x116b   : > { %v3078_v32 = vld [vmem:[#allocation2] sm:$0xf]  ;;  %v3213_v34 = vld [vmem:[#allocation2 + $0x4] sm:$0xf]  ;;  %4266 = vmatpush3.bf16.msra.mxu1 %v4668_v11 }
0x116c   : > { %v3081_v38 = vsel %vm1247_vm4, %v3078_v32, 0.0  ;;  %v3214_v41 = vsel %vm1247_vm4, %v3213_v34, 0.0  ;;  %4267 = vmatprep.subr.bf16.mxu1 %v5230_v42 }
0x116d   : > { %v3335_v33 = vld [vmem:[#allocation2 + $0x8] sm:$0xf]  ;;  %3082 = vadd.xlane.f32.xlu0 %v3081_v38  ;;  %4246 = vmatpush3.bf16.msra.mxu0 %v4665_v44  ;;  %v4684_v38 = vld [vmem:[%s6588_s30 + $0xb0] sm:$0xff]  }
0x116e   : > { %v3336_v40 = vsel %vm1247_vm4, %v3335_v33, 0.0  ;;  %4247 = vmatprep.subr.bf16.mxu0 %v5230_v42 }
0x116f   : > { %3337 = vadd.xlane.f32.xlu1 %v3336_v40  ;;  %4268 = vmatpush3.bf16.msra.mxu1 %v4670_v5 }
0x1170   : > { %4269 = vmatprep.subr.bf16.mxu1 %v5230_v42 }
0x1171   : > { %3215 = vadd.xlane.f32.xlu0 %v3214_v41  ;;  %4248 = vmatpush3.bf16.msra.mxu0 %v4667_v0  ;;  %v4685_v41 = vld [vmem:[%s6588_s30 + $0xb8] sm:$0xff]  }
0x1172   : > { %4249 = vmatprep.subr.bf16.mxu0 %v5230_v42 }
0x1173   : > { %4270 = vmatpush3.bf16.msra.mxu1 %v4672_v26 }
0x1174   : > { %4271 = vmatprep.subr.bf16.mxu1 %v5230_v42 }
0x1175   : > { %4250 = vmatpush3.bf16.msra.mxu0 %v4669_v3 }
0x1176   : > { %4251 = vmatprep.subr.bf16.mxu0 %v5230_v42 }
0x1177   : > { %4272 = vmatpush3.bf16.msra.mxu1 %v4674_v7 }
0x1178   : > { %4273 = vmatprep.subr.bf16.mxu1 %v5230_v42 }
0x1179   : > { %4252 = vmatpush3.bf16.msra.mxu0 %v4671_v6 }
0x117a   : > { %4253 = vmatprep.subr.bf16.mxu0 %v5230_v42 }
0x117b   : > { %4274 = vmatpush3.bf16.msra.mxu1 %v4676_v58 }
0x117c   : > { %4275 = vmatprep.subr.bf16.mxu1 %v5230_v42 }
0x117d   : > { %4254 = vmatpush3.bf16.msra.mxu0 %v4673_v39 }
0x117e   : > { %4255 = vmatprep.subr.bf16.mxu0 %v5230_v42 }
0x117f   : > { %4276 = vmatpush3.bf16.msra.mxu1 %v4678_v8 }
0x1181   : > { %4256 = vmatpush3.bf16.msra.mxu0 %v4675_v29 }
0x1182   : > { %4281 = vmatprep.subr.bf16.mxu0 %v5230_v42 }
0x11fa   : > { %v3083_v59 = vpop.xlane.xlu0 %3082 }
0x11fb   : > { %v3084_v46 = vmul.f32 0.0078125, %v3083_v59 }
0x11fc   : > { %v3338_v45 = vpop.xlane.xlu1 %3337 }
0x11fd   : > { %v3339_v48 = vmul.f32 0.0078125, %v3338_v45  ;;  %v3085_v47 = vsub.f32 %v3078_v32, %v3084_v46 }
0x11fe   : > { %v3216_v50 = vpop.xlane.xlu0 %3215 }
0x11ff   : > { %v6315_v49 = vsub.f32 %v3335_v33, %v3339_v48  ;;  %v3217_v51 = vmul.f32 0.0078125, %v3216_v50  ;;  %v3086_v36 = vmul.f32 %v3085_v47, %v3085_v47  ;;  %v4683_v33 = vld [vmem:[%s6588_s30 + $0xa8] sm:$0xff]  }
0x1201   : > { %v3341_v54 = vmul.f32 %v6315_v49, %v6315_v49  ;;  %v6319_v37 = vsub.f32 %v3213_v34, %v3217_v51  ;;  %v3087_v35 = vsel %vm1247_vm4, %v3086_v36, 0.0 }
0x1202   : > { %3088 = vadd.xlane.f32.xlu1 %v3087_v35 }
0x1203   : > { %v3342_v55 = vsel %vm1247_vm4, %v3341_v54, 0.0  ;;  %v3219_v56 = vmul.f32 %v6319_v37, %v6319_v37 }
0x1205   : > { %v3220_v57 = vsel %vm1247_vm4, %v3219_v56, 0.0 }
0x1206   : > { %3343 = vadd.xlane.f32.xlu1 %v3342_v55  ;;  %3221 = vadd.xlane.f32.xlu0 %v3220_v57 }
0x128f   : > { %v3089_v9 = vpop.xlane.xlu1 %3088 }
0x1290   : > { %v3090_v52 = vmul.f32 0.0078125, %v3089_v9 }
0x1292   : > { %v3091_v10 = vadd.f32 1e-05, %v3090_v52 }
0x1293   : > { %v3222_v12 = vpop.xlane.xlu0 %3221  ;;  %v3344_v63 = vpop.xlane.xlu1 %3343 }
0x1294   : > { %4686 = vrsqrt.f32 %v3091_v10  ;;  %v3223_v13 = vmul.f32 0.0078125, %v3222_v12  ;;  %v3345_v20 = vmul.f32 0.0078125, %v3344_v63 }
0x1296   : > { %v3224_v14 = vadd.f32 1e-05, %v3223_v13  ;;  %v3346_v25 = vadd.f32 1e-05, %v3345_v20 }
0x1298   : > { %4688 = vrsqrt.f32 %v3224_v14 }
0x1299   : > { %4690 = vrsqrt.f32 %v3346_v25 }
0x129e   : > { %v4687_v62 = vpop.eup %4686 }
0x129f   : > { %v3093_v53 = vmul.f32 %v4687_v62, %v3085_v47 }
0x12a1   : > { %v3100_v17 = vmul.f32 %v3958_v15, %v3093_v53 }
0x12a2   : > { %v4689_v18 = vpop.eup %4688 }
0x12a3   : > { %v3107_v19 = vadd.f32 %v3959_v16, %v3100_v17  ;;  %v3226_v22 = vmul.f32 %v4689_v18, %v6319_v37  ;;  %v4691_v32 = vpop.eup %4690 }
0x12a4   : > { %v3348_v34 = vmul.f32 %v4691_v32, %v6315_v49 }
0x12a5   : > { %v3108_v23 = vpack.c.bf16 %v3107_v19, %v3107_v19  ;;  %v3227_v24 = vmul.f32 %v3958_v15, %v3226_v22 }
0x12a6   : > { %v3349_v40 = vmul.f32 %v3958_v15, %v3348_v34 }
0x12a7   : > { %4258 = vmatmul.mubr.bf16.vlgmr.msra.gmra.mrb[0].mxu0 %v3108_v23  ;;  %v3228_v27 = vadd.f32 %v3959_v16, %v3227_v24 }
0x12a8   : > { %4282 = vmatpush3.bf16.msra.mxu0 %v4677_v21  ;;  %4297 = vmatprep.mubr.msk.bf16.mxu0 %vm5231_vm10, %v5230_v42  ;;  %v3350_v1 = vadd.f32 %v3959_v16, %v3349_v40 }
0x12a9   : > { %4283 = vmatprep.subr.bf16.mxu0 %v5230_v42  ;;  %v3229_v28 = vpack.c.bf16 %v3228_v27, %v3228_v27 }
0x12aa   : > { %v3351_v60 = vpack.c.bf16 %v3350_v1, %v3350_v1 }
0x12ab   : > { %4278 = vmatmul.mubr.bf16.vlgmr.msra.gmra.mrb[0].mxu1 %v3229_v28 }
0x12ac   : > { %4284 = vmatpush3.bf16.msra.mxu0 %v4679_v2 }
0x12ad   : > { %4285 = vmatprep.subr.bf16.mxu0 %v5230_v42 }
0x12b0   : > { %4286 = vmatpush3.bf16.msra.mxu0 %v4680_v4 }
0x12b1   : > { %4287 = vmatprep.subr.bf16.mxu0 %v5230_v42 }
0x12b4   : > { %4288 = vmatpush3.bf16.msra.mxu0 %v4681_v30 }
0x12b5   : > { %4289 = vmatprep.subr.bf16.mxu0 %v5230_v42 }
0x12b8   : > { %4290 = vmatpush3.bf16.msra.mxu0 %v4682_v31 }
0x12b9   : > { %4291 = vmatprep.subr.bf16.mxu0 %v5230_v42 }
0x12bc   : > { %4292 = vmatpush3.bf16.msra.mxu0 %v4683_v33 }
0x12bd   : > { %4293 = vmatprep.subr.bf16.mxu0 %v5230_v42 }
0x12c0   : > { %4294 = vmatpush3.bf16.msra.mxu0 %v4684_v38 }
0x12c1   : > { %4295 = vmatprep.subr.bf16.mxu0 %v5230_v42 }
0x12c4   : > { %4296 = vmatpush3.bf16.msra.mxu0 %v4685_v41 }
0x12c7   : > { %4298 = vmatmul.mubr.bf16.vlgmr.msra.gmra.mrb[4].mxu0 %v3351_v60 }
0x137a   : > { %v3207_v43 = vpop.f32.mrb[0].mxu0 }
0x137b   : > { %v4259_v44 = vpop.f32.mrb[1].mxu0 }
0x137c   : > { %v3210_v59 = vpop.f32.mrb[2].mxu0 }
0x137d   : > { %v4260_v45 = vpop.f32.mrb[3].mxu0 }
0x137e   : > { %v3329_v46 = vpop.f32.mrb[0].mxu1 }
0x137f   : > { %3458 = vrot.lane.b32.xlu0 %v3329_v46, %s5232_s7  ;;  %v4279_v48 = vpop.f32.mrb[1].mxu1 }
0x1380   : > { %v3332_v47 = vpop.f32.mrb[2].mxu1 }
0x1381   : > { %v4280_v49 = vpop.f32.mrb[3].mxu1 }
0x139a   : > { %v3451_v50 = vpop.f32.mrb[4].mxu0 }
0x139b   : > { %3462 = vrot.lane.b32.xlu1 %v3451_v50, %s5233_s6  ;;  %v4299_v51 = vpop.f32.mrb[5].mxu0 }
0x139c   : > { %v3454_v42 = vpop.f32.mrb[6].mxu0 }
0x139d   : > { %v4300_v36 = vpop.f32.mrb[7].mxu0 }
0x13f1   : > { %v3459_v54 = vpop.permute.xlu0 %3458 }
0x13f2   : > { %v3466_v37 = vsel %vm3465_vm11, %v3207_v43, %v3459_v54 }
0x140d   : > { %v3463_v35 = vpop.permute.xlu1 %3462 }
0x140e   : > { %v3468_v55 = vsel %vm3467_vm12, %v3466_v37, %v3463_v35 }
0x140f   : > { %3470 = vst.msk [vmem:[%s5922_s12] sm:$0xf] %vm3469_vm13, %v3468_v55 }
0x1410 PF: > { %s6589_s11 = sld [smem:[#allocation38_spill]]  ;;  %s6590_s1 = sld [smem:[#allocation33_spill]] }
0x1411   : > { %s6591_s22 = sld [smem:[#allocation34_spill]]  ;;  %s6592_s23 = sld [smem:[#allocation41_spill]] }
0x1412   : > { %s6593_s2 = sld [smem:[#allocation37_spill]]  ;;  %s6594_s13 = sld [smem:[#allocation39_spill]] }
0x1413   : > { %s6595_s3 = sld [smem:[#allocation40_spill]]  ;;  %s6596_s24 = smov %s5192_s25 }
0x1416   : > { %s50_s26 = sadd.s32 1, %s6589_s11  }
0x1417   : > { %p47_p2 = scmp.ge.s32.totalorder %s50_s26, 6  }
0x1418   : > { %s6597_s25 = smov %s6594_s13 }
0x1419   :  { %49 = sbr.rel (!%p47_p2) target bundleno = 36 (0x24), region = 289 }
0x1420   :  { %3490 = vsyncpa [#allocation4], 1 }
0x1421   :  { %3492 = vsyncpa [#allocation4 + $0x1], 1 }
0x1422   :  { %3493 = vsyncpa [#allocation6], 1 }
0x1423   :  { %3494 = vsyncpa [#allocation9], 1 }
0x1424   :  { %3496 = vsyncpa [#allocation9 + $0x1], 1 }
0x1425   :  { %3497 = vsyncpa [#allocation12], 1 }
0x1426   :  { %3499 = vsyncpa [#allocation12 + $0x1], 1 }
0x1427   :  { %3500 = vsyncpa [#allocation15], 1 }
0x1428   :  { %3502 = vsyncpa [#allocation15 + $0x1], 1 }
0x1429   :  { %3503 = vsyncpa [#allocation18], 1 }
0x142a   :  { %3505 = vsyncpa [#allocation18 + $0x1], 1 }
0x142b   :  { %3506 = vsyncpa [#allocation21], 1 }
0x142c   :  { %3508 = vsyncpa [#allocation21 + $0x1], 1 }
0x142d   :  { %3509 = vsyncpa [#allocation24], 1 }
0x142e   :  { %3511 = vsyncpa [#allocation24 + $0x1], 1 }

</bundles_post_ra>
